<compile_context>
chip_gen: v5e
topology: v5e:2x2
jax: 0.10.0
libtpu: 0.0.40
codegen_flags: <defaults>
</compile_context>

<pallas_src>
import jax
import jax.numpy as jnp
from jax import lax
from jax.experimental import pallas as pl
from jax.experimental.pallas import tpu as pltpu

NUM_FEATURES = 12
NUM_HIDDEN = 32          # H
MLP_HIDDEN = 128
N_LABELS = 5
OUT_ROWS = 8             # logits padded to 8 sublanes (lane dim carries the batch)
B_TILE = 128             # batch lanes per grid step (one lane-tile)
T_CHUNK_MAX = 64         # timesteps per grid step (fully unrolled inside the kernel)


def _round_up(n, m):
    return ((n + m - 1) // m) * m


def _make_kernel(t_chunk, t_total):
    """Kernel factory: t_chunk / t_total are baked in as Python constants."""
    H = NUM_HIDDEN
    mask_time = (t_total % t_chunk) != 0   # only the last chunk can contain padded steps

    def kernel(pre_ref, whh_ref, w1_ref, b1_ref, w2_ref, b2_ref,
               out_ref, h_sc, c_sc):
        # pre_ref: (t_chunk, 4H, Bt) bf16  — x @ W_ih^T + b, batch in lanes, time-major
        # whh_ref: (4H, H) bf16            — PyTorch weight_hh_l0 as-is
        # w1_ref : (128, H) bf16, b1_ref: (128, 1) f32
        # w2_ref : (8, 128) bf16 (rows 5..7 zero), b2_ref: (8, 1) f32
        # out_ref: (8, Bt) f32             — logits in sublanes [0:5], batch in lanes
        # h_sc/c_sc: (H, Bt) f32 VMEM scratch, carried across t chunks
        t_blk = pl.program_id(1)

        @pl.when(t_blk == 0)
        def _init():
            h_sc[...] = jnp.zeros_like(h_sc)
            c_sc[...] = jnp.zeros_like(c_sc)

        whh = whh_ref[...]   # loaded once per chunk; reused by every unrolled step

        def step(t, carry):
            h, c = carry                                     # (H, Bt) f32
            # Only the recurrent matmul is on the serial chain (bf16 in, f32 acc).
            gates = pre_ref[t].astype(jnp.float32) + jnp.dot(
                whh, h.astype(jnp.bfloat16),
                preferred_element_type=jnp.float32)          # (4H, Bt)
            # Gate blocks are sublane-aligned row slices (multiples of 32).
            i_f = jax.nn.sigmoid(gates[0:2 * H])             # i,f gates in one EUP pass
            g = jnp.tanh(gates[2 * H:3 * H])
            o = jax.nn.sigmoid(gates[3 * H:4 * H])
            c_new = i_f[H:2 * H] * c + i_f[0:H] * g
            h_new = o * jnp.tanh(c_new)
            if mask_time:
                valid = (t_blk * t_chunk + t) < t_total
                h_new = jnp.where(valid, h_new, h)
                c_new = jnp.where(valid, c_new, c)
            return h_new, c_new

        # Chunk is short and static -> full unroll gives the LLO scheduler visibility.
        h_fin, c_fin = lax.fori_loop(0, t_chunk, step, (h_sc[...], c_sc[...]),
                                     unroll=True)
        h_sc[...] = h_fin
        c_sc[...] = c_fin

        @pl.when(t_blk == pl.num_programs(1) - 1)
        def _head():
            # Classifier head: Linear(32,128) -> ReLU -> Dropout(identity, eval)
            #                  -> Linear(128,5) padded to 8 output rows.
            # TODO(synk): Dropout(p=0.2) is identity in eval mode; training-mode RNG
            # masking not implemented.
            hb = h_fin.astype(jnp.bfloat16)
            z = jnp.dot(w1_ref[...], hb,
                        preferred_element_type=jnp.float32) + b1_ref[...]
            z = jnp.maximum(z, 0.0)
            logits = jnp.dot(w2_ref[...], z.astype(jnp.bfloat16),
                             preferred_element_type=jnp.float32) + b2_ref[...]
            out_ref[...] = logits.astype(out_ref.dtype)

    return kernel


def init_params(key, num_features=NUM_FEATURES, num_hidden=NUM_HIDDEN,
                mlp_hidden=MLP_HIDDEN, n_labels=N_LABELS):
    """Deterministic init, same shapes / distributions as PyTorch defaults."""
    ks = jax.random.split(key, 8)
    k = 1.0 / jnp.sqrt(num_hidden)
    u = lambda kk, shape, bound: jax.random.uniform(kk, shape, jnp.float32, -bound, bound)
    return {
        "w_ih": u(ks[0], (4 * num_hidden, num_features), k),   # PyTorch weight_ih_l0
        "w_hh": u(ks[1], (4 * num_hidden, num_hidden), k),     # PyTorch weight_hh_l0
        "b_ih": u(ks[2], (4 * num_hidden,), k),
        "b_hh": u(ks[3], (4 * num_hidden,), k),
        "w1": u(ks[4], (mlp_hidden, num_hidden), 1.0 / jnp.sqrt(num_hidden)),
        "b1": u(ks[5], (mlp_hidden,), 1.0 / jnp.sqrt(num_hidden)),
        "w2": u(ks[6], (n_labels, mlp_hidden), 1.0 / jnp.sqrt(mlp_hidden)),
        "b2": u(ks[7], (n_labels,), 1.0 / jnp.sqrt(mlp_hidden)),
    }


def lstm_classifier_forward(x, params, *, b_tile=B_TILE, t_chunk_max=T_CHUNK_MAX):
    """x: (B, T, F) batch-first, like the PyTorch module. Returns (B, n_labels) float32."""
    B, T, F = x.shape
    assert F == NUM_FEATURES
    H = NUM_HIDDEN

    # Batch lives in the lane dimension -> pad to a multiple of 128.
    b_pad = _round_up(B, b_tile)
    num_b_tiles = b_pad // b_tile
    # Time-chunked grid axis bounds VMEM (bf16 pre block: t_chunk*128*128*2 B, x2 buffers)
    # and caps the unrolled instruction count per chunk.
    t_chunk = min(t_chunk_max, T)
    n_chunks = pl.cdiv(T, t_chunk)
    t_pad = n_chunks * t_chunk

    x = x.astype(jnp.float32)
    if b_pad != B:
        x = jnp.pad(x, ((0, b_pad - B), (0, 0), (0, 0)))

    # Hoisted input projection: one lane-dense matmul outside the recurrence,
    # stored time-major with batch in lanes, bf16 in HBM.
    #   pre[t, g, b] = sum_f W_ih[g, f] * x[b, t, f] + (b_ih + b_hh)[g]
    bias = (params["b_ih"] + params["b_hh"]).reshape(1, -1, 1)           # (1, 4H, 1)
    pre = jnp.einsum("gf,btf->tgb", params["w_ih"], x,
                     preferred_element_type=jnp.float32) + bias          # (T, 4H, B_pad)
    pre = pre.astype(jnp.bfloat16)
    if t_pad != T:
        pre = jnp.pad(pre, ((0, t_pad - T), (0, 0), (0, 0)))

    whh = params["w_hh"].astype(jnp.bfloat16)                            # (4H, H)
    w1 = params["w1"].astype(jnp.bfloat16)                               # (128, H)
    b1 = params["b1"].reshape(-1, 1).astype(jnp.float32)                 # (128, 1)
    w2 = jnp.zeros((OUT_ROWS, MLP_HIDDEN), jnp.float32).at[:N_LABELS].set(params["w2"])
    w2 = w2.astype(jnp.bfloat16)                                         # (8, 128)
    b2 = jnp.zeros((OUT_ROWS, 1), jnp.float32).at[:N_LABELS, 0].set(params["b2"])

    kernel = _make_kernel(t_chunk, T)

    out = pl.pallas_call(
        kernel,
        out_shape=jax.ShapeDtypeStruct((OUT_ROWS, b_pad), jnp.float32),
        grid_spec=pltpu.PrefetchScalarGridSpec(
            num_scalar_prefetch=0,
            grid=(num_b_tiles, n_chunks),                     # reduction (time) axis last
            in_specs=[
                pl.BlockSpec((t_chunk, 4 * H, b_tile), lambda b, t: (t, 0, b)),  # pre
                pl.BlockSpec((4 * H, H), lambda b, t: (0, 0)),                   # W_hh
                pl.BlockSpec((MLP_HIDDEN, H), lambda b, t: (0, 0)),              # W1
                pl.BlockSpec((MLP_HIDDEN, 1), lambda b, t: (0, 0)),              # b1
                pl.BlockSpec((OUT_ROWS, MLP_HIDDEN), lambda b, t: (0, 0)),       # W2 (pad)
                pl.BlockSpec((OUT_ROWS, 1), lambda b, t: (0, 0)),                # b2 (pad)
            ],
            out_specs=pl.BlockSpec((OUT_ROWS, b_tile), lambda b, t: (0, b)),
            scratch_shapes=[pltpu.VMEM((H, b_tile), jnp.float32),   # h carry
                            pltpu.VMEM((H, b_tile), jnp.float32)],  # c carry
        ),
        compiler_params=pltpu.CompilerParams(
            dimension_semantics=("parallel", "arbitrary")),   # batch tiles shard on v7x
    )(pre, whh, w1, b1, w2, b2)

    # Logits live in sublanes [0:5], batch in lanes -> slice and transpose back.
    return out[:N_LABELS, :B].T


def _reference_forward(x, params):
    """Pure-JAX f32 reference (matches PyTorch nn.LSTM + classifier semantics)."""
    B, T, F = x.shape
    H = NUM_HIDDEN
    wih_t = params["w_ih"].T
    whh_t = params["w_hh"].T
    b = params["b_ih"] + params["b_hh"]

    def step(carry, xt):
        h, c = carry
        gates = xt @ wih_t + h @ whh_t + b
        i_g = jax.nn.sigmoid(gates[:, 0 * H:1 * H])
        f_g = jax.nn.sigmoid(gates[:, 1 * H:2 * H])
        g_g = jnp.tanh(gates[:, 2 * H:3 * H])
        o_g = jax.nn.sigmoid(gates[:, 3 * H:4 * H])
        c_new = f_g * c + i_g * g_g
        h_new = o_g * jnp.tanh(c_new)
        return (h_new, c_new), None

    h0 = jnp.zeros((B, H), jnp.float32)
    c0 = jnp.zeros((B, H), jnp.float32)
    (h_final, _), _ = lax.scan(step, (h0, c0), jnp.transpose(x, (1, 0, 2)))
    z = jnp.maximum(h_final @ params["w1"].T + params["b1"], 0.0)
    return z @ params["w2"].T + params["b2"]


if __name__ == "__main__":
    key = jax.random.PRNGKey(0)
    k_param, k_x = jax.random.split(key)

    B, T, F = 2, 8, NUM_FEATURES
    params = init_params(k_param)
    x = jax.random.normal(k_x, (B, T, F), dtype=jnp.float32)

    out = jax.block_until_ready(lstm_classifier_forward(x, params))
    ref = jax.block_until_ready(_reference_forward(x, params))

    assert out.shape == (B, N_LABELS)
    # bf16 MXU operands + bf16 pre slab -> loosen tolerance vs the pure-f32 reference.
    assert jnp.allclose(out, ref, atol=5e-2, rtol=5e-2), "mismatch vs reference"

    print("KERNEL_OK")
</pallas_src>

<mosaic_0001>
module attributes {stable_mosaic.version = 11 : i64} {
  func.func @kernel(%arg0: i32, %arg1: i32, %arg2: memref<8x128x128xbf16, #tpu.memory_space<vmem>>, %arg3: memref<128x32xbf16, #tpu.memory_space<vmem>>, %arg4: memref<128x32xbf16, #tpu.memory_space<vmem>>, %arg5: memref<128x1xf32, #tpu.memory_space<vmem>>, %arg6: memref<8x128xbf16, #tpu.memory_space<vmem>>, %arg7: memref<8x1xf32, #tpu.memory_space<vmem>>, %arg8: memref<8x128xf32, #tpu.memory_space<vmem>>, %arg9: memref<32x128xf32, #tpu.memory_space<vmem>>, %arg10: memref<32x128xf32, #tpu.memory_space<vmem>>) attributes {dimension_semantics = [#tpu.dimension_semantics<parallel>, #tpu.dimension_semantics<arbitrary>], iteration_bounds = array<i64: 1, 1>, scalar_prefetch = 0 : i64, scratch_operands = 2 : i64, tpu.core_type = #tpu.core_type<tc>, window_params = [{transform_indices = @transform_0, window_bounds = array<i64: 8, 128, 128>}, {pipeline_mode = #tpu.pipeline_mode<synchronous>, transform_indices = @transform_1, window_bounds = array<i64: 128, 32>}, {pipeline_mode = #tpu.pipeline_mode<synchronous>, transform_indices = @transform_2, window_bounds = array<i64: 128, 32>}, {pipeline_mode = #tpu.pipeline_mode<synchronous>, transform_indices = @transform_3, window_bounds = array<i64: 128, 1>}, {pipeline_mode = #tpu.pipeline_mode<synchronous>, transform_indices = @transform_4, window_bounds = array<i64: 8, 128>}, {pipeline_mode = #tpu.pipeline_mode<synchronous>, transform_indices = @transform_5, window_bounds = array<i64: 8, 1>}, {transform_indices = @transform_6, window_bounds = array<i64: 8, 128>}]} {
    %c0_i32 = arith.constant 0 : i32
    %0 = arith.cmpi eq, %arg1, %c0_i32 : i32
    %1 = arith.extui %0 : i1 to i32
    %c0_i32_0 = arith.constant 0 : i32
    %2 = arith.cmpi ne, %1, %c0_i32_0 : i32
    scf.if %2 {
      %cst_52 = arith.constant 0.000000e+00 : f32
      %235 = vector.broadcast %cst_52 : f32 to vector<32x128xf32>
      %c0_53 = arith.constant 0 : index
      %c0_54 = arith.constant 0 : index
      %236 = vector.load %arg9[%c0_53, %c0_54] : memref<32x128xf32, #tpu.memory_space<vmem>>, vector<32x128xf32>
      tpu.vector_store %arg9[%c0_53, %c0_54], %235 {strides = array<i32>} : memref<32x128xf32, #tpu.memory_space<vmem>>, vector<32x128xf32>,
      %cst_55 = arith.constant 0.000000e+00 : f32
      %237 = vector.broadcast %cst_55 : f32 to vector<32x128xf32>
      %c0_56 = arith.constant 0 : index
      %c0_57 = arith.constant 0 : index
      %238 = vector.load %arg10[%c0_56, %c0_57] : memref<32x128xf32, #tpu.memory_space<vmem>>, vector<32x128xf32>
      tpu.vector_store %arg10[%c0_56, %c0_57], %237 {strides = array<i32>} : memref<32x128xf32, #tpu.memory_space<vmem>>, vector<32x128xf32>,
    } else {
    }
    %c0 = arith.constant 0 : index
    %c0_1 = arith.constant 0 : index
    %3 = vector.load %arg3[%c0, %c0_1] : memref<128x32xbf16, #tpu.memory_space<vmem>>, vector<128x32xbf16>
    %c0_2 = arith.constant 0 : index
    %c0_3 = arith.constant 0 : index
    %4 = vector.load %arg9[%c0_2, %c0_3] : memref<32x128xf32, #tpu.memory_space<vmem>>, vector<32x128xf32>
    %c0_4 = arith.constant 0 : index
    %c0_5 = arith.constant 0 : index
    %5 = vector.load %arg10[%c0_4, %c0_5] : memref<32x128xf32, #tpu.memory_space<vmem>>, vector<32x128xf32>
    %c0_i32_6 = arith.constant 0 : i32
    %6 = arith.index_cast %c0_i32_6 : i32 to index
    %c0_7 = arith.constant 0 : index
    %c0_8 = arith.constant 0 : index
    %7 = vector.load %arg2[%6, %c0_7, %c0_8] : memref<8x128x128xbf16, #tpu.memory_space<vmem>>, vector<1x128x128xbf16>
    %8 = vector.shape_cast %7 : vector<1x128x128xbf16> to vector<128x128xbf16>
    %9 = arith.extf %8 : vector<128x128xbf16> to vector<128x128xf32>
    %10 = arith.truncf %4 : vector<32x128xf32> to vector<32x128xbf16>
    %cst = arith.constant dense<0.000000e+00> : vector<128x128xf32>
    %11 = tpu.matmul %3, %10, %cst {dimension_numbers = #tpu.dot_dimension_numbers<[1], [0], [0], [1], [0, 0, 1, 1], [], []>} : vector<128x32xbf16>, vector<32x128xbf16>, vector<128x128xf32> -> vector<128x128xf32>
    %12 = arith.addf %9, %11 : vector<128x128xf32>
    %13 = vector.extract_strided_slice %12 {offsets = [0, 0], sizes = [64, 128], strides = [1, 1]} : vector<128x128xf32> to vector<64x128xf32>
    %14 = arith.negf %13 : vector<64x128xf32>
    %15 = math.exp %14 : vector<64x128xf32>
    %cst_9 = arith.constant 1.000000e+00 : f32
    %16 = vector.broadcast %cst_9 : f32 to vector<64x128xf32>
    %17 = arith.addf %16, %15 : vector<64x128xf32>
    %18 = arith.divf %16, %17 : vector<64x128xf32>
    %19 = vector.extract_strided_slice %12 {offsets = [64, 0], sizes = [32, 128], strides = [1, 1]} : vector<128x128xf32> to vector<32x128xf32>
    %20 = math.tanh %19 : vector<32x128xf32>
    %21 = vector.extract_strided_slice %12 {offsets = [96, 0], sizes = [32, 128], strides = [1, 1]} : vector<128x128xf32> to vector<32x128xf32>
    %22 = arith.negf %21 : vector<32x128xf32>
    %23 = math.exp %22 : vector<32x128xf32>
    %cst_10 = arith.constant 1.000000e+00 : f32
    %24 = vector.broadcast %cst_10 : f32 to vector<32x128xf32>
    %25 = arith.addf %24, %23 : vector<32x128xf32>
    %26 = arith.divf %24, %25 : vector<32x128xf32>
    %27 = vector.extract_strided_slice %18 {offsets = [32, 0], sizes = [32, 128], strides = [1, 1]} : vector<64x128xf32> to vector<32x128xf32>
    %28 = arith.mulf %27, %5 : vector<32x128xf32>
    %29 = vector.extract_strided_slice %18 {offsets = [0, 0], sizes = [32, 128], strides = [1, 1]} : vector<64x128xf32> to vector<32x128xf32>
    %30 = arith.mulf %29, %20 : vector<32x128xf32>
    %31 = arith.addf %28, %30 : vector<32x128xf32>
    %32 = math.tanh %31 : vector<32x128xf32>
    %33 = arith.mulf %26, %32 : vector<32x128xf32>
    %c1_i32 = arith.constant 1 : i32
    %34 = arith.index_cast %c1_i32 : i32 to index
    %c0_11 = arith.constant 0 : index
    %c0_12 = arith.constant 0 : index
    %35 = vector.load %arg2[%34, %c0_11, %c0_12] : memref<8x128x128xbf16, #tpu.memory_space<vmem>>, vector<1x128x128xbf16>
    %36 = vector.shape_cast %35 : vector<1x128x128xbf16> to vector<128x128xbf16>
    %37 = arith.extf %36 : vector<128x128xbf16> to vector<128x128xf32>
    %38 = arith.truncf %33 : vector<32x128xf32> to vector<32x128xbf16>
    %cst_13 = arith.constant dense<0.000000e+00> : vector<128x128xf32>
    %39 = tpu.matmul %3, %38, %cst_13 {dimension_numbers = #tpu.dot_dimension_numbers<[1], [0], [0], [1], [0, 0, 1, 1], [], []>} : vector<128x32xbf16>, vector<32x128xbf16>, vector<128x128xf32> -> vector<128x128xf32>
    %40 = arith.addf %37, %39 : vector<128x128xf32>
    %41 = vector.extract_strided_slice %40 {offsets = [0, 0], sizes = [64, 128], strides = [1, 1]} : vector<128x128xf32> to vector<64x128xf32>
    %42 = arith.negf %41 : vector<64x128xf32>
    %43 = math.exp %42 : vector<64x128xf32>
    %cst_14 = arith.constant 1.000000e+00 : f32
    %44 = vector.broadcast %cst_14 : f32 to vector<64x128xf32>
    %45 = arith.addf %44, %43 : vector<64x128xf32>
    %46 = arith.divf %44, %45 : vector<64x128xf32>
    %47 = vector.extract_strided_slice %40 {offsets = [64, 0], sizes = [32, 128], strides = [1, 1]} : vector<128x128xf32> to vector<32x128xf32>
    %48 = math.tanh %47 : vector<32x128xf32>
    %49 = vector.extract_strided_slice %40 {offsets = [96, 0], sizes = [32, 128], strides = [1, 1]} : vector<128x128xf32> to vector<32x128xf32>
    %50 = arith.negf %49 : vector<32x128xf32>
    %51 = math.exp %50 : vector<32x128xf32>
    %cst_15 = arith.constant 1.000000e+00 : f32
    %52 = vector.broadcast %cst_15 : f32 to vector<32x128xf32>
    %53 = arith.addf %52, %51 : vector<32x128xf32>
    %54 = arith.divf %52, %53 : vector<32x128xf32>
    %55 = vector.extract_strided_slice %46 {offsets = [32, 0], sizes = [32, 128], strides = [1, 1]} : vector<64x128xf32> to vector<32x128xf32>
    %56 = arith.mulf %55, %31 : vector<32x128xf32>
    %57 = vector.extract_strided_slice %46 {offsets = [0, 0], sizes = [32, 128], strides = [1, 1]} : vector<64x128xf32> to vector<32x128xf32>
    %58 = arith.mulf %57, %48 : vector<32x128xf32>
    %59 = arith.addf %56, %58 : vector<32x128xf32>
    %60 = math.tanh %59 : vector<32x128xf32>
    %61 = arith.mulf %54, %60 : vector<32x128xf32>
    %c2_i32 = arith.constant 2 : i32
    %62 = arith.index_cast %c2_i32 : i32 to index
    %c0_16 = arith.constant 0 : index
    %c0_17 = arith.constant 0 : index
    %63 = vector.load %arg2[%62, %c0_16, %c0_17] : memref<8x128x128xbf16, #tpu.memory_space<vmem>>, vector<1x128x128xbf16>
    %64 = vector.shape_cast %63 : vector<1x128x128xbf16> to vector<128x128xbf16>
    %65 = arith.extf %64 : vector<128x128xbf16> to vector<128x128xf32>
    %66 = arith.truncf %61 : vector<32x128xf32> to vector<32x128xbf16>
    %cst_18 = arith.constant dense<0.000000e+00> : vector<128x128xf32>
    %67 = tpu.matmul %3, %66, %cst_18 {dimension_numbers = #tpu.dot_dimension_numbers<[1], [0], [0], [1], [0, 0, 1, 1], [], []>} : vector<128x32xbf16>, vector<32x128xbf16>, vector<128x128xf32> -> vector<128x128xf32>
    %68 = arith.addf %65, %67 : vector<128x128xf32>
    %69 = vector.extract_strided_slice %68 {offsets = [0, 0], sizes = [64, 128], strides = [1, 1]} : vector<128x128xf32> to vector<64x128xf32>
    %70 = arith.negf %69 : vector<64x128xf32>
    %71 = math.exp %70 : vector<64x128xf32>
    %cst_19 = arith.constant 1.000000e+00 : f32
    %72 = vector.broadcast %cst_19 : f32 to vector<64x128xf32>
    %73 = arith.addf %72, %71 : vector<64x128xf32>
    %74 = arith.divf %72, %73 : vector<64x128xf32>
    %75 = vector.extract_strided_slice %68 {offsets = [64, 0], sizes = [32, 128], strides = [1, 1]} : vector<128x128xf32> to vector<32x128xf32>
    %76 = math.tanh %75 : vector<32x128xf32>
    %77 = vector.extract_strided_slice %68 {offsets = [96, 0], sizes = [32, 128], strides = [1, 1]} : vector<128x128xf32> to vector<32x128xf32>
    %78 = arith.negf %77 : vector<32x128xf32>
    %79 = math.exp %78 : vector<32x128xf32>
    %cst_20 = arith.constant 1.000000e+00 : f32
    %80 = vector.broadcast %cst_20 : f32 to vector<32x128xf32>
    %81 = arith.addf %80, %79 : vector<32x128xf32>
    %82 = arith.divf %80, %81 : vector<32x128xf32>
    %83 = vector.extract_strided_slice %74 {offsets = [32, 0], sizes = [32, 128], strides = [1, 1]} : vector<64x128xf32> to vector<32x128xf32>
    %84 = arith.mulf %83, %59 : vector<32x128xf32>
    %85 = vector.extract_strided_slice %74 {offsets = [0, 0], sizes = [32, 128], strides = [1, 1]} : vector<64x128xf32> to vector<32x128xf32>
    %86 = arith.mulf %85, %76 : vector<32x128xf32>
    %87 = arith.addf %84, %86 : vector<32x128xf32>
    %88 = math.tanh %87 : vector<32x128xf32>
    %89 = arith.mulf %82, %88 : vector<32x128xf32>
    %c3_i32 = arith.constant 3 : i32
    %90 = arith.index_cast %c3_i32 : i32 to index
    %c0_21 = arith.constant 0 : index
    %c0_22 = arith.constant 0 : index
    %91 = vector.load %arg2[%90, %c0_21, %c0_22] : memref<8x128x128xbf16, #tpu.memory_space<vmem>>, vector<1x128x128xbf16>
    %92 = vector.shape_cast %91 : vector<1x128x128xbf16> to vector<128x128xbf16>
    %93 = arith.extf %92 : vector<128x128xbf16> to vector<128x128xf32>
    %94 = arith.truncf %89 : vector<32x128xf32> to vector<32x128xbf16>
    %cst_23 = arith.constant dense<0.000000e+00> : vector<128x128xf32>
    %95 = tpu.matmul %3, %94, %cst_23 {dimension_numbers = #tpu.dot_dimension_numbers<[1], [0], [0], [1], [0, 0, 1, 1], [], []>} : vector<128x32xbf16>, vector<32x128xbf16>, vector<128x128xf32> -> vector<128x128xf32>
    %96 = arith.addf %93, %95 : vector<128x128xf32>
    %97 = vector.extract_strided_slice %96 {offsets = [0, 0], sizes = [64, 128], strides = [1, 1]} : vector<128x128xf32> to vector<64x128xf32>
    %98 = arith.negf %97 : vector<64x128xf32>
    %99 = math.exp %98 : vector<64x128xf32>
    %cst_24 = arith.constant 1.000000e+00 : f32
    %100 = vector.broadcast %cst_24 : f32 to vector<64x128xf32>
    %101 = arith.addf %100, %99 : vector<64x128xf32>
    %102 = arith.divf %100, %101 : vector<64x128xf32>
    %103 = vector.extract_strided_slice %96 {offsets = [64, 0], sizes = [32, 128], strides = [1, 1]} : vector<128x128xf32> to vector<32x128xf32>
    %104 = math.tanh %103 : vector<32x128xf32>
    %105 = vector.extract_strided_slice %96 {offsets = [96, 0], sizes = [32, 128], strides = [1, 1]} : vector<128x128xf32> to vector<32x128xf32>
    %106 = arith.negf %105 : vector<32x128xf32>
    %107 = math.exp %106 : vector<32x128xf32>
    %cst_25 = arith.constant 1.000000e+00 : f32
    %108 = vector.broadcast %cst_25 : f32 to vector<32x128xf32>
    %109 = arith.addf %108, %107 : vector<32x128xf32>
    %110 = arith.divf %108, %109 : vector<32x128xf32>
    %111 = vector.extract_strided_slice %102 {offsets = [32, 0], sizes = [32, 128], strides = [1, 1]} : vector<64x128xf32> to vector<32x128xf32>
    %112 = arith.mulf %111, %87 : vector<32x128xf32>
    %113 = vector.extract_strided_slice %102 {offsets = [0, 0], sizes = [32, 128], strides = [1, 1]} : vector<64x128xf32> to vector<32x128xf32>
    %114 = arith.mulf %113, %104 : vector<32x128xf32>
    %115 = arith.addf %112, %114 : vector<32x128xf32>
    %116 = math.tanh %115 : vector<32x128xf32>
    %117 = arith.mulf %110, %116 : vector<32x128xf32>
    %c4_i32 = arith.constant 4 : i32
    %118 = arith.index_cast %c4_i32 : i32 to index
    %c0_26 = arith.constant 0 : index
    %c0_27 = arith.constant 0 : index
    %119 = vector.load %arg2[%118, %c0_26, %c0_27] : memref<8x128x128xbf16, #tpu.memory_space<vmem>>, vector<1x128x128xbf16>
    %120 = vector.shape_cast %119 : vector<1x128x128xbf16> to vector<128x128xbf16>
    %121 = arith.extf %120 : vector<128x128xbf16> to vector<128x128xf32>
    %122 = arith.truncf %117 : vector<32x128xf32> to vector<32x128xbf16>
    %cst_28 = arith.constant dense<0.000000e+00> : vector<128x128xf32>
    %123 = tpu.matmul %3, %122, %cst_28 {dimension_numbers = #tpu.dot_dimension_numbers<[1], [0], [0], [1], [0, 0, 1, 1], [], []>} : vector<128x32xbf16>, vector<32x128xbf16>, vector<128x128xf32> -> vector<128x128xf32>
    %124 = arith.addf %121, %123 : vector<128x128xf32>
    %125 = vector.extract_strided_slice %124 {offsets = [0, 0], sizes = [64, 128], strides = [1, 1]} : vector<128x128xf32> to vector<64x128xf32>
    %126 = arith.negf %125 : vector<64x128xf32>
    %127 = math.exp %126 : vector<64x128xf32>
    %cst_29 = arith.constant 1.000000e+00 : f32
    %128 = vector.broadcast %cst_29 : f32 to vector<64x128xf32>
    %129 = arith.addf %128, %127 : vector<64x128xf32>
    %130 = arith.divf %128, %129 : vector<64x128xf32>
    %131 = vector.extract_strided_slice %124 {offsets = [64, 0], sizes = [32, 128], strides = [1, 1]} : vector<128x128xf32> to vector<32x128xf32>
    %132 = math.tanh %131 : vector<32x128xf32>
    %133 = vector.extract_strided_slice %124 {offsets = [96, 0], sizes = [32, 128], strides = [1, 1]} : vector<128x128xf32> to vector<32x128xf32>
    %134 = arith.negf %133 : vector<32x128xf32>
    %135 = math.exp %134 : vector<32x128xf32>
    %cst_30 = arith.constant 1.000000e+00 : f32
    %136 = vector.broadcast %cst_30 : f32 to vector<32x128xf32>
    %137 = arith.addf %136, %135 : vector<32x128xf32>
    %138 = arith.divf %136, %137 : vector<32x128xf32>
    %139 = vector.extract_strided_slice %130 {offsets = [32, 0], sizes = [32, 128], strides = [1, 1]} : vector<64x128xf32> to vector<32x128xf32>
    %140 = arith.mulf %139, %115 : vector<32x128xf32>
    %141 = vector.extract_strided_slice %130 {offsets = [0, 0], sizes = [32, 128], strides = [1, 1]} : vector<64x128xf32> to vector<32x128xf32>
    %142 = arith.mulf %141, %132 : vector<32x128xf32>
    %143 = arith.addf %140, %142 : vector<32x128xf32>
    %144 = math.tanh %143 : vector<32x128xf32>
    %145 = arith.mulf %138, %144 : vector<32x128xf32>
    %c5_i32 = arith.constant 5 : i32
    %146 = arith.index_cast %c5_i32 : i32 to index
    %c0_31 = arith.constant 0 : index
    %c0_32 = arith.constant 0 : index
    %147 = vector.load %arg2[%146, %c0_31, %c0_32] : memref<8x128x128xbf16, #tpu.memory_space<vmem>>, vector<1x128x128xbf16>
    %148 = vector.shape_cast %147 : vector<1x128x128xbf16> to vector<128x128xbf16>
    %149 = arith.extf %148 : vector<128x128xbf16> to vector<128x128xf32>
    %150 = arith.truncf %145 : vector<32x128xf32> to vector<32x128xbf16>
    %cst_33 = arith.constant dense<0.000000e+00> : vector<128x128xf32>
    %151 = tpu.matmul %3, %150, %cst_33 {dimension_numbers = #tpu.dot_dimension_numbers<[1], [0], [0], [1], [0, 0, 1, 1], [], []>} : vector<128x32xbf16>, vector<32x128xbf16>, vector<128x128xf32> -> vector<128x128xf32>
    %152 = arith.addf %149, %151 : vector<128x128xf32>
    %153 = vector.extract_strided_slice %152 {offsets = [0, 0], sizes = [64, 128], strides = [1, 1]} : vector<128x128xf32> to vector<64x128xf32>
    %154 = arith.negf %153 : vector<64x128xf32>
    %155 = math.exp %154 : vector<64x128xf32>
    %cst_34 = arith.constant 1.000000e+00 : f32
    %156 = vector.broadcast %cst_34 : f32 to vector<64x128xf32>
    %157 = arith.addf %156, %155 : vector<64x128xf32>
    %158 = arith.divf %156, %157 : vector<64x128xf32>
    %159 = vector.extract_strided_slice %152 {offsets = [64, 0], sizes = [32, 128], strides = [1, 1]} : vector<128x128xf32> to vector<32x128xf32>
    %160 = math.tanh %159 : vector<32x128xf32>
    %161 = vector.extract_strided_slice %152 {offsets = [96, 0], sizes = [32, 128], strides = [1, 1]} : vector<128x128xf32> to vector<32x128xf32>
    %162 = arith.negf %161 : vector<32x128xf32>
    %163 = math.exp %162 : vector<32x128xf32>
    %cst_35 = arith.constant 1.000000e+00 : f32
    %164 = vector.broadcast %cst_35 : f32 to vector<32x128xf32>
    %165 = arith.addf %164, %163 : vector<32x128xf32>
    %166 = arith.divf %164, %165 : vector<32x128xf32>
    %167 = vector.extract_strided_slice %158 {offsets = [32, 0], sizes = [32, 128], strides = [1, 1]} : vector<64x128xf32> to vector<32x128xf32>
    %168 = arith.mulf %167, %143 : vector<32x128xf32>
    %169 = vector.extract_strided_slice %158 {offsets = [0, 0], sizes = [32, 128], strides = [1, 1]} : vector<64x128xf32> to vector<32x128xf32>
    %170 = arith.mulf %169, %160 : vector<32x128xf32>
    %171 = arith.addf %168, %170 : vector<32x128xf32>
    %172 = math.tanh %171 : vector<32x128xf32>
    %173 = arith.mulf %166, %172 : vector<32x128xf32>
    %c6_i32 = arith.constant 6 : i32
    %174 = arith.index_cast %c6_i32 : i32 to index
    %c0_36 = arith.constant 0 : index
    %c0_37 = arith.constant 0 : index
    %175 = vector.load %arg2[%174, %c0_36, %c0_37] : memref<8x128x128xbf16, #tpu.memory_space<vmem>>, vector<1x128x128xbf16>
    %176 = vector.shape_cast %175 : vector<1x128x128xbf16> to vector<128x128xbf16>
    %177 = arith.extf %176 : vector<128x128xbf16> to vector<128x128xf32>
    %178 = arith.truncf %173 : vector<32x128xf32> to vector<32x128xbf16>
    %cst_38 = arith.constant dense<0.000000e+00> : vector<128x128xf32>
    %179 = tpu.matmul %3, %178, %cst_38 {dimension_numbers = #tpu.dot_dimension_numbers<[1], [0], [0], [1], [0, 0, 1, 1], [], []>} : vector<128x32xbf16>, vector<32x128xbf16>, vector<128x128xf32> -> vector<128x128xf32>
    %180 = arith.addf %177, %179 : vector<128x128xf32>
    %181 = vector.extract_strided_slice %180 {offsets = [0, 0], sizes = [64, 128], strides = [1, 1]} : vector<128x128xf32> to vector<64x128xf32>
    %182 = arith.negf %181 : vector<64x128xf32>
    %183 = math.exp %182 : vector<64x128xf32>
    %cst_39 = arith.constant 1.000000e+00 : f32
    %184 = vector.broadcast %cst_39 : f32 to vector<64x128xf32>
    %185 = arith.addf %184, %183 : vector<64x128xf32>
    %186 = arith.divf %184, %185 : vector<64x128xf32>
    %187 = vector.extract_strided_slice %180 {offsets = [64, 0], sizes = [32, 128], strides = [1, 1]} : vector<128x128xf32> to vector<32x128xf32>
    %188 = math.tanh %187 : vector<32x128xf32>
    %189 = vector.extract_strided_slice %180 {offsets = [96, 0], sizes = [32, 128], strides = [1, 1]} : vector<128x128xf32> to vector<32x128xf32>
    %190 = arith.negf %189 : vector<32x128xf32>
    %191 = math.exp %190 : vector<32x128xf32>
    %cst_40 = arith.constant 1.000000e+00 : f32
    %192 = vector.broadcast %cst_40 : f32 to vector<32x128xf32>
    %193 = arith.addf %192, %191 : vector<32x128xf32>
    %194 = arith.divf %192, %193 : vector<32x128xf32>
    %195 = vector.extract_strided_slice %186 {offsets = [32, 0], sizes = [32, 128], strides = [1, 1]} : vector<64x128xf32> to vector<32x128xf32>
    %196 = arith.mulf %195, %171 : vector<32x128xf32>
    %197 = vector.extract_strided_slice %186 {offsets = [0, 0], sizes = [32, 128], strides = [1, 1]} : vector<64x128xf32> to vector<32x128xf32>
    %198 = arith.mulf %197, %188 : vector<32x128xf32>
    %199 = arith.addf %196, %198 : vector<32x128xf32>
    %200 = math.tanh %199 : vector<32x128xf32>
    %201 = arith.mulf %194, %200 : vector<32x128xf32>
    %c7_i32 = arith.constant 7 : i32
    %202 = arith.index_cast %c7_i32 : i32 to index
    %c0_41 = arith.constant 0 : index
    %c0_42 = arith.constant 0 : index
    %203 = vector.load %arg2[%202, %c0_41, %c0_42] : memref<8x128x128xbf16, #tpu.memory_space<vmem>>, vector<1x128x128xbf16>
    %204 = vector.shape_cast %203 : vector<1x128x128xbf16> to vector<128x128xbf16>
    %205 = arith.extf %204 : vector<128x128xbf16> to vector<128x128xf32>
    %206 = arith.truncf %201 : vector<32x128xf32> to vector<32x128xbf16>
    %cst_43 = arith.constant dense<0.000000e+00> : vector<128x128xf32>
    %207 = tpu.matmul %3, %206, %cst_43 {dimension_numbers = #tpu.dot_dimension_numbers<[1], [0], [0], [1], [0, 0, 1, 1], [], []>} : vector<128x32xbf16>, vector<32x128xbf16>, vector<128x128xf32> -> vector<128x128xf32>
    %208 = arith.addf %205, %207 : vector<128x128xf32>
    %209 = vector.extract_strided_slice %208 {offsets = [0, 0], sizes = [64, 128], strides = [1, 1]} : vector<128x128xf32> to vector<64x128xf32>
    %210 = arith.negf %209 : vector<64x128xf32>
    %211 = math.exp %210 : vector<64x128xf32>
    %cst_44 = arith.constant 1.000000e+00 : f32
    %212 = vector.broadcast %cst_44 : f32 to vector<64x128xf32>
    %213 = arith.addf %212, %211 : vector<64x128xf32>
    %214 = arith.divf %212, %213 : vector<64x128xf32>
    %215 = vector.extract_strided_slice %208 {offsets = [64, 0], sizes = [32, 128], strides = [1, 1]} : vector<128x128xf32> to vector<32x128xf32>
    %216 = math.tanh %215 : vector<32x128xf32>
    %217 = vector.extract_strided_slice %208 {offsets = [96, 0], sizes = [32, 128], strides = [1, 1]} : vector<128x128xf32> to vector<32x128xf32>
    %218 = arith.negf %217 : vector<32x128xf32>
    %219 = math.exp %218 : vector<32x128xf32>
    %cst_45 = arith.constant 1.000000e+00 : f32
    %220 = vector.broadcast %cst_45 : f32 to vector<32x128xf32>
    %221 = arith.addf %220, %219 : vector<32x128xf32>
    %222 = arith.divf %220, %221 : vector<32x128xf32>
    %223 = vector.extract_strided_slice %214 {offsets = [32, 0], sizes = [32, 128], strides = [1, 1]} : vector<64x128xf32> to vector<32x128xf32>
    %224 = arith.mulf %223, %199 : vector<32x128xf32>
    %225 = vector.extract_strided_slice %214 {offsets = [0, 0], sizes = [32, 128], strides = [1, 1]} : vector<64x128xf32> to vector<32x128xf32>
    %226 = arith.mulf %225, %216 : vector<32x128xf32>
    %227 = arith.addf %224, %226 : vector<32x128xf32>
    %228 = math.tanh %227 : vector<32x128xf32>
    %229 = arith.mulf %222, %228 : vector<32x128xf32>
    %c8_i32 = arith.constant 8 : i32
    %c0_46 = arith.constant 0 : index
    %c0_47 = arith.constant 0 : index
    %230 = vector.load %arg9[%c0_46, %c0_47] : memref<32x128xf32, #tpu.memory_space<vmem>>, vector<32x128xf32>
    tpu.vector_store %arg9[%c0_46, %c0_47], %229 {strides = array<i32>} : memref<32x128xf32, #tpu.memory_space<vmem>>, vector<32x128xf32>,
    %c0_48 = arith.constant 0 : index
    %c0_49 = arith.constant 0 : index
    %231 = vector.load %arg10[%c0_48, %c0_49] : memref<32x128xf32, #tpu.memory_space<vmem>>, vector<32x128xf32>
    tpu.vector_store %arg10[%c0_48, %c0_49], %227 {strides = array<i32>} : memref<32x128xf32, #tpu.memory_space<vmem>>, vector<32x128xf32>,
    %c0_i32_50 = arith.constant 0 : i32
    %232 = arith.cmpi eq, %arg1, %c0_i32_50 : i32
    %233 = arith.extui %232 : i1 to i32
    %c0_i32_51 = arith.constant 0 : i32
    %234 = arith.cmpi ne, %233, %c0_i32_51 : i32
    scf.if %234 {
      %235 = arith.truncf %229 : vector<32x128xf32> to vector<32x128xbf16>
      %c0_52 = arith.constant 0 : index
      %c0_53 = arith.constant 0 : index
      %236 = vector.load %arg4[%c0_52, %c0_53] : memref<128x32xbf16, #tpu.memory_space<vmem>>, vector<128x32xbf16>
      %cst_54 = arith.constant dense<0.000000e+00> : vector<128x128xf32>
      %237 = tpu.matmul %236, %235, %cst_54 {dimension_numbers = #tpu.dot_dimension_numbers<[1], [0], [0], [1], [0, 0, 1, 1], [], []>} : vector<128x32xbf16>, vector<32x128xbf16>, vector<128x128xf32> -> vector<128x128xf32>
      %c0_55 = arith.constant 0 : index
      %c0_56 = arith.constant 0 : index
      %238 = vector.load %arg5[%c0_55, %c0_56] : memref<128x1xf32, #tpu.memory_space<vmem>>, vector<128x1xf32>
      %239 = vector.broadcast %238 : vector<128x1xf32> to vector<128x128xf32>
      %240 = arith.addf %237, %239 : vector<128x128xf32>
      %cst_57 = arith.constant 0.000000e+00 : f32
      %241 = vector.broadcast %cst_57 : f32 to vector<128x128xf32>
      %242 = arith.maximumf %240, %241 : vector<128x128xf32>
      %c0_58 = arith.constant 0 : index
      %c0_59 = arith.constant 0 : index
      %243 = vector.load %arg6[%c0_58, %c0_59] : memref<8x128xbf16, #tpu.memory_space<vmem>>, vector<8x128xbf16>
      %244 = arith.truncf %242 : vector<128x128xf32> to vector<128x128xbf16>
      %cst_60 = arith.constant dense<0.000000e+00> : vector<8x128xf32>
      %245 = tpu.matmul %243, %244, %cst_60 {dimension_numbers = #tpu.dot_dimension_numbers<[1], [0], [0], [1], [0, 0, 1, 1], [], []>} : vector<8x128xbf16>, vector<128x128xbf16>, vector<8x128xf32> -> vector<8x128xf32>
      %c0_61 = arith.constant 0 : index
      %c0_62 = arith.constant 0 : index
      %246 = vector.load %arg7[%c0_61, %c0_62] : memref<8x1xf32, #tpu.memory_space<vmem>>, vector<8x1xf32>
      %247 = vector.broadcast %246 : vector<8x1xf32> to vector<8x128xf32>
      %248 = arith.addf %245, %247 : vector<8x128xf32>
      %c0_63 = arith.constant 0 : index
      %c0_64 = arith.constant 0 : index
      %249 = vector.load %arg8[%c0_63, %c0_64] : memref<8x128xf32, #tpu.memory_space<vmem>>, vector<8x128xf32>
      tpu.vector_store %arg8[%c0_63, %c0_64], %248 {strides = array<i32>} : memref<8x128xf32, #tpu.memory_space<vmem>>, vector<8x128xf32>,
    } else {
    }
    return
  }
  func.func @transform_0(%arg0: i32, %arg1: i32) -> (i32, i32, i32) {
    %c0_i32 = arith.constant 0 : i32
    %c0_i32_0 = arith.constant 0 : i32
    return %arg1, %c0_i32, %arg0 : i32, i32, i32
  }
  func.func @transform_1(%arg0: i32, %arg1: i32) -> (i32, i32) {
    %c0_i32 = arith.constant 0 : i32
    %c0_i32_0 = arith.constant 0 : i32
    %c0_i32_1 = arith.constant 0 : i32
    return %c0_i32, %c0_i32_0 : i32, i32
  }
  func.func @transform_2(%arg0: i32, %arg1: i32) -> (i32, i32) {
    %c0_i32 = arith.constant 0 : i32
    %c0_i32_0 = arith.constant 0 : i32
    %c0_i32_1 = arith.constant 0 : i32
    return %c0_i32, %c0_i32_0 : i32, i32
  }
  func.func @transform_3(%arg0: i32, %arg1: i32) -> (i32, i32) {
    %c0_i32 = arith.constant 0 : i32
    %c0_i32_0 = arith.constant 0 : i32
    %c0_i32_1 = arith.constant 0 : i32
    return %c0_i32, %c0_i32_0 : i32, i32
  }
  func.func @transform_4(%arg0: i32, %arg1: i32) -> (i32, i32) {
    %c0_i32 = arith.constant 0 : i32
    %c0_i32_0 = arith.constant 0 : i32
    %c0_i32_1 = arith.constant 0 : i32
    return %c0_i32, %c0_i32_0 : i32, i32
  }
  func.func @transform_5(%arg0: i32, %arg1: i32) -> (i32, i32) {
    %c0_i32 = arith.constant 0 : i32
    %c0_i32_0 = arith.constant 0 : i32
    %c0_i32_1 = arith.constant 0 : i32
    return %c0_i32, %c0_i32_0 : i32, i32
  }
  func.func @transform_6(%arg0: i32, %arg1: i32) -> (i32, i32) {
    %c0_i32 = arith.constant 0 : i32
    %c0_i32_0 = arith.constant 0 : i32
    return %c0_i32, %arg0 : i32, i32
  }
}

</mosaic_0001>

<bundles_post_ra>
// kernel: tpu_custom_call.1
= control target key start
LH: loop header
LB: loop body
LE: loop exit
PB: predicated region body
PF: predicated region fallthrough
CT: control target
= control target key end

     0   :  { %11 = vsyncpa [#allocation5], 0  ;;  %s6831_s0 = inlined_call_operand.hbm [shape: bf16[8,128,128], index: 0, kind: input, shape index: {}]   ;;  %s6832_s1 = inlined_call_operand.vmem [shape: bf16[128,32], index: 1, kind: input, shape index: {}]   ;;  %s6833_s2 = inlined_call_operand.vmem [shape: bf16[128,32], index: 2, kind: input, shape index: {}]   ;;  %s6834_s3 = inlined_call_operand.vmem [shape: f32[128,1], index: 3, kind: input, shape index: {}]   ;;  %s6835_s4 = inlined_call_operand.vmem [shape: bf16[8,128], index: 4, kind: input, shape index: {}]   ;;  %s6836_s5 = inlined_call_operand.vmem [shape: f32[8,1], index: 5, kind: input, shape index: {}]   ;;  %s6837_s6 = inlined_call_operand.hbm [shape: f32[8,128], index: 6, kind: output, shape index: {}]  }
   0x1   :  { %12 = vsyncpa [#allocation6], 0  ;;  %s17_s23 = sshll.u32 %s6831_s0, 4  ;;  %s4416_s24 = smov [#allocation4]   ;;  %s18_s23 = int_to_ptr.hbm [resolvable:$true] %s17_s23 }
   0x2   :  { %s19_s25 = sshll.u32 %s4416_s24, 4  ;;  %s4417_s26 = smov 64   ;;  %s20_s25 = int_to_ptr.vmem [resolvable:$true] %s19_s25 }
   0x3   :  { %s4418_s27 = smov 4  }
   0x4   :  { %25 = dma.hbm_to_vmem [thread:$0]  %s18_s23, 8192, %s20_s25, [#allocation5], %s4417_s26, %s4417_s26, %s4418_s27  }
   0x5   :  { %4412 = dma.done.wait [#allocation5], 8192  }
   0x6   :  { %4413 = vsyncadd [#allocation5], 4294959104  ;;  %v4419_v0 = vmov 0.0|0.0   ;;  %vm151_vm0 = vcmask 261120   ;;  %v4463_v1 = vld [vmem:[%s6832_s1] sm:$0xff]  ;;  %v4468_v2 = vld [vmem:[%s6832_s1 + $0x18] sm:$0xff] }
   0x7   :  { %183 = vmatpush.bf16.msra.mxu0 %v4419_v0  ;;  %3817 = vmatpush.bf16.msra.mxu2 %v4419_v0  ;;  %v4473_v3 = vld [vmem:[%s6832_s1 + $0x30] sm:$0xff]  ;;  %v4484_v4 = vld [vmem:[%s6832_s1 + $0x8] sm:$0xff]  ;;  %v4489_v5 = vld [vmem:[%s6832_s1 + $0x20] sm:$0xff]  ;;  %s4421_s14 = smov [#allocation7]   ;;  %s3247_s17 = sshll.u32 %s6837_s6, 4  ;;  %s3248_s17 = int_to_ptr.hbm [resolvable:$true] %s3247_s17 }
   0x8   :  { %3818 = vmatpush.bf16.msra.mxu3 %v4419_v0  ;;  %v4494_v6 = vld [vmem:[%s6832_s1 + $0x38] sm:$0xff]  ;;  %v4505_v7 = vld [vmem:[%s6832_s1 + $0x10] sm:$0xff]  ;;  %v4510_v8 = vld [vmem:[%s6832_s1 + $0x28] sm:$0xff]  ;;  %s3245_s15 = sshll.u32 %s4421_s14, 4  ;;  %s3246_s15 = int_to_ptr.vmem [resolvable:$true] %s3245_s15 }
   0x9   :  { %v3506_v9 = vld [vmem:[#allocation4] sm:$0xff]   ;;  %v3763_v12 = vld [vmem:[#allocation4 + $0x18] sm:$0xff]   ;;  %v3766_v16 = vld [vmem:[#allocation4 + $0x30] sm:$0xff]  }
   0xa   :  { %3289 = vmatmul.msk.bf16.vlgmr.msra.gmra.mxu0 %vm151_vm0, %v4463_v1  ;;  %3292 = vmatmul.msk.bf16.vlgmr.msra.gmra.mxu2 %vm151_vm0, %v4468_v2  ;;  %v3507_v10 = vunpack.c.l.bf16 %v3506_v9  ;;  %v3519_v15 = vunpack.c.l.bf16 %v3763_v12  ;;  %v3508_v17 = vunpack.c.h.bf16 %v3506_v9  ;;  %v3531_v21 = vunpack.c.l.bf16 %v3766_v16  ;;  %v3761_v25 = vld [vmem:[#allocation4 + $0x8] sm:$0xff]   ;;  %v3767_v40 = vld [vmem:[#allocation4 + $0x38] sm:$0xff]   ;;  %v4530_v59 = vld [vmem:[#allocation4 + $0x20] sm:$0xff]  }
   0xb   :  { %3295 = vmatmul.msk.bf16.vlgmr.msra.gmra.mxu3 %vm151_vm0, %v4473_v3  ;;  %v3520_v28 = vunpack.c.h.bf16 %v3763_v12  ;;  %v3511_v31 = vunpack.c.l.bf16 %v3761_v25  ;;  %v3532_v44 = vunpack.c.h.bf16 %v3766_v16  ;;  %v3535_v46 = vunpack.c.l.bf16 %v3767_v40  ;;  %v4532_v61 = vld [vmem:[#allocation4 + $0x10] sm:$0xff]   ;;  %v4539_v12 = vld [vmem:[#allocation4 + $0x28] sm:$0xff]  }
   0xc   :  { %v3512_v47 = vunpack.c.h.bf16 %v3761_v25  ;;  %v3516_v25 = vunpack.c.h.bf16 %v4532_v61 }
  0x1a   :  { %3290 = vmatmul.msk.bf16.gmra.mxu0 %vm151_vm0, %v4484_v4  ;;  %3293 = vmatmul.msk.bf16.gmra.mxu2 %vm151_vm0, %v4489_v5 }
  0x1b   :  { %3296 = vmatmul.msk.bf16.gmra.mxu3 %vm151_vm0, %v4494_v6 }
  0x2a   :  { %3291 = vmatmul.msk.bf16.gmra.mxu0 %vm151_vm0, %v4505_v7  ;;  %3294 = vmatmul.msk.bf16.gmra.mxu2 %vm151_vm0, %v4510_v8 }
  0x87   :  { %v185_v11 = vpop.f32.mrf.mxu0 }
  0x88   :  { %v225_v13 = vadd.f32 %v3507_v10, %v185_v11  ;;  %v3536_v11 = vunpack.c.h.bf16 %v3767_v40 }
  0x8a   :  { %v3297_v14 = vmul.f32 -1.442695, %v225_v13  ;;  %v3523_v13 = vunpack.c.l.bf16 %v4530_v59 }
  0x8c   :  { %3828 = vpow2.f32 %v3297_v14 }
  0x8d   :  { %v200_v18 = vpop.f32.mrf.mxu2 }
  0x8e   :  { %v231_v19 = vadd.f32 %v3519_v15, %v200_v18  ;;  %v215_v20 = vpop.f32.mrf.mxu3  ;;  %v3515_v15 = vunpack.c.l.bf16 %v4532_v61 }
  0x8f   :  { %v187_v22 = vpop.f32.mrf.mxu0  ;;  %v237_v30 = vadd.f32 %v3531_v21, %v215_v20 }
  0x90   :  { %v3303_v23 = vmul.f32 -1.442695, %v231_v19  ;;  %v226_v24 = vadd.f32 %v3508_v17, %v187_v22  ;;  %v3524_v19 = vunpack.c.h.bf16 %v4530_v59 }
  0x91   :  { %v3305_v35 = vmul.f32 -1.442695, %v237_v30 }
  0x92   :  { %v3829_v26 = vpop.eup %3828  ;;  %3830 = vpow2.f32 %v3303_v23  ;;  %v3298_v27 = vmul.f32 -1.442695, %v226_v24  ;;  %v3527_v24 = vunpack.c.l.bf16 %v4539_v12 }
  0x93   :  { %v4516_v29 = vadd.f32 1.0, %v3829_v26 }
  0x94   :  { %3832 = vpow2.f32 %v3298_v27 }
  0x95   :  { %3834 = vrcp.f32 %v4516_v29  ;;  %v202_v32 = vpop.f32.mrf.mxu2  ;;  %v284_v10 = vand.u32 2147483648, %v4516_v29  ;;  %v282_v14 = vand.u32 2147483647, %v4516_v29  ;;  %vm278_vm1 = vweird.f32 %v4516_v29 }
  0x96   :  { %v232_v33 = vadd.f32 %v3520_v28, %v202_v32  ;;  %v217_v34 = vpop.f32.mrf.mxu3 }
  0x97   :  { %v190_v36 = vpop.f32.mrf.mxu0  ;;  %v238_v52 = vadd.f32 %v3532_v44, %v217_v34  ;;  %v285_v26 = vor.u32 1.1754944e-38, %v284_v10  ;;  %vm4561_vm2 = vcmp.eq.f32.partialorder %v282_v14, 8.507059e+37  ;;  %v3528_v34 = vunpack.c.h.bf16 %v4539_v12 }
  0x98   :  { %v3831_v37 = vpop.eup %3830  ;;  %v3304_v38 = vmul.f32 -1.442695, %v232_v33  ;;  %v227_v39 = vadd.f32 %v3511_v31, %v190_v36 }
  0x99   :  { %v4519_v41 = vadd.f32 1.0, %v3831_v37  ;;  %v3306_v9 = vmul.f32 -1.442695, %v238_v52 }
  0x9a   :  { %v3833_v42 = vpop.eup %3832  ;;  %3836 = vpow2.f32 %v3304_v38  ;;  %v3299_v45 = vmul.f32 -1.442695, %v227_v39 }
  0x9b   :  { %v4521_v43 = vpop.eup %3834  ;;  %3838 = vpow2.f32 %v3305_v35  ;;  %v4526_v50 = vadd.f32 1.0, %v3833_v42  ;;  %v374_v31 = vand.u32 2147483648, %v4519_v41  ;;  %vm368_vm3 = vweird.f32 %v4519_v41 }
  0x9c   :  { %3840 = vrcp.f32 %v4519_v41  ;;  %v274_v49 = vmul.f32 %v4521_v43, %v4516_v29  ;;  %vm279_vm4 = vweird.f32 %v4521_v43  ;;  %v372_v44 = vand.u32 2147483647, %v4519_v41 }
  0x9d   :  { %v205_v48 = vpop.f32.mrf.mxu2  ;;  %3842 = vpow2.f32 %v3299_v45  ;;  %vm4592_vm5 = vmor %vm278_vm1, %vm279_vm4 }
  0x9e   :  { %v220_v51 = vpop.f32.mrf.mxu3  ;;  %v275_v63 = vsub.f32 1.0, %v274_v49  ;;  %3844 = vrcp.f32 %v4526_v50  ;;  %v299_v49 = vand.u32 2147483648, %v4526_v50  ;;  %vm4608_vm7 = vcmp.eq.f32.partialorder %v372_v44, 8.507059e+37 }
  0x9f   :  { %v239_v53 = vadd.f32 %v3535_v46, %v220_v51  ;;  %v192_v54 = vpop.f32.mrf.mxu0  ;;  %v233_v46 = vadd.f32 %v3523_v13, %v205_v48  ;;  %v4578_v51 = vor.u32 1.1754944e-38, %v374_v31 }
  0xa0   :  { %v3837_v55 = vpop.eup %3836  ;;  %v228_v56 = vadd.f32 %v3512_v47, %v192_v54  ;;  %v276_v22 = vmul.f32 %v4521_v43, %v275_v63 }
  0xa1   :  { %v3839_v57 = vpop.eup %3838  ;;  %v4528_v58 = vadd.f32 1.0, %v3837_v55  ;;  %v3307_v60 = vmul.f32 -1.442695, %v239_v53 }
  0xa2   :  { %v4534_v62 = vpop.eup %3840  ;;  %v3300_v0 = vmul.f32 -1.442695, %v228_v56  ;;  %v4546_v18 = vadd.f32 1.0, %v3839_v57  ;;  %v277_v40 = vadd.f32 %v4521_v43, %v276_v22  ;;  %v297_v57 = vand.u32 2147483647, %v4526_v50 }
  0xa3   :  { %3846 = vrcp.f32 %v4528_v58  ;;  %v3843_v16 = vpop.eup %3842  ;;  %v364_v17 = vmul.f32 %v4534_v62, %v4519_v41  ;;  %v389_v52 = vand.u32 2147483648, %v4528_v58  ;;  %vm369_vm6 = vweird.f32 %v4534_v62 }
  0xa4   :  { %3848 = vpow2.f32 %v3307_v60  ;;  %v4551_v21 = vadd.f32 1.0, %v3843_v16  ;;  %v4557_v30 = vpop.eup %3844  ;;  %vm383_vm8 = vweird.f32 %v4528_v58  ;;  %vm4644_vm11 = vmor %vm368_vm3, %vm369_vm6 }
  0xa5   :  { %3850 = vpow2.f32 %v3300_v0  ;;  %v4549_v20 = vpop.f32.mrf.mxu2  ;;  %v365_v36 = vsub.f32 1.0, %v364_v17  ;;  %v4586_v56 = vmul.f32 %v4557_v30, %v4526_v50  ;;  %v281_v0 = vsel %vm4592_vm5, %v4521_v43, %v277_v40 }
  0xa6   :  { %v222_v23 = vpop.f32.mrf.mxu3  ;;  %3852 = vpow2.f32 %v3306_v9  ;;  %v4613_v43 = vor.u32 1.1754944e-38, %v389_v52  ;;  %v387_v17 = vand.u32 2147483647, %v4528_v58  ;;  %v312_v40 = vand.u32 2147483647, %v4551_v21 }
  0xa7   :  { %v240_v27 = vadd.f32 %v3536_v11, %v222_v23  ;;  %v195_v28 = vpop.f32.mrf.mxu0  ;;  %3854 = vrcp.f32 %v4551_v21  ;;  %v366_v55 = vmul.f32 %v4534_v62, %v365_v36  ;;  %v4605_v11 = vor.u32 1.1754944e-38, %v299_v49 }
  0xa8   :  { %v229_v33 = vadd.f32 %v3515_v15, %v195_v28  ;;  %3856 = vrcp.f32 %v4546_v18  ;;  %v290_v23 = vsub.f32 1.0, %v4586_v56  ;;  %v314_v32 = vand.u32 2147483648, %v4551_v21 }
  0xa9   :  { %v4566_v35 = vpop.eup %3846  ;;  %v3308_v37 = vmul.f32 -1.442695, %v240_v27  ;;  %v4621_v27 = vsel %vm4561_vm2, %v285_v26, %v281_v0  ;;  %v367_v28 = vadd.f32 %v4534_v62, %v366_v55  ;;  %vm308_vm9 = vweird.f32 %v4551_v21 }
  0xaa   :  { %v3849_v38 = vpop.eup %3848  ;;  %v379_v39 = vmul.f32 %v4566_v35, %v4528_v58  ;;  %v3301_v42 = vmul.f32 -1.442695, %v229_v33  ;;  %vm384_vm12 = vweird.f32 %v4566_v35  ;;  %vm313_vm14 = vcmp.eq.f32.partialorder %v312_v40, 8.507059e+37 }
  0xab   :  { %v3851_v45 = vpop.eup %3850  ;;  %v4575_v47 = vadd.f32 1.0, %v3849_v38  ;;  %3858 = vpow2.f32 %v3308_v37  ;;  %v371_v59 = vsel %vm4644_vm11, %v4534_v62, %v367_v28  ;;  %v315_v52 = vor.u32 1.1754944e-38, %v314_v32  ;;  %vm4670_vm1 = vmor %vm383_vm8, %vm384_vm12 }
  0xac   :  { %v4581_v53 = vadd.f32 1.0, %v3851_v45  ;;  %3860 = vpow2.f32 %v3301_v42  ;;  %v3853_v54 = vpop.eup %3852  ;;  %v380_v63 = vsub.f32 1.0, %v379_v39  ;;  %v4636_v42 = vadd.f32 %v3524_v19, %v4549_v20 }
  0xad   :  { %3862 = vrcp.f32 %v4575_v47  ;;  %v210_v60 = vpop.f32.mrf.mxu2  ;;  %v3855_v61 = vpop.eup %3854  ;;  %v4615_v15 = vadd.f32 1.0, %v3853_v54  ;;  %v376_v62 = vsel %vm4608_vm7, %v4578_v51, %v371_v59  ;;  %v291_v51 = vmul.f32 %v4557_v30, %v290_v23 }
  0xae   :  { %3864 = vrcp.f32 %v4581_v53  ;;  %v235_v9 = vadd.f32 %v3527_v24, %v210_v60  ;;  %v4602_v10 = vpop.eup %3856  ;;  %v304_v29 = vmul.f32 %v3855_v61, %v4551_v21  ;;  %v381_v33 = vmul.f32 %v4566_v35, %v380_v63 }
  0xaf   :  { %3866 = vtanh.f32 %v233_v46  ;;  %v197_v14 = vpop.f32.mrf.mxu0  ;;  %vm309_vm10 = vweird.f32 %v3855_v61  ;;  %v329_v48 = vand.u32 2147483648, %v4581_v53  ;;  %v327_v60 = vand.u32 2147483647, %v4581_v53 }
  0xb0   :  { %v230_v16 = vadd.f32 %v3516_v25, %v197_v14  ;;  %v305_v24 = vsub.f32 1.0, %v304_v29  ;;  %3868 = vtanh.f32 %v235_v9  ;;  %v382_v21 = vadd.f32 %v4566_v35, %v381_v33  ;;  %vm310_vm13 = vmor %vm308_vm9, %vm309_vm10 }
  0xb1   :  { %v3859_v22 = vpop.eup %3858  ;;  %vm323_vm2 = vweird.f32 %v4581_v53  ;;  %v330_v23 = vor.u32 1.1754944e-38, %v329_v48  ;;  %vm388_vm4 = vcmp.eq.f32.partialorder %v387_v17, 8.507059e+37  ;;  %vm328_vm5 = vcmp.eq.f32.partialorder %v327_v60, 8.507059e+37 }
  0xb2   :  { %v3861_v31 = vpop.eup %3860  ;;  %v4625_v36 = vadd.f32 1.0, %v3859_v22  ;;  %v3302_v37 = vmul.f32 -1.442695, %v230_v16  ;;  %v306_v39 = vmul.f32 %v3855_v61, %v305_v24  ;;  %v386_v0 = vsel %vm4670_vm1, %v4566_v35, %v382_v21 }
  0xb3   :  { %v4627_v25 = vpop.eup %3862  ;;  %v4629_v38 = vadd.f32 1.0, %v3861_v31  ;;  %v475_v24 = vmul.f32 0.0, %v376_v62  ;;  %vm294_vm6 = vweird.f32 %v4557_v30  ;;  %v4691_v40 = vadd.f32 %v4557_v30, %v291_v51 }
  0xb4   :  { %v3865_v26 = vpop.eup %3864  ;;  %3870 = vrcp.f32 %v4625_v36  ;;  %v307_v20 = vadd.f32 %v3855_v61, %v306_v39  ;;  %v444_v54 = vmul.f32 %v4627_v25, %v4575_v47  ;;  %v391_v39 = vsel %vm388_vm4, %v4613_v43, %v386_v0 }
  0xb5   :  { %v4648_v45 = vpop.eup %3866  ;;  %v319_v46 = vmul.f32 %v3865_v26, %v4581_v53  ;;  %3872 = vrcp.f32 %v4629_v38  ;;  %v212_v19 = vpop.f32.mrf.mxu2  ;;  %vm324_vm15 = vweird.f32 %v3865_v26  ;;  %vm293_vm7 = vweird.f32 %v4526_v50 }
  0xb6   :  { %3874 = vpow2.f32 %v3302_v37  ;;  %v236_v41 = vadd.f32 %v3528_v34, %v212_v19  ;;  %v3869_v55 = vpop.eup %3868  ;;  %v311_v56 = vsel %vm310_vm13, %v3855_v61, %v307_v20  ;;  %v445_v58 = vsub.f32 1.0, %v444_v54  ;;  %vm325_vm3 = vmor %vm323_vm2, %vm324_vm15 }
  0xb7   :  { %v320_v49 = vsub.f32 1.0, %v319_v46  ;;  %v316_v12 = vsel %vm313_vm14, %v315_v52, %v311_v56  ;;  %v344_v43 = vand.u32 2147483648, %v4629_v38  ;;  %vm448_vm9 = vweird.f32 %v4575_v47  ;;  %vm4756_vm4 = vmor %vm293_vm7, %vm294_vm6 }
  0xb8   :  { %3876 = vtanh.f32 %v236_v41  ;;  %v479_v29 = vmul.f32 %v3869_v55, %v316_v12  ;;  %v446_v17 = vmul.f32 %v4627_v25, %v445_v58  ;;  %vm449_vm10 = vweird.f32 %v4627_v25 }
  0xb9   :  { %v321_v34 = vmul.f32 %v3865_v26, %v320_v49  ;;  %3878 = vrcp.f32 %v4615_v15  ;;  %v476_v19 = vmul.f32 0.0, %v391_v39  ;;  %vm338_vm11 = vweird.f32 %v4629_v38  ;;  %vm4731_vm1 = vmor %vm448_vm9, %vm449_vm10 }
  0xba   :  { %v4674_v61 = vpop.eup %3870  ;;  %v4694_v32 = vadd.f32 %v479_v29, %v475_v24  ;;  %v342_v41 = vand.u32 2147483647, %v4629_v38  ;;  %v452_v21 = vand.u32 2147483647, %v4575_v47  ;;  %v454_v52 = vand.u32 2147483648, %v4575_v47 }
  0xbb   :  { %v3873_v9 = vpop.eup %3872  ;;  %v322_v13 = vadd.f32 %v3865_v26, %v321_v34  ;;  %v459_v14 = vmul.f32 %v4674_v61, %v4625_v36  ;;  %vm463_vm13 = vweird.f32 %v4625_v36  ;;  %vm4718_vm14 = vcmp.eq.f32.partialorder %v297_v57, 8.507059e+37 }
  0xbc   :  { %v3875_v16 = vpop.eup %3874  ;;  %v334_v22 = vmul.f32 %v3873_v9, %v4629_v38  ;;  %vm339_vm8 = vweird.f32 %v3873_v9  ;;  %v447_v38 = vadd.f32 %v4627_v25, %v446_v17  ;;  %vm464_vm15 = vweird.f32 %v4674_v61 }
  0xbd   :  { %v4686_v53 = vadd.f32 1.0, %v3875_v16  ;;  %v326_v28 = vsel %vm325_vm3, %v3865_v26, %v322_v13  ;;  %v460_v35 = vsub.f32 1.0, %v459_v14  ;;  %vm4707_vm12 = vmor %vm338_vm11, %vm339_vm8  ;;  %v345_v12 = vor.u32 1.1754944e-38, %v344_v43 }
  0xbe   :  { %v3877_v31 = vpop.eup %3876  ;;  %v335_v33 = vsub.f32 1.0, %v334_v22  ;;  %v331_v37 = vsel %vm328_vm5, %v330_v23, %v326_v28  ;;  %v467_v34 = vand.u32 2147483647, %v4625_v36  ;;  %v469_v60 = vand.u32 2147483648, %v4625_v36  ;;  %vm4744_vm3 = vmor %vm463_vm13, %vm464_vm15 }
  0xbf   :  { %3880 = vrcp.f32 %v4686_v53  ;;  %v4698_v26 = vpop.eup %3878  ;;  %v480_v46 = vmul.f32 %v3877_v31, %v331_v37  ;;  %v461_v59 = vmul.f32 %v4674_v61, %v460_v35  ;;  %v477_v63 = vmul.f32 %v4648_v45, %v4621_v27 }
  0xc0   :  { %v336_v44 = vmul.f32 %v3873_v9, %v335_v33  ;;  %3882 = vtanh.f32 %v4694_v32  ;;  %vm343_vm2 = vcmp.eq.f32.partialorder %v342_v41, 8.507059e+37  ;;  %v455_v0 = vor.u32 1.1754944e-38, %v454_v52 }
  0xc1   :  { %v4713_v54 = vadd.f32 %v480_v46, %v476_v19  ;;  %v462_v56 = vadd.f32 %v4674_v61, %v461_v59  ;;  %v414_v29 = vmul.f32 %v4602_v10, %v4546_v18  ;;  %v429_v13 = vmul.f32 %v4698_v26, %v4615_v15 }
  0xc2   :  { %v337_v20 = vadd.f32 %v3873_v9, %v336_v44  ;;  %vm453_vm5 = vcmp.eq.f32.partialorder %v452_v21, 8.507059e+37  ;;  %v296_v50 = vsel %vm4756_vm4, %v4557_v30, %v4691_v40  ;;  %v359_v14 = vand.u32 2147483648, %v4686_v53 }
  0xc3   :  { %3884 = vtanh.f32 %v4713_v54  ;;  %v466_v45 = vsel %vm4744_vm3, %v4674_v61, %v462_v56  ;;  %vm468_vm6 = vcmp.eq.f32.partialorder %v467_v34, 8.507059e+37  ;;  %v470_v16 = vor.u32 1.1754944e-38, %v469_v60 }
  0xc4   :  { %v341_v62 = vsel %vm4707_vm12, %v3873_v9, %v337_v20  ;;  %3886 = vtanh.f32 %v4636_v42  ;;  %v451_v42 = vsel %vm4731_vm1, %v4627_v25, %v447_v38  ;;  %v357_v24 = vand.u32 2147483647, %v4686_v53 }
  0xc5   :  { %v3881_v48 = vpop.eup %3880  ;;  %v346_v9 = vsel %vm343_vm2, %v345_v12, %v341_v62  ;;  %v456_v28 = vsel %vm453_vm5, %v455_v0, %v451_v42  ;;  %v471_v35 = vsel %vm468_vm6, %v470_v16, %v466_v45  ;;  %v415_v31 = vsub.f32 1.0, %v414_v29 }
  0xc6   :  { %v349_v51 = vmul.f32 %v3881_v48, %v4686_v53  ;;  %v3883_v58 = vpop.eup %3882  ;;  %vm354_vm7 = vweird.f32 %v3881_v48  ;;  %v473_v25 = vmul.f32 0.0, %v346_v9  ;;  %v430_v61 = vsub.f32 1.0, %v429_v13 }
  0xc7   :  { %vm353_vm8 = vweird.f32 %v4686_v53  ;;  %v491_v37 = vmul.f32 %v3883_v58, %v456_v28  ;;  %v301_v40 = vsel %vm4718_vm14, %v4605_v11, %v296_v50  ;;  %v360_v17 = vor.u32 1.1754944e-38, %v359_v14  ;;  %v4819_v28 = vld [vmem:[#allocation4 + $0x60] sm:$0xff]  }
  0xc8   :  { %v350_v36 = vsub.f32 1.0, %v349_v51  ;;  %vm355_vm9 = vmor %vm353_vm8, %vm354_vm7  ;;  %vm358_vm10 = vcmp.eq.f32.partialorder %v357_v24, 8.507059e+37  ;;  %v4776_v59 = vadd.f32 %v477_v63, %v473_v25  ;;  %v416_v19 = vmul.f32 %v4602_v10, %v415_v31 }
  0xc9   :  { %v3885_v23 = vpop.eup %3884  ;;  %v431_v20 = vmul.f32 %v4698_v26, %v430_v61  ;;  %vm418_vm11 = vweird.f32 %v4546_v18  ;;  %vm419_vm12 = vweird.f32 %v4602_v10  ;;  %v422_v11 = vand.u32 2147483647, %v4546_v18 }
  0xca   :  { %v351_v22 = vmul.f32 %v3881_v48, %v350_v36  ;;  %v3887_v33 = vpop.eup %3886  ;;  %v492_v39 = vmul.f32 %v3885_v23, %v471_v35  ;;  %v424_v21 = vand.u32 2147483648, %v4546_v18  ;;  %3888 = vtanh.f32 %v4776_v59  ;;  %vm420_vm15 = vmor %vm418_vm11, %vm419_vm12 }
  0xcb   :  { %v478_v53 = vmul.f32 %v3887_v33, %v301_v40  ;;  %v417_v52 = vadd.f32 %v4602_v10, %v416_v19  ;;  %v432_v55 = vadd.f32 %v4698_v26, %v431_v20  ;;  %vm433_vm13 = vweird.f32 %v4615_v15 }
  0xcc   :  { %v352_v30 = vadd.f32 %v3881_v48, %v351_v22  ;;  %v527_v44 = vpack.c.bf16 %v492_v39, %v491_v37  ;;  %vm434_vm14 = vweird.f32 %v4698_v26  ;;  %v439_v38 = vand.u32 2147483648, %v4615_v15 }
  0xcd   :  { %v437_v56 = vand.u32 2147483647, %v4615_v15  ;;  %v425_v18 = vor.u32 1.1754944e-38, %v424_v21  ;;  %vm435_vm1 = vmor %vm433_vm13, %vm434_vm14  ;;  %v421_v62 = vsel %vm420_vm15, %v4602_v10, %v417_v52  ;;  %vm423_vm2 = vcmp.eq.f32.partialorder %v422_v11, 8.507059e+37  ;;  %v3538_v15 = vld [vmem:[#allocation4 + $0x40] sm:$0xff]  }
  0xce   :  { %v356_v46 = vsel %vm355_vm9, %v3881_v48, %v352_v30  ;;  %534 = vmatpush.bf16.msra.mxu1 %v527_v44  ;;  %v436_v48 = vsel %vm435_vm1, %v4698_v26, %v432_v55  ;;  %v440_v57 = vor.u32 1.1754944e-38, %v439_v38  ;;  %v3555_v31 = vunpack.c.l.bf16 %v4819_v28 }
  0xcf   :  { %v361_v43 = vsel %vm358_vm10, %v360_v17, %v356_v46  ;;  %vm438_vm3 = vcmp.eq.f32.partialorder %v437_v56, 8.507059e+37  ;;  %v426_v60 = vsel %vm423_vm2, %v425_v18, %v421_v62  ;;  %v3540_v33 = vunpack.c.h.bf16 %v3538_v15  ;;  %v3768_v17 = vld [vmem:[#allocation4 + $0x48] sm:$0xff]  }
  0xd0   :  { %v474_v41 = vmul.f32 0.0, %v361_v43  ;;  %v3889_v12 = vpop.eup %3888  ;;  %v441_v63 = vsel %vm438_vm3, %v440_v57, %v436_v48 }
  0xd1   :  { %v489_v51 = vmul.f32 %v3889_v12, %v426_v60  ;;  %v3544_v12 = vunpack.c.h.bf16 %v3768_v17  ;;  %v3770_v60 = vld [vmem:[#allocation4 + $0x58] sm:$0xff]  }
  0xd2   :  { %v4784_v49 = vadd.f32 %v478_v53, %v474_v41  ;;  %v3543_v41 = vunpack.c.l.bf16 %v3768_v17 }
  0xd4   :  { %3890 = vtanh.f32 %v4784_v49 }
  0xda   :  { %v3891_v34 = vpop.eup %3890 }
  0xdb   :  { %v490_v0 = vmul.f32 %v3891_v34, %v441_v63 }
  0xdd   :  { %v526_v47 = vpack.c.bf16 %v490_v0, %v489_v51 }
  0xdf   :  { %535 = vmatpush.bf16.msra.mxu1 %v526_v47 }
  0xe2   :  { %3309 = vmatmul.msk.bf16.vlgmr.msra.gmra.mxu1 %vm151_vm0, %v4463_v1 }
  0xf2   :  { %3310 = vmatmul.msk.bf16.gmra.mxu1 %vm151_vm0, %v4484_v4 }
 0x102   :  { %3311 = vmatmul.msk.bf16.gmra.mxu1 %vm151_vm0, %v4505_v7  ;;  %v3539_v7 = vunpack.c.l.bf16 %v3538_v15 }
 0x112   :  { %3312 = vmatmul.msk.bf16.gmra.mxu1 %vm151_vm0, %v4468_v2  ;;  %v4814_v2 = vld [vmem:[#allocation4 + $0x50] sm:$0xff]  }
 0x113   :  { %v3547_v29 = vunpack.c.l.bf16 %v4814_v2  ;;  %v3548_v0 = vunpack.c.h.bf16 %v4814_v2 }
 0x122   :  { %3313 = vmatmul.msk.bf16.gmra.mxu1 %vm151_vm0, %v4489_v5 }
 0x132   :  { %3314 = vmatmul.msk.bf16.gmra.mxu1 %vm151_vm0, %v4510_v8 }
 0x142   :  { %3315 = vmatmul.msk.bf16.gmra.mxu1 %vm151_vm0, %v4473_v3 }
 0x152   :  { %3316 = vmatmul.msk.bf16.gmra.mxu1 %vm151_vm0, %v4494_v6 }
 0x15f   :  { %v537_v1 = vpop.f32.mrf.mxu1 }
 0x160   :  { %v577_v26 = vadd.f32 %v3539_v7, %v537_v1  ;;  %v3551_v1 = vunpack.c.l.bf16 %v3770_v60 }
 0x162   :  { %v3317_v5 = vmul.f32 -1.442695, %v577_v26 }
 0x164   :  { %3892 = vpow2.f32 %v3317_v5 }
 0x167   :  { %v539_v4 = vpop.f32.mrf.mxu1 }
 0x168   :  { %v578_v43 = vadd.f32 %v3540_v33, %v539_v4  ;;  %v3552_v4 = vunpack.c.h.bf16 %v3770_v60 }
 0x16a   :  { %v3893_v27 = vpop.eup %3892  ;;  %v3318_v52 = vmul.f32 -1.442695, %v578_v43  ;;  %v4863_v43 = vld [vmem:[#allocation4 + $0x78] sm:$0xff]  }
 0x16b   :  { %v617_v36 = vadd.f32 1.0, %v3893_v27 }
 0x16d   :  { %v636_v19 = vand.u32 2147483648, %v617_v36  ;;  %vm630_vm8 = vweird.f32 %v617_v36  ;;  %v634_v20 = vand.u32 2147483647, %v617_v36 }
 0x16f   :  { %v542_v10 = vpop.f32.mrf.mxu1  ;;  %v637_v55 = vor.u32 1.1754944e-38, %v636_v19  ;;  %vm635_vm11 = vcmp.eq.f32.partialorder %v634_v20, 8.507059e+37 }
 0x170   :  { %v579_v62 = vadd.f32 %v3543_v41, %v542_v10 }
 0x172   :  { %v3319_v51 = vmul.f32 -1.442695, %v579_v62  ;;  %v3772_v62 = vld [vmem:[#allocation4 + $0x68] sm:$0xff]  }
 0x177   :  { %v4812_v9 = vpop.f32.mrf.mxu1 }
 0x178   :  { %v580_v47 = vadd.f32 %v3544_v12, %v4812_v9 }
 0x17a   :  { %v3320_v26 = vmul.f32 -1.442695, %v580_v47 }
 0x17f   :  { %v547_v8 = vpop.f32.mrf.mxu1 }
 0x180   :  { %v581_v13 = vadd.f32 %v3547_v29, %v547_v8 }
 0x182   :  { %v3321_v3 = vmul.f32 -1.442695, %v581_v13 }
 0x184   :  { %3894 = vpow2.f32 %v3321_v3 }
 0x185   :  { %3896 = vrcp.f32 %v617_v36 }
 0x187   :  { %v4817_v6 = vpop.f32.mrf.mxu1 }
 0x188   :  { %v582_v10 = vadd.f32 %v3548_v0, %v4817_v6 }
 0x18a   :  { %v3895_v42 = vpop.eup %3894  ;;  %v3322_v8 = vmul.f32 -1.442695, %v582_v10  ;;  %v3559_v10 = vunpack.c.l.bf16 %v3772_v62 }
 0x18b   :  { %v621_v45 = vadd.f32 1.0, %v3895_v42  ;;  %v3897_v50 = vpop.eup %3896 }
 0x18c   :  { %v626_v22 = vmul.f32 %v3897_v50, %v617_v36  ;;  %vm631_vm6 = vweird.f32 %v3897_v50 }
 0x18d   :  { %3898 = vrcp.f32 %v621_v45  ;;  %v696_v30 = vand.u32 2147483648, %v621_v45  ;;  %vm690_vm5 = vweird.f32 %v621_v45  ;;  %v694_v46 = vand.u32 2147483647, %v621_v45  ;;  %vm632_vm9 = vmor %vm630_vm8, %vm631_vm6 }
 0x18e   :  { %v627_v23 = vsub.f32 1.0, %v626_v22 }
 0x18f   :  { %v552_v58 = vpop.f32.mrf.mxu1  ;;  %v697_v11 = vor.u32 1.1754944e-38, %v696_v30  ;;  %vm695_vm10 = vcmp.eq.f32.partialorder %v694_v46, 8.507059e+37 }
 0x190   :  { %v628_v61 = vmul.f32 %v3897_v50, %v627_v23 }
 0x192   :  { %v629_v44 = vadd.f32 %v3897_v50, %v628_v61 }
 0x193   :  { %v3899_v14 = vpop.eup %3898 }
 0x194   :  { %v686_v16 = vmul.f32 %v3899_v14, %v621_v45  ;;  %vm691_vm4 = vweird.f32 %v3899_v14  ;;  %v633_v21 = vsel %vm632_vm9, %v3897_v50, %v629_v44 }
 0x195   :  { %vm692_vm7 = vmor %vm690_vm5, %vm691_vm4  ;;  %v638_v48 = vsel %vm635_vm11, %v637_v55, %v633_v21  ;;  %v3567_v55 = vunpack.c.l.bf16 %v4863_v43 }
 0x196   :  { %v687_v24 = vsub.f32 1.0, %v686_v16 }
 0x197   :  { %v554_v25 = vpop.f32.mrf.mxu1 }
 0x198   :  { %v688_v35 = vmul.f32 %v3899_v14, %v687_v24  ;;  %v584_v5 = vadd.f32 %v3552_v4, %v554_v25 }
 0x19a   :  { %v689_v39 = vadd.f32 %v3899_v14, %v688_v35  ;;  %v3324_v2 = vmul.f32 -1.442695, %v584_v5 }
 0x19c   :  { %v693_v53 = vsel %vm692_vm7, %v3899_v14, %v689_v39 }
 0x19d   :  { %v698_v38 = vsel %vm695_vm10, %v697_v11, %v693_v53 }
 0x19e   :  { %v825_v57 = vmul.f32 %v698_v38, %v4776_v59  ;;  %v583_v59 = vadd.f32 %v3551_v1, %v552_v58  ;;  %v3773_v58 = vld [vmem:[#allocation4 + $0x70] sm:$0xff]  }
 0x19f   :  { %v557_v37 = vpop.f32.mrf.mxu1  ;;  %v3563_v25 = vunpack.c.l.bf16 %v3773_v58  ;;  %v3564_v61 = vunpack.c.h.bf16 %v3773_v58  ;;  %v3560_v58 = vunpack.c.h.bf16 %v3772_v62 }
 0x1a0   :  { %v585_v40 = vadd.f32 %v3555_v31, %v557_v37  ;;  %v3323_v13 = vmul.f32 -1.442695, %v583_v59 }
 0x1a2   :  { %3900 = vtanh.f32 %v585_v40 }
 0x1a3   :  { %3902 = vpow2.f32 %v3318_v52 }
 0x1a4   :  { %3904 = vpow2.f32 %v3319_v51  ;;  %v3556_v51 = vunpack.c.h.bf16 %v4819_v28 }
 0x1a5   :  { %3906 = vpow2.f32 %v3320_v26 }
 0x1a7   :  { %v4822_v56 = vpop.f32.mrf.mxu1 }
 0x1a8   :  { %v3901_v18 = vpop.eup %3900 }
 0x1a9   :  { %v829_v34 = vmul.f32 %v3901_v18, %v638_v48  ;;  %v3903_v7 = vpop.eup %3902 }
 0x1aa   :  { %v4832_v29 = vadd.f32 1.0, %v3903_v7  ;;  %v3905_v3 = vpop.eup %3904 }
 0x1ab   :  { %v4825_v63 = vadd.f32 %v829_v34, %v825_v57  ;;  %v4837_v27 = vadd.f32 1.0, %v3905_v3  ;;  %v3907_v6 = vpop.eup %3906 }
 0x1ac   :  { %3908 = vrcp.f32 %v4832_v29  ;;  %v4842_v45 = vadd.f32 1.0, %v3907_v6  ;;  %v649_v11 = vand.u32 2147483647, %v4832_v29  ;;  %v651_v52 = vand.u32 2147483648, %v4832_v29 }
 0x1ad   :  { %3910 = vpow2.f32 %v3322_v8  ;;  %v666_v48 = vand.u32 2147483648, %v4837_v27  ;;  %vm645_vm13 = vweird.f32 %v4832_v29  ;;  %vm660_vm1 = vweird.f32 %v4837_v27 }
 0x1ae   :  { %3912 = vpow2.f32 %v3323_v13  ;;  %vm4886_vm14 = vcmp.eq.f32.partialorder %v649_v11, 8.507059e+37  ;;  %v652_v7 = vor.u32 1.1754944e-38, %v651_v52  ;;  %v664_v28 = vand.u32 2147483647, %v4837_v27 }
 0x1af   :  { %v4829_v15 = vpop.f32.mrf.mxu1  ;;  %3914 = vpow2.f32 %v3324_v2  ;;  %v4901_v5 = vor.u32 1.1754944e-38, %v666_v48  ;;  %vm675_vm4 = vweird.f32 %v4842_v45 }
 0x1b0   :  { %3916 = vrcp.f32 %v4837_v27  ;;  %vm4934_vm5 = vcmp.eq.f32.partialorder %v664_v28, 8.507059e+37 }
 0x1b1   :  { %3918 = vrcp.f32 %v4842_v45 }
 0x1b2   :  { %v4839_v36 = vpop.eup %3908 }
 0x1b3   :  { %v3911_v42 = vpop.eup %3910  ;;  %v641_v22 = vmul.f32 %v4839_v36, %v4832_v29  ;;  %vm646_vm12 = vweird.f32 %v4839_v36 }
 0x1b4   :  { %v3913_v50 = vpop.eup %3912  ;;  %v4846_v24 = vadd.f32 1.0, %v3911_v42  ;;  %vm4892_vm15 = vmor %vm645_vm13, %vm646_vm12  ;;  %v586_v42 = vadd.f32 %v3556_v51, %v4822_v56  ;;  %v679_v56 = vand.u32 2147483647, %v4842_v45 }
 0x1b5   :  { %v3915_v16 = vpop.eup %3914  ;;  %v4849_v23 = vadd.f32 1.0, %v3913_v50  ;;  %v642_v33 = vsub.f32 1.0, %v641_v22 }
 0x1b6   :  { %v4851_v35 = vpop.eup %3916  ;;  %v4853_v31 = vadd.f32 1.0, %v3915_v16  ;;  %3920 = vrcp.f32 %v4846_v24  ;;  %v3568_v16 = vunpack.c.h.bf16 %v4863_v43  ;;  %vm705_vm7 = vweird.f32 %v4846_v24 }
 0x1b7   :  { %v4835_v9 = vpop.f32.mrf.mxu1  ;;  %v656_v39 = vmul.f32 %v4851_v35, %v4837_v27  ;;  %3922 = vrcp.f32 %v4849_v23  ;;  %v4860_v40 = vpop.eup %3918  ;;  %v643_v44 = vmul.f32 %v4839_v36, %v642_v33  ;;  %vm661_vm2 = vweird.f32 %v4851_v35 }
 0x1b8   :  { %3924 = vrcp.f32 %v4853_v31  ;;  %v671_v41 = vmul.f32 %v4860_v40, %v4842_v45  ;;  %vm4917_vm3 = vmor %vm660_vm1, %vm661_vm2  ;;  %vm676_vm6 = vweird.f32 %v4860_v40  ;;  %vm720_vm13 = vweird.f32 %v4849_v23 }
 0x1b9   :  { %v657_v19 = vsub.f32 1.0, %v656_v39  ;;  %v644_v18 = vadd.f32 %v4839_v36, %v643_v44  ;;  %vm4958_vm10 = vmor %vm675_vm4, %vm676_vm6  ;;  %vm680_vm1 = vcmp.eq.f32.partialorder %v679_v56, 8.507059e+37 }
 0x1ba   :  { %v672_v34 = vsub.f32 1.0, %v671_v41 }
 0x1bb   :  { %v658_v57 = vmul.f32 %v4851_v35, %v657_v19  ;;  %v648_v59 = vsel %vm4892_vm15, %v4839_v36, %v644_v18  ;;  %v711_v19 = vand.u32 2147483648, %v4846_v24  ;;  %v726_v18 = vand.u32 2147483648, %v4849_v23 }
 0x1bc   :  { %v4865_v53 = vpop.eup %3920  ;;  %v673_v36 = vmul.f32 %v4860_v40, %v672_v34  ;;  %v4913_v22 = vsel %vm4886_vm14, %v652_v7, %v648_v59  ;;  %v724_v34 = vand.u32 2147483647, %v4849_v23  ;;  %vm735_vm15 = vweird.f32 %v4853_v31 }
 0x1bd   :  { %v4870_v21 = vpop.eup %3922  ;;  %v701_v12 = vmul.f32 %v4865_v53, %v4846_v24  ;;  %v4904_v13 = vadd.f32 %v4851_v35, %v658_v57  ;;  %vm706_vm8 = vweird.f32 %v4865_v53 }
 0x1be   :  { %v4874_v38 = vpop.eup %3924  ;;  %v716_v60 = vmul.f32 %v4870_v21, %v4849_v23  ;;  %vm721_vm9 = vweird.f32 %v4870_v21  ;;  %vm4966_vm12 = vmor %vm705_vm7, %vm706_vm8  ;;  %v739_v23 = vand.u32 2147483647, %v4853_v31  ;;  %vm725_vm4 = vcmp.eq.f32.partialorder %v724_v34, 8.507059e+37 }
 0x1bf   :  { %v567_v14 = vpop.f32.mrf.mxu1  ;;  %v731_v1 = vmul.f32 %v4874_v38, %v4853_v31  ;;  %v702_v8 = vsub.f32 1.0, %v701_v12  ;;  %v663_v33 = vsel %vm4917_vm3, %v4851_v35, %v4904_v13  ;;  %v674_v35 = vadd.f32 %v4860_v40, %v673_v36  ;;  %vm4976_vm14 = vmor %vm720_vm13, %vm721_vm9 }
 0x1c0   :  { %v589_v37 = vadd.f32 %v3563_v25, %v567_v14  ;;  %v717_v6 = vsub.f32 1.0, %v716_v60  ;;  %v587_v14 = vadd.f32 %v3559_v10, %v4829_v15  ;;  %vm736_vm11 = vweird.f32 %v4874_v38 }
 0x1c1   :  { %v732_v50 = vsub.f32 1.0, %v731_v1  ;;  %v703_v15 = vmul.f32 %v4865_v53, %v702_v8  ;;  %v678_v0 = vsel %vm4958_vm10, %v4860_v40, %v674_v35  ;;  %v712_v1 = vor.u32 1.1754944e-38, %v711_v19  ;;  %vm4995_vm2 = vmor %vm735_vm15, %vm736_vm11 }
 0x1c2   :  { %v3325_v46 = vmul.f32 -1.442695, %v589_v37  ;;  %v681_v37 = vand.u32 2147483648, %v4842_v45  ;;  %v718_v39 = vmul.f32 %v4870_v21, %v717_v6  ;;  %v741_v45 = vand.u32 2147483648, %v4853_v31 }
 0x1c3   :  { %v727_v40 = vor.u32 1.1754944e-38, %v726_v18  ;;  %v668_v31 = vsel %vm4934_vm5, %v4901_v5, %v663_v33  ;;  %vm740_vm6 = vcmp.eq.f32.partialorder %v739_v23, 8.507059e+37 }
 0x1c4   :  { %v719_v52 = vadd.f32 %v4870_v21, %v718_v39  ;;  %v682_v7 = vor.u32 1.1754944e-38, %v681_v37 }
 0x1c6   :  { %v723_v4 = vsel %vm4976_vm14, %v4870_v21, %v719_v52  ;;  %v683_v28 = vsel %vm680_vm1, %v682_v7, %v678_v0 }
 0x1c7   :  { %v569_v30 = vpop.f32.mrf.mxu1 }
 0x1c8   :  { %v590_v17 = vadd.f32 %v3564_v61, %v569_v30 }
 0x1ca   :  { %v3326_v20 = vmul.f32 -1.442695, %v590_v17  ;;  %v588_v17 = vadd.f32 %v3560_v58, %v4835_v9  ;;  %v704_v9 = vadd.f32 %v4865_v53, %v703_v15 }
 0x1cc   :  { %3926 = vpow2.f32 %v3326_v20  ;;  %v709_v20 = vand.u32 2147483647, %v4846_v24  ;;  %v708_v24 = vsel %vm4966_vm12, %v4865_v53, %v704_v9 }
 0x1cd   :  { %3928 = vpow2.f32 %v3325_v46  ;;  %v733_v46 = vmul.f32 %v4874_v38, %v732_v50 }
 0x1ce   :  { %vm710_vm3 = vcmp.eq.f32.partialorder %v709_v20, 8.507059e+37 }
 0x1cf   :  { %v572_v47 = vpop.f32.mrf.mxu1  ;;  %v734_v48 = vadd.f32 %v4874_v38, %v733_v46  ;;  %v713_v59 = vsel %vm710_vm3, %v712_v1, %v708_v24 }
 0x1d0   :  { %v591_v26 = vadd.f32 %v3567_v55, %v572_v47  ;;  %v826_v36 = vmul.f32 %v713_v59, %v4784_v49 }
 0x1d1   :  { %v738_v21 = vsel %vm4995_vm2, %v4874_v38, %v734_v48 }
 0x1d2   :  { %v3927_v29 = vpop.eup %3926  ;;  %v3327_v3 = vmul.f32 -1.442695, %v591_v26 }
 0x1d3   :  { %v3929_v2 = vpop.eup %3928  ;;  %v4923_v61 = vadd.f32 1.0, %v3927_v29  ;;  %v742_v29 = vor.u32 1.1754944e-38, %v741_v45 }
 0x1d4   :  { %3930 = vpow2.f32 %v3327_v3  ;;  %v4931_v27 = vadd.f32 1.0, %v3929_v2  ;;  %v728_v3 = vsel %vm725_vm4, %v727_v40, %v723_v4 }
 0x1d5   :  { %3932 = vtanh.f32 %v586_v42  ;;  %v743_v5 = vsel %vm740_vm6, %v742_v29, %v738_v21  ;;  %vm785_vm8 = vweird.f32 %v4923_v61  ;;  %v791_v52 = vand.u32 2147483648, %v4923_v61 }
 0x1d6   :  { %3934 = vtanh.f32 %v587_v14  ;;  %v828_v25 = vmul.f32 %v743_v5, %v4713_v54  ;;  %vm770_vm13 = vweird.f32 %v4931_v27  ;;  %v774_v45 = vand.u32 2147483647, %v4931_v27  ;;  %v5106_v5 = vld [vmem:[%s6832_s1 + $0x28] sm:$0xff] }
 0x1d7   :  { %v574_v44 = vpop.f32.mrf.mxu1  ;;  %3936 = vrcp.f32 %v4923_v61  ;;  %v776_v34 = vand.u32 2147483648, %v4931_v27  ;;  %v792_v1 = vor.u32 1.1754944e-38, %v791_v52 }
 0x1d8   :  { %v592_v43 = vadd.f32 %v3568_v16, %v574_v44  ;;  %3938 = vrcp.f32 %v4931_v27  ;;  %v827_v16 = vmul.f32 %v728_v3, %v4694_v32  ;;  %v5071_v3 = vld [vmem:[%s6832_s1] sm:$0xff] }
 0x1d9   :  { %3940 = vtanh.f32 %v588_v17  ;;  %v777_v40 = vor.u32 1.1754944e-38, %v776_v34 }
 0x1da   :  { %v3931_v41 = vpop.eup %3930  ;;  %v3328_v11 = vmul.f32 -1.442695, %v592_v43 }
 0x1db   :  { %v4951_v55 = vadd.f32 1.0, %v3931_v41  ;;  %v3933_v12 = vpop.eup %3932 }
 0x1dc   :  { %3942 = vpow2.f32 %v3328_v11  ;;  %v3935_v60 = vpop.eup %3934  ;;  %v830_v13 = vmul.f32 %v3933_v12, %v4913_v22  ;;  %v789_v11 = vand.u32 2147483647, %v4923_v61 }
 0x1dd   :  { %3944 = vrcp.f32 %v4951_v55  ;;  %v4988_v47 = vpop.eup %3936  ;;  %v831_v42 = vmul.f32 %v3935_v60, %v668_v31  ;;  %v806_v46 = vand.u32 2147483648, %v4951_v55  ;;  %vm800_vm10 = vweird.f32 %v4951_v55 }
 0x1de   :  { %v4999_v53 = vpop.eup %3938  ;;  %v781_v2 = vmul.f32 %v4988_v47, %v4923_v61  ;;  %v5015_v22 = vadd.f32 %v830_v13, %v826_v36  ;;  %vm786_vm9 = vweird.f32 %v4988_v47  ;;  %v804_v35 = vand.u32 2147483647, %v4951_v55 }
 0x1df   :  { %v3941_v26 = vpop.eup %3940  ;;  %v766_v38 = vmul.f32 %v4999_v53, %v4931_v27  ;;  %v5018_v33 = vadd.f32 %v831_v42, %v827_v16  ;;  %vm771_vm7 = vweird.f32 %v4999_v53  ;;  %v807_v57 = vor.u32 1.1754944e-38, %v806_v46  ;;  %vm5050_vm14 = vmor %vm785_vm8, %vm786_vm9  ;;  %v5099_v42 = vld [vmem:[%s6832_s1 + $0x20] sm:$0xff] }
 0x1e0   :  { %v832_v50 = vmul.f32 %v3941_v26, %v683_v28  ;;  %v782_v15 = vsub.f32 1.0, %v781_v2  ;;  %vm805_vm15 = vcmp.eq.f32.partialorder %v804_v35, 8.507059e+37  ;;  %vm5056_vm2 = vmor %vm770_vm13, %vm771_vm7  ;;  %vm790_vm6 = vcmp.eq.f32.partialorder %v789_v11, 8.507059e+37  ;;  %v5085_v2 = vld [vmem:[%s6832_s1 + $0x10] sm:$0xff]  ;;  %v3570_v16 = vld [vmem:[#allocation4 + $0x80] sm:$0xff]  }
 0x1e1   :  { %v767_v37 = vsub.f32 1.0, %v766_v38  ;;  %v5120_v38 = vld [vmem:[%s6832_s1 + $0x38] sm:$0xff]  ;;  %v3572_v34 = vunpack.c.h.bf16 %v3570_v16 }
 0x1e2   :  { %v3943_v8 = vpop.eup %3942  ;;  %v5020_v39 = vadd.f32 %v832_v50, %v828_v25  ;;  %v783_v49 = vmul.f32 %v4988_v47, %v782_v15  ;;  %v3571_v25 = vunpack.c.l.bf16 %v3570_v16 }
 0x1e3   :  { %v3945_v6 = vpop.eup %3944  ;;  %v764_v58 = vadd.f32 1.0, %v3943_v8  ;;  %v768_v32 = vmul.f32 %v4999_v53, %v767_v37  ;;  %v5126_v37 = vld [vmem:[#allocation4 + $0x90] sm:$0xff]  }
 0x1e4   :  { %v796_v14 = vmul.f32 %v3945_v6, %v4951_v55  ;;  %vm801_vm5 = vweird.f32 %v3945_v6  ;;  %v784_v19 = vadd.f32 %v4988_v47, %v783_v49  ;;  %v3579_v49 = vunpack.c.l.bf16 %v5126_v37 }
 0x1e5   :  { %3946 = vrcp.f32 %v764_v58  ;;  %vm5034_vm11 = vmor %vm800_vm10, %vm801_vm5  ;;  %v821_v41 = vand.u32 2147483648, %v764_v58  ;;  %v769_v9 = vadd.f32 %v4999_v53, %v768_v32  ;;  %v819_v55 = vand.u32 2147483647, %v764_v58 }
 0x1e6   :  { %v797_v56 = vsub.f32 1.0, %v796_v14  ;;  %3948 = vtanh.f32 %v5015_v22  ;;  %vm815_vm1 = vweird.f32 %v764_v58  ;;  %v788_v27 = vsel %vm5050_vm14, %v4988_v47, %v784_v19 }
 0x1e7   :  { %3950 = vtanh.f32 %v5018_v33  ;;  %v822_v61 = vor.u32 1.1754944e-38, %v821_v41  ;;  %vm820_vm4 = vcmp.eq.f32.partialorder %v819_v55, 8.507059e+37  ;;  %v773_v7 = vsel %vm5056_vm2, %v4999_v53, %v769_v9  ;;  %v5078_v53 = vld [vmem:[%s6832_s1 + $0x8] sm:$0xff]  ;;  %v5131_v55 = vld [vmem:[#allocation4 + $0xa0] sm:$0xff]  }
 0x1e8   :  { %v798_v30 = vmul.f32 %v3945_v6, %v797_v56  ;;  %3952 = vtanh.f32 %v5020_v39  ;;  %v793_v31 = vsel %vm790_vm6, %v792_v1, %v788_v27  ;;  %vm775_vm5 = vcmp.eq.f32.partialorder %v774_v45, 8.507059e+37  ;;  %v3775_v27 = vld [vmem:[#allocation4 + $0x88] sm:$0xff]  }
 0x1e9   :  { %3954 = vtanh.f32 %v4825_v63  ;;  %v778_v47 = vsel %vm775_vm5, %v777_v40, %v773_v7  ;;  %v3575_v40 = vunpack.c.l.bf16 %v3775_v27 }
 0x1ea   :  { %v799_v44 = vadd.f32 %v3945_v6, %v798_v30 }
 0x1eb   :  { %v3947_v17 = vpop.eup %3946 }
 0x1ec   :  { %v811_v54 = vmul.f32 %v3947_v17, %v764_v58  ;;  %v3949_v18 = vpop.eup %3948  ;;  %v803_v62 = vsel %vm5034_vm11, %v3945_v6, %v799_v44  ;;  %vm816_vm12 = vweird.f32 %v3947_v17  ;;  %v5092_v6 = vld [vmem:[%s6832_s1 + $0x18] sm:$0xff]  ;;  %v5113_v58 = vld [vmem:[%s6832_s1 + $0x30] sm:$0xff] }
 0x1ed   :  { %v3951_v12 = vpop.eup %3950  ;;  %v808_v23 = vsel %vm805_vm15, %v807_v57, %v803_v62  ;;  %vm817_vm3 = vmor %vm815_vm1, %vm816_vm12  ;;  %v842_v28 = vmul.f32 %v3949_v18, %v793_v31  ;;  %v3587_v57 = vunpack.c.l.bf16 %v5131_v55 }
 0x1ee   :  { %v812_v43 = vsub.f32 1.0, %v811_v54  ;;  %v3953_v51 = vpop.eup %3952  ;;  %v843_v21 = vmul.f32 %v3951_v12, %v808_v23 }
 0x1ef   :  { %v3955_v29 = vpop.eup %3954 }
 0x1f0   :  { %v813_v48 = vmul.f32 %v3947_v17, %v812_v43  ;;  %v841_v8 = vmul.f32 %v3955_v29, %v778_v47 }
 0x1f2   :  { %v814_v24 = vadd.f32 %v3947_v17, %v813_v48  ;;  %v878_v13 = vpack.c.bf16 %v842_v28, %v841_v8 }
 0x1f4   :  { %v818_v4 = vsel %vm817_vm3, %v3947_v17, %v814_v24 }
 0x1f5   :  { %v823_v10 = vsel %vm820_vm4, %v822_v61, %v818_v4 }
 0x1f6   :  { %v844_v26 = vmul.f32 %v3953_v51, %v823_v10 }
 0x1f8   :  { %v879_v59 = vpack.c.bf16 %v844_v26, %v843_v21 }
 0x1fa   :  { %886 = vmatpush.bf16.msrb.mxu2 %v879_v59 }
 0x1fe   :  { %887 = vmatpush.bf16.msrb.mxu2 %v878_v13 }
 0x201   :  { %3329 = vmatmul.msk.bf16.vlgmr.msrb.gmra.mxu2 %vm151_vm0, %v5071_v3 }
 0x211   :  { %3330 = vmatmul.msk.bf16.gmra.mxu2 %vm151_vm0, %v5078_v53 }
 0x221   :  { %3331 = vmatmul.msk.bf16.gmra.mxu2 %vm151_vm0, %v5085_v2 }
 0x231   :  { %3332 = vmatmul.msk.bf16.gmra.mxu2 %vm151_vm0, %v5092_v6 }
 0x241   :  { %3333 = vmatmul.msk.bf16.gmra.mxu2 %vm151_vm0, %v5099_v42 }
 0x251   :  { %3334 = vmatmul.msk.bf16.gmra.mxu2 %vm151_vm0, %v5106_v5 }
 0x261   :  { %3335 = vmatmul.msk.bf16.gmra.mxu2 %vm151_vm0, %v5113_v58 }
 0x271   :  { %3336 = vmatmul.msk.bf16.gmra.mxu2 %vm151_vm0, %v5120_v38 }
 0x284   :  { %v889_v36 = vpop.f32.mrf.mxu2 }
 0x285   :  { %v929_v56 = vadd.f32 %v3571_v25, %v889_v36  ;;  %v3576_v36 = vunpack.c.h.bf16 %v3775_v27  ;;  %v3777_v25 = vld [vmem:[#allocation4 + $0x98] sm:$0xff]  }
 0x287   :  { %v3337_v30 = vmul.f32 -1.442695, %v929_v56 }
 0x289   :  { %3956 = vpow2.f32 %v3337_v30 }
 0x28c   :  { %v891_v50 = vpop.f32.mrf.mxu2 }
 0x28d   :  { %v930_v1 = vadd.f32 %v3572_v34, %v891_v50 }
 0x28f   :  { %v3957_v54 = vpop.eup %3956  ;;  %v3338_v26 = vmul.f32 -1.442695, %v930_v1 }
 0x290   :  { %v969_v35 = vadd.f32 1.0, %v3957_v54 }
 0x292   :  { %v988_v4 = vand.u32 2147483648, %v969_v35  ;;  %vm982_vm11 = vweird.f32 %v969_v35  ;;  %v986_v7 = vand.u32 2147483647, %v969_v35 }
 0x294   :  { %v894_v14 = vpop.f32.mrf.mxu2  ;;  %v989_v47 = vor.u32 1.1754944e-38, %v988_v4  ;;  %vm987_vm14 = vcmp.eq.f32.partialorder %v986_v7, 8.507059e+37 }
 0x295   :  { %v931_v8 = vadd.f32 %v3575_v40, %v894_v14 }
 0x297   :  { %v3339_v30 = vmul.f32 -1.442695, %v931_v8 }
 0x29c   :  { %v5124_v15 = vpop.f32.mrf.mxu2 }
 0x2a4   :  { %v899_v17 = vpop.f32.mrf.mxu2 }
 0x2a5   :  { %v933_v32 = vadd.f32 %v3579_v49, %v899_v17  ;;  %v3580_v49 = vunpack.c.h.bf16 %v5126_v37  ;;  %v932_v17 = vadd.f32 %v3576_v36, %v5124_v15 }
 0x2a7   :  { %v3341_v44 = vmul.f32 -1.442695, %v933_v32  ;;  %v3583_v32 = vunpack.c.l.bf16 %v3777_v25 }
 0x2a9   :  { %3958 = vpow2.f32 %v3341_v44  ;;  %v3584_v44 = vunpack.c.h.bf16 %v3777_v25 }
 0x2aa   :  { %3960 = vrcp.f32 %v969_v35 }
 0x2ac   :  { %v5129_v46 = vpop.f32.mrf.mxu2 }
 0x2ad   :  { %v934_v14 = vadd.f32 %v3580_v49, %v5129_v46 }
 0x2af   :  { %v3959_v43 = vpop.eup %3958 }
 0x2b0   :  { %v973_v19 = vadd.f32 1.0, %v3959_v43  ;;  %v3961_v41 = vpop.eup %3960  ;;  %v3340_v43 = vmul.f32 -1.442695, %v932_v17  ;;  %v3779_v17 = vld [vmem:[#allocation4 + $0xa8] sm:$0xff]  }
 0x2b1   :  { %v978_v52 = vmul.f32 %v3961_v41, %v969_v35  ;;  %vm983_vm9 = vweird.f32 %v3961_v41 }
 0x2b2   :  { %3962 = vrcp.f32 %v973_v19  ;;  %v1048_v24 = vand.u32 2147483648, %v973_v19  ;;  %vm1042_vm8 = vweird.f32 %v973_v19  ;;  %v1046_v61 = vand.u32 2147483647, %v973_v19  ;;  %vm984_vm12 = vmor %vm982_vm11, %vm983_vm9 }
 0x2b3   :  { %v979_v48 = vsub.f32 1.0, %v978_v52 }
 0x2b4   :  { %v904_v20 = vpop.f32.mrf.mxu2  ;;  %v1049_v31 = vor.u32 1.1754944e-38, %v1048_v24  ;;  %vm1047_vm13 = vcmp.eq.f32.partialorder %v1046_v61, 8.507059e+37 }
 0x2b5   :  { %v980_v45 = vmul.f32 %v3961_v41, %v979_v48 }
 0x2b7   :  { %v981_v23 = vadd.f32 %v3961_v41, %v980_v45 }
 0x2b8   :  { %v3963_v9 = vpop.eup %3962 }
 0x2b9   :  { %v1038_v11 = vmul.f32 %v3963_v9, %v973_v19  ;;  %vm1043_vm7 = vweird.f32 %v3963_v9  ;;  %v985_v21 = vsel %vm984_vm12, %v3961_v41, %v981_v23 }
 0x2ba   :  { %vm1044_vm10 = vmor %vm1042_vm8, %vm1043_vm7  ;;  %v990_v13 = vsel %vm987_vm14, %v989_v47, %v985_v21  ;;  %v5175_v47 = vld [vmem:[#allocation4 + $0xb8] sm:$0xff]  }
 0x2bb   :  { %v1039_v18 = vsub.f32 1.0, %v1038_v11  ;;  %v3599_v25 = vunpack.c.l.bf16 %v5175_v47 }
 0x2bc   :  { %v906_v62 = vpop.f32.mrf.mxu2 }
 0x2bd   :  { %v1040_v12 = vmul.f32 %v3963_v9, %v1039_v18  ;;  %v936_v19 = vadd.f32 %v3584_v44, %v906_v62 }
 0x2bf   :  { %v1041_v51 = vadd.f32 %v3963_v9, %v1040_v12  ;;  %v3344_v37 = vmul.f32 -1.442695, %v936_v19  ;;  %v3780_v12 = vld [vmem:[#allocation4 + $0xb0] sm:$0xff]  }
 0x2c0   :  { %v3595_v24 = vunpack.c.l.bf16 %v3780_v12  ;;  %v3596_v61 = vunpack.c.h.bf16 %v3780_v12 }
 0x2c1   :  { %v1045_v10 = vsel %vm1044_vm10, %v3963_v9, %v1041_v51  ;;  %v3342_v9 = vmul.f32 -1.442695, %v934_v14 }
 0x2c2   :  { %v1050_v59 = vsel %vm1047_vm13, %v1049_v31, %v1045_v10 }
 0x2c3   :  { %v1177_v50 = vmul.f32 %v1050_v59, %v4825_v63  ;;  %v935_v63 = vadd.f32 %v3583_v32, %v904_v20 }
 0x2c4   :  { %v909_v60 = vpop.f32.mrf.mxu2 }
 0x2c5   :  { %v937_v0 = vadd.f32 %v3587_v57, %v909_v60  ;;  %v3343_v11 = vmul.f32 -1.442695, %v935_v63  ;;  %v3588_v63 = vunpack.c.h.bf16 %v5131_v55 }
 0x2c7   :  { %3964 = vtanh.f32 %v937_v0 }
 0x2c8   :  { %3966 = vpow2.f32 %v3338_v26 }
 0x2c9   :  { %3968 = vpow2.f32 %v3339_v30 }
 0x2ca   :  { %3970 = vpow2.f32 %v3340_v43 }
 0x2cc   :  { %v5134_v28 = vpop.f32.mrf.mxu2 }
 0x2cd   :  { %v3965_v29 = vpop.eup %3964 }
 0x2ce   :  { %v1181_v16 = vmul.f32 %v3965_v29, %v990_v13  ;;  %v3967_v35 = vpop.eup %3966 }
 0x2cf   :  { %v5144_v41 = vadd.f32 1.0, %v3967_v35  ;;  %v3969_v52 = vpop.eup %3968 }
 0x2d0   :  { %v5137_v56 = vadd.f32 %v1181_v16, %v1177_v50  ;;  %v5149_v18 = vadd.f32 1.0, %v3969_v52  ;;  %v3971_v46 = vpop.eup %3970 }
 0x2d1   :  { %3972 = vrcp.f32 %v5144_v41  ;;  %v5154_v62 = vadd.f32 1.0, %v3971_v46  ;;  %v1001_v36 = vand.u32 2147483647, %v5144_v41  ;;  %v1003_v16 = vand.u32 2147483648, %v5144_v41 }
 0x2d2   :  { %3974 = vpow2.f32 %v3342_v9  ;;  %v1018_v32 = vand.u32 2147483648, %v5149_v18  ;;  %vm997_vm1 = vweird.f32 %v5144_v41  ;;  %vm1012_vm4 = vweird.f32 %v5149_v18 }
 0x2d3   :  { %3976 = vpow2.f32 %v3343_v11  ;;  %vm5198_vm2 = vcmp.eq.f32.partialorder %v1001_v36, 8.507059e+37  ;;  %v1016_v55 = vand.u32 2147483647, %v5149_v18  ;;  %vm1027_vm7 = vweird.f32 %v5154_v62 }
 0x2d4   :  { %v5141_v54 = vpop.f32.mrf.mxu2  ;;  %3978 = vpow2.f32 %v3344_v37  ;;  %v3591_v37 = vunpack.c.l.bf16 %v3779_v17  ;;  %v5213_v12 = vor.u32 1.1754944e-38, %v1018_v32 }
 0x2d5   :  { %3980 = vrcp.f32 %v5149_v18  ;;  %vm5246_vm8 = vcmp.eq.f32.partialorder %v1016_v55, 8.507059e+37 }
 0x2d6   :  { %3982 = vrcp.f32 %v5154_v62 }
 0x2d7   :  { %v5151_v48 = vpop.eup %3972 }
 0x2d8   :  { %v3975_v20 = vpop.eup %3974  ;;  %v993_v60 = vmul.f32 %v5151_v48, %v5144_v41  ;;  %vm998_vm15 = vweird.f32 %v5151_v48  ;;  %v1004_v41 = vor.u32 1.1754944e-38, %v1003_v16 }
 0x2d9   :  { %v3977_v57 = vpop.eup %3976  ;;  %v5158_v51 = vadd.f32 1.0, %v3975_v20  ;;  %vm5204_vm3 = vmor %vm997_vm1, %vm998_vm15 }
 0x2da   :  { %v3979_v34 = vpop.eup %3978  ;;  %v5161_v0 = vadd.f32 1.0, %v3977_v57  ;;  %v994_v1 = vsub.f32 1.0, %v993_v60 }
 0x2db   :  { %v5163_v27 = vpop.eup %3980  ;;  %v5165_v23 = vadd.f32 1.0, %v3979_v34  ;;  %3984 = vrcp.f32 %v5158_v51  ;;  %vm1057_vm10 = vweird.f32 %v5158_v51  ;;  %v1063_v32 = vand.u32 2147483648, %v5158_v51 }
 0x2dc   :  { %v5147_v15 = vpop.f32.mrf.mxu2  ;;  %v1008_v7 = vmul.f32 %v5163_v27, %v5149_v18  ;;  %3986 = vrcp.f32 %v5161_v0  ;;  %v5172_v40 = vpop.eup %3982  ;;  %v995_v21 = vmul.f32 %v5151_v48, %v994_v1  ;;  %vm1013_vm6 = vweird.f32 %v5163_v27 }
 0x2dd   :  { %3988 = vrcp.f32 %v5165_v23  ;;  %v1023_v13 = vmul.f32 %v5172_v40, %v5154_v62  ;;  %v938_v1 = vadd.f32 %v3588_v63, %v5134_v28  ;;  %vm5229_vm5 = vmor %vm1012_vm4, %vm1013_vm6  ;;  %v1031_v28 = vand.u32 2147483647, %v5154_v62 }
 0x2de   :  { %v1009_v59 = vsub.f32 1.0, %v1008_v7  ;;  %v996_v49 = vadd.f32 %v5151_v48, %v995_v21  ;;  %vm1028_vm9 = vweird.f32 %v5172_v40  ;;  %v1078_v19 = vand.u32 2147483648, %v5161_v0 }
 0x2df   :  { %v1024_v14 = vsub.f32 1.0, %v1023_v13  ;;  %vm5270_vm13 = vmor %vm1027_vm7, %vm1028_vm9  ;;  %vm1072_vm15 = vweird.f32 %v5161_v0  ;;  %vm1032_vm4 = vcmp.eq.f32.partialorder %v1031_v28, 8.507059e+37 }
 0x2e0   :  { %v1010_v35 = vmul.f32 %v5163_v27, %v1009_v59  ;;  %v1000_v20 = vsel %vm5204_vm3, %v5151_v48, %v996_v49  ;;  %vm1087_vm3 = vweird.f32 %v5165_v23 }
 0x2e1   :  { %v5177_v8 = vpop.eup %3984  ;;  %v1025_v48 = vmul.f32 %v5172_v40, %v1024_v14  ;;  %v5225_v21 = vsel %vm5198_vm2, %v1004_v41, %v1000_v20  ;;  %v1093_v41 = vand.u32 2147483648, %v5165_v23 }
 0x2e2   :  { %v5182_v50 = vpop.eup %3986  ;;  %v1053_v44 = vmul.f32 %v5177_v8, %v5158_v51  ;;  %v5216_v34 = vadd.f32 %v5163_v27, %v1010_v35  ;;  %vm1058_vm11 = vweird.f32 %v5177_v8 }
 0x2e3   :  { %v5186_v30 = vpop.eup %3988  ;;  %v1068_v43 = vmul.f32 %v5182_v50, %v5161_v0  ;;  %vm1073_vm12 = vweird.f32 %v5182_v50  ;;  %vm5282_vm1 = vmor %vm1057_vm10, %vm1058_vm11 }
 0x2e4   :  { %v919_v45 = vpop.f32.mrf.mxu2  ;;  %v1083_v11 = vmul.f32 %v5186_v30, %v5165_v23  ;;  %vm1088_vm14 = vweird.f32 %v5186_v30  ;;  %vm5290_vm2 = vmor %vm1072_vm15, %vm1073_vm12 }
 0x2e5   :  { %v941_v4 = vadd.f32 %v3595_v24, %v919_v45  ;;  %v1054_v45 = vsub.f32 1.0, %v1053_v44  ;;  %v1061_v44 = vand.u32 2147483647, %v5158_v51  ;;  %vm5309_vm6 = vmor %vm1087_vm3, %vm1088_vm14 }
 0x2e6   :  { %v1084_v7 = vsub.f32 1.0, %v1083_v11 }
 0x2e7   :  { %v3345_v26 = vmul.f32 -1.442695, %v941_v4  ;;  %v3592_v4 = vunpack.c.h.bf16 %v3779_v17 }
 0x2e8   :  { %v1085_v49 = vmul.f32 %v5186_v30, %v1084_v7 }
 0x2e9   :  { %v940_v16 = vadd.f32 %v3592_v4, %v5147_v15 }
 0x2ea   :  { %v1086_v11 = vadd.f32 %v5186_v30, %v1085_v49 }
 0x2ec   :  { %v921_v10 = vpop.f32.mrf.mxu2 }
 0x2ed   :  { %v942_v31 = vadd.f32 %v3596_v61, %v921_v10  ;;  %v1069_v61 = vsub.f32 1.0, %v1068_v43  ;;  %v939_v10 = vadd.f32 %v3591_v37, %v5141_v54  ;;  %v1055_v54 = vmul.f32 %v5177_v8, %v1054_v45 }
 0x2ee   :  { %v1076_v37 = vand.u32 2147483647, %v5161_v0  ;;  %v1091_v0 = vand.u32 2147483647, %v5165_v23  ;;  %v1064_v45 = vor.u32 1.1754944e-38, %v1063_v32 }
 0x2ef   :  { %v3346_v29 = vmul.f32 -1.442695, %v942_v31  ;;  %v3600_v31 = vunpack.c.h.bf16 %v5175_v47  ;;  %v1015_v47 = vsel %vm5229_vm5, %v5163_v27, %v5216_v34  ;;  %v1070_v13 = vmul.f32 %v5182_v50, %v1069_v61 }
 0x2f0   :  { %v1026_v27 = vadd.f32 %v5172_v40, %v1025_v48  ;;  %v1056_v15 = vadd.f32 %v5177_v8, %v1055_v54  ;;  %vm1062_vm5 = vcmp.eq.f32.partialorder %v1061_v44, 8.507059e+37  ;;  %v1020_v23 = vsel %vm5246_vm8, %v5213_v12, %v1015_v47 }
 0x2f1   :  { %3990 = vpow2.f32 %v3346_v29  ;;  %v1033_v29 = vand.u32 2147483648, %v5154_v62  ;;  %v1071_v43 = vadd.f32 %v5182_v50, %v1070_v13  ;;  %vm1077_vm7 = vcmp.eq.f32.partialorder %v1076_v37, 8.507059e+37 }
 0x2f2   :  { %3992 = vpow2.f32 %v3345_v26  ;;  %v1060_v51 = vsel %vm5282_vm1, %v5177_v8, %v1056_v15  ;;  %v1030_v55 = vsel %vm5270_vm13, %v5172_v40, %v1026_v27  ;;  %v1079_v40 = vor.u32 1.1754944e-38, %v1078_v19 }
 0x2f3   :  { %v1075_v34 = vsel %vm5290_vm2, %v5182_v50, %v1071_v43  ;;  %v1090_v50 = vsel %vm5309_vm6, %v5186_v30, %v1086_v11  ;;  %v1094_v48 = vor.u32 1.1754944e-38, %v1093_v41  ;;  %vm1092_vm9 = vcmp.eq.f32.partialorder %v1091_v0, 8.507059e+37 }
 0x2f4   :  { %v924_v9 = vpop.f32.mrf.mxu2 }
 0x2f5   :  { %v943_v46 = vadd.f32 %v3599_v25, %v924_v9  ;;  %v1095_v12 = vsel %vm1092_vm9, %v1094_v48, %v1090_v50 }
 0x2f7   :  { %v3991_v57 = vpop.eup %3990  ;;  %v3347_v60 = vmul.f32 -1.442695, %v943_v46 }
 0x2f8   :  { %v3993_v24 = vpop.eup %3992  ;;  %v5235_v59 = vadd.f32 1.0, %v3991_v57 }
 0x2f9   :  { %3994 = vpow2.f32 %v3347_v60  ;;  %v5243_v18 = vadd.f32 1.0, %v3993_v24  ;;  %v1034_v60 = vor.u32 1.1754944e-38, %v1033_v29 }
 0x2fa   :  { %3996 = vtanh.f32 %v938_v1  ;;  %v1065_v1 = vsel %vm1062_vm5, %v1064_v45, %v1060_v51  ;;  %vm1137_vm11 = vweird.f32 %v5235_v59  ;;  %v1141_v37 = vand.u32 2147483647, %v5235_v59 }
 0x2fb   :  { %3998 = vtanh.f32 %v939_v10  ;;  %v1035_v4 = vsel %vm1032_vm4, %v1034_v60, %v1030_v55  ;;  %v1178_v29 = vmul.f32 %v1065_v1, %v5015_v22  ;;  %vm1122_vm1 = vweird.f32 %v5243_v18 }
 0x2fc   :  { %v926_v25 = vpop.f32.mrf.mxu2  ;;  %4000 = vrcp.f32 %v5235_v59  ;;  %v1128_v60 = vand.u32 2147483648, %v5243_v18  ;;  %vm1142_vm9 = vcmp.eq.f32.partialorder %v1141_v37, 8.507059e+37 }
 0x2fd   :  { %v944_v17 = vadd.f32 %v3600_v31, %v926_v25  ;;  %4002 = vrcp.f32 %v5243_v18  ;;  %v1080_v31 = vsel %vm1077_vm7, %v1079_v40, %v1075_v34  ;;  %v1180_v25 = vmul.f32 %v1095_v12, %v5020_v39 }
 0x2fe   :  { %4004 = vtanh.f32 %v940_v16  ;;  %v1179_v16 = vmul.f32 %v1080_v31, %v5018_v33  ;;  %v1126_v34 = vand.u32 2147483647, %v5243_v18 }
 0x2ff   :  { %v3995_v35 = vpop.eup %3994  ;;  %v3348_v14 = vmul.f32 -1.442695, %v944_v17 }
 0x300   :  { %v5263_v63 = vadd.f32 1.0, %v3995_v35  ;;  %v3997_v52 = vpop.eup %3996 }
 0x301   :  { %4006 = vpow2.f32 %v3348_v14  ;;  %v3999_v46 = vpop.eup %3998  ;;  %v1182_v10 = vmul.f32 %v3997_v52, %v5225_v21  ;;  %v5405_v52 = vld [vmem:[#allocation4 + $0xe0] sm:$0xff]  }
 0x302   :  { %4008 = vrcp.f32 %v5263_v63  ;;  %v5302_v57 = vpop.eup %4000  ;;  %v1183_v54 = vmul.f32 %v3999_v46, %v1020_v23  ;;  %v1158_v43 = vand.u32 2147483648, %v5263_v63  ;;  %vm1152_vm13 = vweird.f32 %v5263_v63 }
 0x303   :  { %v5313_v8 = vpop.eup %4002  ;;  %v1133_v26 = vmul.f32 %v5302_v57, %v5235_v59  ;;  %v5329_v21 = vadd.f32 %v1182_v10, %v1178_v29  ;;  %vm1138_vm12 = vweird.f32 %v5302_v57  ;;  %v1156_v19 = vand.u32 2147483647, %v5263_v63 }
 0x304   :  { %v4005_v61 = vpop.eup %4004  ;;  %v1118_v30 = vmul.f32 %v5313_v8, %v5243_v18  ;;  %v5332_v17 = vadd.f32 %v1183_v54, %v1179_v16  ;;  %vm1123_vm10 = vweird.f32 %v5313_v8  ;;  %v1143_v46 = vand.u32 2147483648, %v5235_v59  ;;  %vm5364_vm2 = vmor %vm1137_vm11, %vm1138_vm12 }
 0x305   :  { %v1184_v13 = vmul.f32 %v4005_v61, %v1035_v4  ;;  %v1134_v27 = vsub.f32 1.0, %v1133_v26  ;;  %v1159_v45 = vor.u32 1.1754944e-38, %v1158_v43  ;;  %vm1157_vm3 = vcmp.eq.f32.partialorder %v1156_v19, 8.507059e+37  ;;  %vm5370_vm6 = vmor %vm1122_vm1, %vm1123_vm10 }
 0x306   :  { %v1119_v32 = vsub.f32 1.0, %v1118_v30  ;;  %v1144_v1 = vor.u32 1.1754944e-38, %v1143_v46  ;;  %v1129_v10 = vor.u32 1.1754944e-38, %v1128_v60 }
 0x307   :  { %v4007_v7 = vpop.eup %4006  ;;  %v5334_v44 = vadd.f32 %v1184_v13, %v1180_v25  ;;  %v1135_v22 = vmul.f32 %v5302_v57, %v1134_v27  ;;  %v3602_v13 = vld [vmem:[#allocation4 + $0xc0] sm:$0xff]  }
 0x308   :  { %v4009_v28 = vpop.eup %4008  ;;  %v1116_v47 = vadd.f32 1.0, %v4007_v7  ;;  %v1120_v33 = vmul.f32 %v5313_v8, %v1119_v32  ;;  %v3604_v46 = vunpack.c.h.bf16 %v3602_v13 }
 0x309   :  { %v1148_v36 = vmul.f32 %v4009_v28, %v5263_v63  ;;  %vm1153_vm8 = vweird.f32 %v4009_v28  ;;  %v1136_v11 = vadd.f32 %v5302_v57, %v1135_v22 }
 0x30a   :  { %4010 = vrcp.f32 %v1116_v47  ;;  %vm5348_vm14 = vmor %vm1152_vm13, %vm1153_vm8  ;;  %v1173_v41 = vand.u32 2147483648, %v1116_v47  ;;  %v1121_v62 = vadd.f32 %v5313_v8, %v1120_v33  ;;  %v1171_v63 = vand.u32 2147483647, %v1116_v47 }
 0x30b   :  { %v1149_v49 = vsub.f32 1.0, %v1148_v36  ;;  %4012 = vtanh.f32 %v5329_v21  ;;  %vm1167_vm4 = vweird.f32 %v1116_v47  ;;  %v1140_v18 = vsel %vm5364_vm2, %v5302_v57, %v1136_v11 }
 0x30c   :  { %4014 = vtanh.f32 %v5332_v17  ;;  %v1174_v59 = vor.u32 1.1754944e-38, %v1173_v41  ;;  %vm1172_vm7 = vcmp.eq.f32.partialorder %v1171_v63, 8.507059e+37  ;;  %v1125_v48 = vsel %vm5370_vm6, %v5313_v8, %v1121_v62 }
 0x30d   :  { %v1150_v35 = vmul.f32 %v4009_v28, %v1149_v49  ;;  %4016 = vtanh.f32 %v5334_v44  ;;  %v1145_v31 = vsel %vm1142_vm9, %v1144_v1, %v1140_v18  ;;  %vm1127_vm8 = vcmp.eq.f32.partialorder %v1126_v34, 8.507059e+37 }
 0x30e   :  { %4018 = vtanh.f32 %v5137_v56  ;;  %v1130_v57 = vsel %vm1127_vm8, %v1129_v10, %v1125_v48  ;;  %v3619_v62 = vunpack.c.l.bf16 %v5405_v52 }
 0x30f   :  { %v1151_v14 = vadd.f32 %v4009_v28, %v1150_v35 }
 0x310   :  { %v4011_v15 = vpop.eup %4010 }
 0x311   :  { %v1163_v39 = vmul.f32 %v4011_v15, %v1116_v47  ;;  %v4013_v20 = vpop.eup %4012  ;;  %v1155_v51 = vsel %vm5348_vm14, %v4009_v28, %v1151_v14  ;;  %vm1168_vm15 = vweird.f32 %v4011_v15 }
 0x312   :  { %v4015_v0 = vpop.eup %4014  ;;  %v1160_v61 = vsel %vm1157_vm3, %v1159_v45, %v1155_v51  ;;  %vm1169_vm5 = vmor %vm1167_vm4, %vm1168_vm15  ;;  %v1194_v12 = vmul.f32 %v4013_v20, %v1145_v31 }
 0x313   :  { %v1164_v9 = vsub.f32 1.0, %v1163_v39  ;;  %v4017_v40 = vpop.eup %4016  ;;  %v1195_v26 = vmul.f32 %v4015_v0, %v1160_v61  ;;  %v3782_v0 = vld [vmem:[#allocation4 + $0xc8] sm:$0xff]  }
 0x314   :  { %v4019_v47 = vpop.eup %4018  ;;  %v3607_v50 = vunpack.c.l.bf16 %v3782_v0 }
 0x315   :  { %v1165_v55 = vmul.f32 %v4011_v15, %v1164_v9  ;;  %v1193_v30 = vmul.f32 %v4019_v47, %v1130_v57 }
 0x317   :  { %v1166_v23 = vadd.f32 %v4011_v15, %v1165_v55  ;;  %v1230_v29 = vpack.c.bf16 %v1194_v12, %v1193_v30 }
 0x319   :  { %v1170_v4 = vsel %vm1169_vm5, %v4011_v15, %v1166_v23 }
 0x31a   :  { %v1175_v7 = vsel %vm1172_vm7, %v1174_v59, %v1170_v4 }
 0x31b   :  { %v1196_v28 = vmul.f32 %v4017_v40, %v1175_v7 }
 0x31d   :  { %v1231_v54 = vpack.c.bf16 %v1196_v28, %v1195_v26  ;;  %v3608_v26 = vunpack.c.h.bf16 %v3782_v0 }
 0x31f   :  { %1238 = vmatpush.bf16.msrb.mxu3 %v1231_v54  ;;  %v3784_v54 = vld [vmem:[#allocation4 + $0xd8] sm:$0xff]  }
 0x323   :  { %1239 = vmatpush.bf16.msrb.mxu3 %v1230_v29 }
 0x326   :  { %3349 = vmatmul.msk.bf16.vlgmr.msrb.gmra.mxu3 %vm151_vm0, %v5071_v3 }
 0x336   :  { %3350 = vmatmul.msk.bf16.gmra.mxu3 %vm151_vm0, %v5078_v53 }
 0x346   :  { %3351 = vmatmul.msk.bf16.gmra.mxu3 %vm151_vm0, %v5085_v2  ;;  %v3603_v2 = vunpack.c.l.bf16 %v3602_v13 }
 0x356   :  { %3352 = vmatmul.msk.bf16.gmra.mxu3 %vm151_vm0, %v5092_v6  ;;  %v5400_v6 = vld [vmem:[#allocation4 + $0xd0] sm:$0xff]  }
 0x357   :  { %v3611_v25 = vunpack.c.l.bf16 %v5400_v6  ;;  %v3612_v30 = vunpack.c.h.bf16 %v5400_v6 }
 0x366   :  { %3353 = vmatmul.msk.bf16.gmra.mxu3 %vm151_vm0, %v5099_v42 }
 0x376   :  { %3354 = vmatmul.msk.bf16.gmra.mxu3 %vm151_vm0, %v5106_v5 }
 0x386   :  { %3355 = vmatmul.msk.bf16.gmra.mxu3 %vm151_vm0, %v5113_v58 }
 0x396   :  { %3356 = vmatmul.msk.bf16.gmra.mxu3 %vm151_vm0, %v5120_v38 }
 0x3a9   :  { %v1241_v3 = vpop.f32.mrf.mxu3 }
 0x3aa   :  { %v1281_v36 = vadd.f32 %v3603_v2, %v1241_v3  ;;  %v3615_v3 = vunpack.c.l.bf16 %v3784_v54 }
 0x3ac   :  { %v3357_v42 = vmul.f32 -1.442695, %v1281_v36 }
 0x3ae   :  { %4020 = vpow2.f32 %v3357_v42 }
 0x3b1   :  { %v1243_v53 = vpop.f32.mrf.mxu3 }
 0x3b2   :  { %v1282_v60 = vadd.f32 %v3604_v46, %v1243_v53  ;;  %v3616_v53 = vunpack.c.h.bf16 %v3784_v54 }
 0x3b4   :  { %v4021_v27 = vpop.eup %4020  ;;  %v3358_v59 = vmul.f32 -1.442695, %v1282_v60  ;;  %v5449_v60 = vld [vmem:[#allocation4 + $0xf8] sm:$0xff]  }
 0x3b5   :  { %v1321_v32 = vadd.f32 1.0, %v4021_v27 }
 0x3b7   :  { %v1340_v24 = vand.u32 2147483648, %v1321_v32  ;;  %vm1334_vm14 = vweird.f32 %v1321_v32  ;;  %v1338_v40 = vand.u32 2147483647, %v1321_v32 }
 0x3b9   :  { %v1246_v8 = vpop.f32.mrf.mxu3  ;;  %v1341_v1 = vor.u32 1.1754944e-38, %v1340_v24  ;;  %vm1339_vm2 = vcmp.eq.f32.partialorder %v1338_v40, 8.507059e+37 }
 0x3ba   :  { %v1283_v10 = vadd.f32 %v3607_v50, %v1246_v8 }
 0x3bc   :  { %v3359_v47 = vmul.f32 -1.442695, %v1283_v10  ;;  %v3786_v10 = vld [vmem:[#allocation4 + $0xe8] sm:$0xff]  }
 0x3c1   :  { %v5398_v16 = vpop.f32.mrf.mxu3 }
 0x3c2   :  { %v1284_v29 = vadd.f32 %v3608_v26, %v5398_v16 }
 0x3c4   :  { %v3360_v36 = vmul.f32 -1.442695, %v1284_v29 }
 0x3c9   :  { %v1251_v5 = vpop.f32.mrf.mxu3 }
 0x3ca   :  { %v1285_v49 = vadd.f32 %v3611_v25, %v1251_v5 }
 0x3cc   :  { %v3361_v58 = vmul.f32 -1.442695, %v1285_v49 }
 0x3ce   :  { %4022 = vpow2.f32 %v3361_v58 }
 0x3cf   :  { %4024 = vrcp.f32 %v1321_v32 }
 0x3d1   :  { %v5403_v38 = vpop.f32.mrf.mxu3 }
 0x3d2   :  { %v1286_v8 = vadd.f32 %v3612_v30, %v5403_v38 }
 0x3d4   :  { %v4023_v35 = vpop.eup %4022  ;;  %v3362_v5 = vmul.f32 -1.442695, %v1286_v8  ;;  %v3623_v8 = vunpack.c.l.bf16 %v3786_v10 }
 0x3d5   :  { %v1325_v22 = vadd.f32 1.0, %v4023_v35  ;;  %v4025_v33 = vpop.eup %4024 }
 0x3d6   :  { %v1330_v43 = vmul.f32 %v4025_v33, %v1321_v32  ;;  %vm1335_vm12 = vweird.f32 %v4025_v33 }
 0x3d7   :  { %4026 = vrcp.f32 %v1325_v22  ;;  %v1400_v55 = vand.u32 2147483648, %v1325_v22  ;;  %vm1394_vm11 = vweird.f32 %v1325_v22  ;;  %v1398_v34 = vand.u32 2147483647, %v1325_v22  ;;  %vm1336_vm15 = vmor %vm1334_vm14, %vm1335_vm12 }
 0x3d8   :  { %v1331_v11 = vsub.f32 1.0, %v1330_v43 }
 0x3d9   :  { %v1256_v15 = vpop.f32.mrf.mxu3  ;;  %v1401_v18 = vor.u32 1.1754944e-38, %v1400_v55  ;;  %vm1399_vm1 = vcmp.eq.f32.partialorder %v1398_v34, 8.507059e+37 }
 0x3da   :  { %v1332_v37 = vmul.f32 %v4025_v33, %v1331_v11 }
 0x3dc   :  { %v1333_v45 = vadd.f32 %v4025_v33, %v1332_v37 }
 0x3dd   :  { %v4027_v14 = vpop.eup %4026 }
 0x3de   :  { %v1390_v39 = vmul.f32 %v4027_v14, %v1325_v22  ;;  %vm1395_vm10 = vweird.f32 %v4027_v14  ;;  %v1337_v61 = vsel %vm1336_vm15, %v4025_v33, %v1333_v45 }
 0x3df   :  { %vm1396_vm13 = vmor %vm1394_vm11, %vm1395_vm10  ;;  %v1342_v31 = vsel %vm1339_vm2, %v1341_v1, %v1337_v61  ;;  %v3631_v1 = vunpack.c.l.bf16 %v5449_v60 }
 0x3e0   :  { %v1391_v19 = vsub.f32 1.0, %v1390_v39 }
 0x3e1   :  { %v1258_v9 = vpop.f32.mrf.mxu3 }
 0x3e2   :  { %v1392_v41 = vmul.f32 %v4027_v14, %v1391_v19  ;;  %v1288_v42 = vadd.f32 %v3616_v53, %v1258_v9 }
 0x3e4   :  { %v1393_v51 = vadd.f32 %v4027_v14, %v1392_v41  ;;  %v3364_v6 = vmul.f32 -1.442695, %v1288_v42 }
 0x3e6   :  { %v1397_v23 = vsel %vm1396_vm13, %v4027_v14, %v1393_v51 }
 0x3e7   :  { %v1402_v4 = vsel %vm1399_vm1, %v1401_v18, %v1397_v23 }
 0x3e8   :  { %v1529_v28 = vmul.f32 %v1402_v4, %v5137_v56  ;;  %v1287_v56 = vadd.f32 %v3615_v3, %v1256_v15  ;;  %v3787_v15 = vld [vmem:[#allocation4 + $0xf0] sm:$0xff]  }
 0x3e9   :  { %v1261_v20 = vpop.f32.mrf.mxu3  ;;  %v3627_v9 = vunpack.c.l.bf16 %v3787_v15  ;;  %v3628_v37 = vunpack.c.h.bf16 %v3787_v15  ;;  %v3624_v15 = vunpack.c.h.bf16 %v3786_v10 }
 0x3ea   :  { %v1289_v63 = vadd.f32 %v3619_v62, %v1261_v20  ;;  %v3363_v49 = vmul.f32 -1.442695, %v1287_v56 }
 0x3ec   :  { %4028 = vtanh.f32 %v1289_v63 }
 0x3ed   :  { %4030 = vpow2.f32 %v3358_v59 }
 0x3ee   :  { %4032 = vpow2.f32 %v3359_v47  ;;  %v3620_v47 = vunpack.c.h.bf16 %v5405_v52 }
 0x3ef   :  { %4034 = vpow2.f32 %v3360_v36 }
 0x3f1   :  { %v5408_v48 = vpop.f32.mrf.mxu3 }
 0x3f2   :  { %v4029_v7 = vpop.eup %4028 }
 0x3f3   :  { %v1533_v57 = vmul.f32 %v4029_v7, %v1342_v31  ;;  %v4031_v2 = vpop.eup %4030 }
 0x3f4   :  { %v5418_v25 = vadd.f32 1.0, %v4031_v2  ;;  %v4033_v58 = vpop.eup %4032 }
 0x3f5   :  { %v5411_v12 = vadd.f32 %v1533_v57, %v1529_v28  ;;  %v5423_v27 = vadd.f32 1.0, %v4033_v58  ;;  %v4035_v38 = vpop.eup %4034 }
 0x3f6   :  { %4036 = vrcp.f32 %v5418_v25  ;;  %v5428_v22 = vadd.f32 1.0, %v4035_v38  ;;  %v1353_v18 = vand.u32 2147483647, %v5418_v25  ;;  %v1355_v59 = vand.u32 2147483648, %v5418_v25 }
 0x3f7   :  { %4038 = vpow2.f32 %v3362_v5  ;;  %v1370_v31 = vand.u32 2147483648, %v5423_v27  ;;  %vm1349_vm4 = vweird.f32 %v5418_v25  ;;  %vm1364_vm7 = vweird.f32 %v5423_v27 }
 0x3f8   :  { %4040 = vpow2.f32 %v3363_v49  ;;  %vm5472_vm6 = vcmp.eq.f32.partialorder %v1353_v18, 8.507059e+37  ;;  %v1356_v2 = vor.u32 1.1754944e-38, %v1355_v59  ;;  %v1368_v52 = vand.u32 2147483647, %v5423_v27 }
 0x3f9   :  { %v5415_v13 = vpop.f32.mrf.mxu3  ;;  %4042 = vpow2.f32 %v3364_v6  ;;  %v5487_v42 = vor.u32 1.1754944e-38, %v1370_v31  ;;  %vm1379_vm10 = vweird.f32 %v5428_v22 }
 0x3fa   :  { %4044 = vrcp.f32 %v5423_v27  ;;  %vm5520_vm11 = vcmp.eq.f32.partialorder %v1368_v52, 8.507059e+37 }
 0x3fb   :  { %4046 = vrcp.f32 %v5428_v22 }
 0x3fc   :  { %v5425_v32 = vpop.eup %4036 }
 0x3fd   :  { %v4039_v35 = vpop.eup %4038  ;;  %v1345_v43 = vmul.f32 %v5425_v32, %v5418_v25  ;;  %vm1350_vm3 = vweird.f32 %v5425_v32 }
 0x3fe   :  { %v4041_v33 = vpop.eup %4040  ;;  %v5432_v19 = vadd.f32 1.0, %v4039_v35  ;;  %vm5478_vm5 = vmor %vm1349_vm4, %vm1350_vm3  ;;  %v1290_v35 = vadd.f32 %v3620_v47, %v5408_v48  ;;  %v1383_v48 = vand.u32 2147483647, %v5428_v22 }
 0x3ff   :  { %v4043_v39 = vpop.eup %4042  ;;  %v5435_v11 = vadd.f32 1.0, %v4041_v33  ;;  %v1346_v46 = vsub.f32 1.0, %v1345_v43 }
 0x400   :  { %v5437_v41 = vpop.eup %4044  ;;  %v5439_v62 = vadd.f32 1.0, %v4043_v39  ;;  %4048 = vrcp.f32 %v5432_v19  ;;  %v3632_v39 = vunpack.c.h.bf16 %v5449_v60  ;;  %vm1409_vm13 = vweird.f32 %v5432_v19 }
 0x401   :  { %v5421_v16 = vpop.f32.mrf.mxu3  ;;  %v1360_v51 = vmul.f32 %v5437_v41, %v5423_v27  ;;  %4050 = vrcp.f32 %v5435_v11  ;;  %v5446_v63 = vpop.eup %4046  ;;  %v1347_v45 = vmul.f32 %v5425_v32, %v1346_v46  ;;  %vm1365_vm9 = vweird.f32 %v5437_v41 }
 0x402   :  { %4052 = vrcp.f32 %v5439_v62  ;;  %v1375_v50 = vmul.f32 %v5446_v63, %v5428_v22  ;;  %vm5503_vm8 = vmor %vm1364_vm7, %vm1365_vm9  ;;  %vm1380_vm12 = vweird.f32 %v5446_v63  ;;  %vm1424_vm3 = vweird.f32 %v5435_v11 }
 0x403   :  { %v1361_v24 = vsub.f32 1.0, %v1360_v51  ;;  %v1348_v7 = vadd.f32 %v5425_v32, %v1347_v45  ;;  %vm5544_vm1 = vmor %vm1379_vm10, %vm1380_vm12  ;;  %vm1384_vm7 = vcmp.eq.f32.partialorder %v1383_v48, 8.507059e+37 }
 0x404   :  { %v1376_v57 = vsub.f32 1.0, %v1375_v50 }
 0x405   :  { %v1362_v28 = vmul.f32 %v5437_v41, %v1361_v24  ;;  %v1352_v56 = vsel %vm5478_vm5, %v5425_v32, %v1348_v7  ;;  %v1415_v24 = vand.u32 2147483648, %v5432_v19  ;;  %v1430_v7 = vand.u32 2147483648, %v5435_v11 }
 0x406   :  { %v5451_v23 = vpop.eup %4048  ;;  %v1377_v32 = vmul.f32 %v5446_v63, %v1376_v57  ;;  %v5499_v43 = vsel %vm5472_vm6, %v1356_v2, %v1352_v56  ;;  %v1428_v57 = vand.u32 2147483647, %v5435_v11  ;;  %vm1439_vm5 = vweird.f32 %v5439_v62 }
 0x407   :  { %v5456_v61 = vpop.eup %4050  ;;  %v1405_v26 = vmul.f32 %v5451_v23, %v5432_v19  ;;  %v5490_v49 = vadd.f32 %v5437_v41, %v1362_v28  ;;  %vm1410_vm14 = vweird.f32 %v5451_v23  ;;  %v1445_v28 = vand.u32 2147483648, %v5439_v62 }
 0x408   :  { %v5460_v4 = vpop.eup %4052  ;;  %v1420_v54 = vmul.f32 %v5456_v61, %v5435_v11  ;;  %vm1425_vm15 = vweird.f32 %v5456_v61  ;;  %vm5556_vm4 = vmor %vm1409_vm13, %vm1410_vm14  ;;  %v1443_v11 = vand.u32 2147483647, %v5439_v62  ;;  %vm1429_vm10 = vcmp.eq.f32.partialorder %v1428_v57, 8.507059e+37 }
 0x409   :  { %v1271_v14 = vpop.f32.mrf.mxu3  ;;  %v1435_v3 = vmul.f32 %v5460_v4, %v5439_v62  ;;  %v1406_v5 = vsub.f32 1.0, %v1405_v26  ;;  %v1367_v46 = vsel %vm5503_vm8, %v5437_v41, %v5490_v49  ;;  %v1378_v41 = vadd.f32 %v5446_v63, %v1377_v32  ;;  %vm5564_vm6 = vmor %vm1424_vm3, %vm1425_vm15 }
 0x40a   :  { %v1293_v20 = vadd.f32 %v3627_v9, %v1271_v14  ;;  %v1421_v38 = vsub.f32 1.0, %v1420_v54  ;;  %v1291_v14 = vadd.f32 %v3623_v8, %v5415_v13  ;;  %vm1440_vm2 = vweird.f32 %v5460_v4 }
 0x40b   :  { %v1436_v33 = vsub.f32 1.0, %v1435_v3  ;;  %v1407_v13 = vmul.f32 %v5451_v23, %v1406_v5  ;;  %v1382_v30 = vsel %vm5544_vm1, %v5446_v63, %v1378_v41  ;;  %v1416_v3 = vor.u32 1.1754944e-38, %v1415_v24  ;;  %vm5583_vm9 = vmor %vm1439_vm5, %vm1440_vm2 }
 0x40c   :  { %v3365_v34 = vmul.f32 -1.442695, %v1293_v20  ;;  %v1385_v20 = vand.u32 2147483648, %v5428_v22  ;;  %v1422_v51 = vmul.f32 %v5456_v61, %v1421_v38  ;;  %v1431_v63 = vor.u32 1.1754944e-38, %v1430_v7 }
 0x40d   :  { %v1372_v62 = vsel %vm5520_vm11, %v5487_v42, %v1367_v46  ;;  %vm1444_vm12 = vcmp.eq.f32.partialorder %v1443_v11, 8.507059e+37 }
 0x40e   :  { %v1423_v59 = vadd.f32 %v5456_v61, %v1422_v51  ;;  %v1386_v2 = vor.u32 1.1754944e-38, %v1385_v20 }
 0x410   :  { %v1427_v53 = vsel %vm5564_vm6, %v5456_v61, %v1423_v59  ;;  %v1387_v52 = vsel %vm1384_vm7, %v1386_v2, %v1382_v30 }
 0x411   :  { %v1273_v55 = vpop.f32.mrf.mxu3 }
 0x412   :  { %v1294_v0 = vadd.f32 %v3628_v37, %v1273_v55 }
 0x414   :  { %v3366_v40 = vmul.f32 -1.442695, %v1294_v0  ;;  %v1292_v0 = vadd.f32 %v3624_v15, %v5421_v16  ;;  %v1408_v16 = vadd.f32 %v5451_v23, %v1407_v13 }
 0x416   :  { %4054 = vpow2.f32 %v3366_v40  ;;  %v1413_v40 = vand.u32 2147483647, %v5432_v19  ;;  %v1412_v19 = vsel %vm5556_vm4, %v5451_v23, %v1408_v16 }
 0x417   :  { %4056 = vpow2.f32 %v3365_v34  ;;  %v1437_v34 = vmul.f32 %v5460_v4, %v1436_v33 }
 0x418   :  { %vm1414_vm8 = vcmp.eq.f32.partialorder %v1413_v40, 8.507059e+37 }
 0x419   :  { %v1276_v29 = vpop.f32.mrf.mxu3  ;;  %v1438_v31 = vadd.f32 %v5460_v4, %v1437_v34  ;;  %v1417_v56 = vsel %vm1414_vm8, %v1416_v3, %v1412_v19 }
 0x41a   :  { %v1295_v36 = vadd.f32 %v3631_v1, %v1276_v29  ;;  %v1530_v32 = vmul.f32 %v1417_v56, %v5329_v21 }
 0x41b   :  { %v1442_v61 = vsel %vm5583_vm9, %v5460_v4, %v1438_v31 }
 0x41c   :  { %v4055_v25 = vpop.eup %4054  ;;  %v3367_v58 = vmul.f32 -1.442695, %v1295_v36 }
 0x41d   :  { %v4057_v6 = vpop.eup %4056  ;;  %v5509_v37 = vadd.f32 1.0, %v4055_v25  ;;  %v1446_v25 = vor.u32 1.1754944e-38, %v1445_v28 }
 0x41e   :  { %4058 = vpow2.f32 %v3367_v58  ;;  %v5517_v27 = vadd.f32 1.0, %v4057_v6  ;;  %v1432_v58 = vsel %vm1429_vm10, %v1431_v63, %v1427_v53 }
 0x41f   :  { %4060 = vtanh.f32 %v1290_v35  ;;  %v1447_v42 = vsel %vm1444_vm12, %v1446_v25, %v1442_v61  ;;  %vm1489_vm14 = vweird.f32 %v5509_v37  ;;  %v1495_v59 = vand.u32 2147483648, %v5509_v37 }
 0x420   :  { %4062 = vtanh.f32 %v1291_v14  ;;  %v1532_v9 = vmul.f32 %v1447_v42, %v5334_v44  ;;  %vm1474_vm4 = vweird.f32 %v5517_v27  ;;  %v1478_v22 = vand.u32 2147483647, %v5517_v27  ;;  %v5694_v42 = vld [vmem:[%s6832_s1 + $0x28] sm:$0xff] }
 0x421   :  { %v1278_v45 = vpop.f32.mrf.mxu3  ;;  %4064 = vrcp.f32 %v5509_v37  ;;  %v1480_v57 = vand.u32 2147483648, %v5517_v27  ;;  %v1496_v3 = vor.u32 1.1754944e-38, %v1495_v59 }
 0x422   :  { %v1296_v60 = vadd.f32 %v3632_v39, %v1278_v45  ;;  %4066 = vrcp.f32 %v5517_v27  ;;  %v1531_v39 = vmul.f32 %v1432_v58, %v5332_v17  ;;  %v5659_v58 = vld [vmem:[%s6832_s1] sm:$0xff] }
 0x423   :  { %4068 = vtanh.f32 %v1292_v0  ;;  %v1481_v63 = vor.u32 1.1754944e-38, %v1480_v57 }
 0x424   :  { %v4059_v50 = vpop.eup %4058  ;;  %v3368_v18 = vmul.f32 -1.442695, %v1296_v60 }
 0x425   :  { %v5537_v1 = vadd.f32 1.0, %v4059_v50  ;;  %v4061_v26 = vpop.eup %4060 }
 0x426   :  { %4070 = vpow2.f32 %v3368_v18  ;;  %v4063_v54 = vpop.eup %4062  ;;  %v1534_v49 = vmul.f32 %v4061_v26, %v5499_v43  ;;  %v1493_v18 = vand.u32 2147483647, %v5509_v37 }
 0x427   :  { %4072 = vrcp.f32 %v5537_v1  ;;  %v5576_v29 = vpop.eup %4064  ;;  %v1535_v35 = vmul.f32 %v4063_v54, %v1372_v62  ;;  %v1510_v34 = vand.u32 2147483648, %v5537_v1  ;;  %vm1504_vm1 = vweird.f32 %v5537_v1 }
 0x428   :  { %v5587_v23 = vpop.eup %4066  ;;  %v1485_v6 = vmul.f32 %v5576_v29, %v5509_v37  ;;  %v5603_v43 = vadd.f32 %v1534_v49, %v1530_v32  ;;  %vm1490_vm15 = vweird.f32 %v5576_v29  ;;  %v1508_v41 = vand.u32 2147483647, %v5537_v1 }
 0x429   :  { %v4069_v36 = vpop.eup %4068  ;;  %v1470_v4 = vmul.f32 %v5587_v23, %v5517_v27  ;;  %v5606_v46 = vadd.f32 %v1535_v35, %v1531_v39  ;;  %vm1475_vm13 = vweird.f32 %v5587_v23  ;;  %v1511_v28 = vor.u32 1.1754944e-38, %v1510_v34  ;;  %vm5638_vm6 = vmor %vm1489_vm14, %vm1490_vm15  ;;  %v5687_v35 = vld [vmem:[%s6832_s1 + $0x20] sm:$0xff] }
 0x42a   :  { %v1536_v33 = vmul.f32 %v4069_v36, %v1387_v52  ;;  %v1486_v13 = vsub.f32 1.0, %v1485_v6  ;;  %vm1509_vm5 = vcmp.eq.f32.partialorder %v1508_v41, 8.507059e+37  ;;  %vm5644_vm9 = vmor %vm1474_vm4, %vm1475_vm13  ;;  %vm1494_vm12 = vcmp.eq.f32.partialorder %v1493_v18, 8.507059e+37  ;;  %v5673_v6 = vld [vmem:[%s6832_s1 + $0x10] sm:$0xff]  ;;  %v3634_v39 = vld [vmem:[#allocation4 + $0x100] sm:$0xff]  }
 0x42b   :  { %v1471_v20 = vsub.f32 1.0, %v1470_v4  ;;  %v5708_v4 = vld [vmem:[%s6832_s1 + $0x38] sm:$0xff]  ;;  %v3636_v57 = vunpack.c.h.bf16 %v3634_v39 }
 0x42c   :  { %v4071_v5 = vpop.eup %4070  ;;  %v5608_v51 = vadd.f32 %v1536_v33, %v1532_v9  ;;  %v1487_v21 = vmul.f32 %v5576_v29, %v1486_v13  ;;  %v3635_v9 = vunpack.c.l.bf16 %v3634_v39 }
 0x42d   :  { %v4073_v38 = vpop.eup %4072  ;;  %v1468_v15 = vadd.f32 1.0, %v4071_v5  ;;  %v1472_v17 = vmul.f32 %v5587_v23, %v1471_v20  ;;  %v5714_v20 = vld [vmem:[#allocation4 + $0x110] sm:$0xff]  }
 0x42e   :  { %v1500_v14 = vmul.f32 %v4073_v38, %v5537_v1  ;;  %vm1505_vm11 = vweird.f32 %v4073_v38  ;;  %v1488_v24 = vadd.f32 %v5576_v29, %v1487_v21  ;;  %v3643_v21 = vunpack.c.l.bf16 %v5714_v20 }
 0x42f   :  { %4074 = vrcp.f32 %v1468_v15  ;;  %vm5622_vm2 = vmor %vm1504_vm1, %vm1505_vm11  ;;  %v1525_v50 = vand.u32 2147483648, %v1468_v15  ;;  %v1473_v16 = vadd.f32 %v5587_v23, %v1472_v17  ;;  %v1523_v1 = vand.u32 2147483647, %v1468_v15 }
 0x430   :  { %v1501_v48 = vsub.f32 1.0, %v1500_v14  ;;  %4076 = vtanh.f32 %v5603_v43  ;;  %vm1519_vm7 = vweird.f32 %v1468_v15  ;;  %v1492_v27 = vsel %vm5638_vm6, %v5576_v29, %v1488_v24 }
 0x431   :  { %4078 = vtanh.f32 %v5606_v46  ;;  %v1526_v37 = vor.u32 1.1754944e-38, %v1525_v50  ;;  %vm1524_vm10 = vcmp.eq.f32.partialorder %v1523_v1, 8.507059e+37  ;;  %v1477_v2 = vsel %vm5644_vm9, %v5587_v23, %v1473_v16  ;;  %v5666_v23 = vld [vmem:[%s6832_s1 + $0x8] sm:$0xff]  ;;  %v5719_v1 = vld [vmem:[#allocation4 + $0x120] sm:$0xff]  }
 0x432   :  { %v1502_v55 = vmul.f32 %v4073_v38, %v1501_v48  ;;  %4080 = vtanh.f32 %v5608_v51  ;;  %v1497_v62 = vsel %vm1494_vm12, %v1496_v3, %v1492_v27  ;;  %vm1479_vm11 = vcmp.eq.f32.partialorder %v1478_v22, 8.507059e+37  ;;  %v3789_v27 = vld [vmem:[#allocation4 + $0x108] sm:$0xff]  }
 0x433   :  { %4082 = vtanh.f32 %v5411_v12  ;;  %v1482_v29 = vsel %vm1479_vm11, %v1481_v63, %v1477_v2  ;;  %v3639_v63 = vunpack.c.l.bf16 %v3789_v27 }
 0x434   :  { %v1503_v45 = vadd.f32 %v4073_v38, %v1502_v55 }
 0x435   :  { %v4075_v0 = vpop.eup %4074 }
 0x436   :  { %v1515_v44 = vmul.f32 %v4075_v0, %v1468_v15  ;;  %v4077_v7 = vpop.eup %4076  ;;  %v1507_v10 = vsel %vm5622_vm2, %v4073_v38, %v1503_v45  ;;  %vm1520_vm3 = vweird.f32 %v4075_v0  ;;  %v5680_v38 = vld [vmem:[%s6832_s1 + $0x18] sm:$0xff]  ;;  %v5701_v15 = vld [vmem:[%s6832_s1 + $0x30] sm:$0xff] }
 0x437   :  { %v4079_v26 = vpop.eup %4078  ;;  %v1512_v11 = vsel %vm1509_vm5, %v1511_v28, %v1507_v10  ;;  %vm1521_vm8 = vmor %vm1519_vm7, %vm1520_vm3  ;;  %v1546_v52 = vmul.f32 %v4077_v7, %v1497_v62  ;;  %v3651_v28 = vunpack.c.l.bf16 %v5719_v1 }
 0x438   :  { %v1516_v60 = vsub.f32 1.0, %v1515_v44  ;;  %v4081_v47 = vpop.eup %4080  ;;  %v1547_v61 = vmul.f32 %v4079_v26, %v1512_v11 }
 0x439   :  { %v4083_v25 = vpop.eup %4082 }
 0x43a   :  { %v1517_v31 = vmul.f32 %v4075_v0, %v1516_v60  ;;  %v1545_v5 = vmul.f32 %v4083_v25, %v1482_v29 }
 0x43c   :  { %v1518_v19 = vadd.f32 %v4075_v0, %v1517_v31  ;;  %v1582_v49 = vpack.c.bf16 %v1546_v52, %v1545_v5 }
 0x43e   :  { %v1522_v53 = vsel %vm1521_vm8, %v4075_v0, %v1518_v19 }
 0x43f   :  { %v1527_v8 = vsel %vm1524_vm10, %v1526_v37, %v1522_v53 }
 0x440   :  { %v1548_v36 = vmul.f32 %v4081_v47, %v1527_v8 }
 0x442   :  { %v1583_v56 = vpack.c.bf16 %v1548_v36, %v1547_v61 }
 0x444   :  { %1590 = vmatpush.bf16.msrb.mxu0 %v1583_v56 }
 0x448   :  { %1591 = vmatpush.bf16.msrb.mxu0 %v1582_v49 }
 0x44b   :  { %3369 = vmatmul.msk.bf16.vlgmr.msrb.gmra.mxu0 %vm151_vm0, %v5659_v58 }
 0x45b   :  { %3370 = vmatmul.msk.bf16.gmra.mxu0 %vm151_vm0, %v5666_v23 }
 0x46b   :  { %3371 = vmatmul.msk.bf16.gmra.mxu0 %vm151_vm0, %v5673_v6 }
 0x47b   :  { %3372 = vmatmul.msk.bf16.gmra.mxu0 %vm151_vm0, %v5680_v38 }
 0x48b   :  { %3373 = vmatmul.msk.bf16.gmra.mxu0 %vm151_vm0, %v5687_v35 }
 0x49b   :  { %3374 = vmatmul.msk.bf16.gmra.mxu0 %vm151_vm0, %v5694_v42 }
 0x4ab   :  { %3375 = vmatmul.msk.bf16.gmra.mxu0 %vm151_vm0, %v5701_v15 }
 0x4bb   :  { %3376 = vmatmul.msk.bf16.gmra.mxu0 %vm151_vm0, %v5708_v4 }
 0x4c8   :  { %v1593_v32 = vpop.f32.mrf.mxu0 }
 0x4c9   :  { %v1633_v48 = vadd.f32 %v3635_v9, %v1593_v32  ;;  %v3640_v32 = vunpack.c.h.bf16 %v3789_v27  ;;  %v3791_v9 = vld [vmem:[#allocation4 + $0x118] sm:$0xff]  }
 0x4cb   :  { %v3377_v55 = vmul.f32 -1.442695, %v1633_v48 }
 0x4cd   :  { %4084 = vpow2.f32 %v3377_v55 }
 0x4d0   :  { %v1595_v33 = vpop.f32.mrf.mxu0 }
 0x4d1   :  { %v1634_v3 = vadd.f32 %v3636_v57, %v1595_v33 }
 0x4d3   :  { %v4085_v44 = vpop.eup %4084  ;;  %v3378_v36 = vmul.f32 -1.442695, %v1634_v3 }
 0x4d4   :  { %v1673_v41 = vadd.f32 1.0, %v4085_v44 }
 0x4d6   :  { %v1692_v53 = vand.u32 2147483648, %v1673_v41  ;;  %vm1686_vm2 = vweird.f32 %v1673_v41  ;;  %v1690_v2 = vand.u32 2147483647, %v1673_v41 }
 0x4d8   :  { %v1598_v14 = vpop.f32.mrf.mxu0  ;;  %v1693_v29 = vor.u32 1.1754944e-38, %v1692_v53  ;;  %vm1691_vm6 = vcmp.eq.f32.partialorder %v1690_v2, 8.507059e+37 }
 0x4d9   :  { %v1635_v5 = vadd.f32 %v3639_v63, %v1598_v14 }
 0x4db   :  { %v3379_v55 = vmul.f32 -1.442695, %v1635_v5 }
 0x4e0   :  { %v5712_v13 = vpop.f32.mrf.mxu0 }
 0x4e8   :  { %v1603_v0 = vpop.f32.mrf.mxu0 }
 0x4e9   :  { %v1637_v17 = vadd.f32 %v3643_v21, %v1603_v0  ;;  %v3644_v21 = vunpack.c.h.bf16 %v5714_v20  ;;  %v1636_v0 = vadd.f32 %v3640_v32, %v5712_v13 }
 0x4eb   :  { %v3381_v45 = vmul.f32 -1.442695, %v1637_v17  ;;  %v3647_v17 = vunpack.c.l.bf16 %v3791_v9 }
 0x4ed   :  { %4086 = vpow2.f32 %v3381_v45  ;;  %v3648_v45 = vunpack.c.h.bf16 %v3791_v9 }
 0x4ee   :  { %4088 = vrcp.f32 %v1673_v41 }
 0x4f0   :  { %v5717_v34 = vpop.f32.mrf.mxu0 }
 0x4f1   :  { %v1638_v14 = vadd.f32 %v3644_v21, %v5717_v34 }
 0x4f3   :  { %v4087_v60 = vpop.eup %4086 }
 0x4f4   :  { %v1677_v24 = vadd.f32 1.0, %v4087_v60  ;;  %v4089_v50 = vpop.eup %4088  ;;  %v3380_v60 = vmul.f32 -1.442695, %v1636_v0  ;;  %v3793_v0 = vld [vmem:[#allocation4 + $0x128] sm:$0xff]  }
 0x4f5   :  { %v1682_v59 = vmul.f32 %v4089_v50, %v1673_v41  ;;  %vm1687_vm15 = vweird.f32 %v4089_v50 }
 0x4f6   :  { %4090 = vrcp.f32 %v1677_v24  ;;  %v1752_v19 = vand.u32 2147483648, %v1677_v24  ;;  %vm1746_vm14 = vweird.f32 %v1677_v24  ;;  %v1750_v37 = vand.u32 2147483647, %v1677_v24  ;;  %vm1688_vm3 = vmor %vm1686_vm2, %vm1687_vm15 }
 0x4f7   :  { %v1683_v31 = vsub.f32 1.0, %v1682_v59 }
 0x4f8   :  { %v1608_v40 = vpop.f32.mrf.mxu0  ;;  %v1753_v62 = vor.u32 1.1754944e-38, %v1752_v19  ;;  %vm1751_vm4 = vcmp.eq.f32.partialorder %v1750_v37, 8.507059e+37 }
 0x4f9   :  { %v1684_v22 = vmul.f32 %v4089_v50, %v1683_v31 }
 0x4fb   :  { %v1685_v11 = vadd.f32 %v4089_v50, %v1684_v22 }
 0x4fc   :  { %v4091_v16 = vpop.eup %4090 }
 0x4fd   :  { %v1742_v18 = vmul.f32 %v4091_v16, %v1677_v24  ;;  %vm1747_vm13 = vweird.f32 %v4091_v16  ;;  %v1689_v61 = vsel %vm1688_vm3, %v4089_v50, %v1685_v11 }
 0x4fe   :  { %vm1748_vm1 = vmor %vm1746_vm14, %vm1747_vm13  ;;  %v1694_v49 = vsel %vm1691_vm6, %v1693_v29, %v1689_v61  ;;  %v5763_v29 = vld [vmem:[#allocation4 + $0x138] sm:$0xff]  }
 0x4ff   :  { %v1743_v7 = vsub.f32 1.0, %v1742_v18  ;;  %v3663_v9 = vunpack.c.l.bf16 %v5763_v29 }
 0x500   :  { %v1610_v10 = vpop.f32.mrf.mxu0 }
 0x501   :  { %v1744_v26 = vmul.f32 %v4091_v16, %v1743_v7  ;;  %v1640_v24 = vadd.f32 %v3648_v45, %v1610_v10 }
 0x503   :  { %v1745_v47 = vadd.f32 %v4091_v16, %v1744_v26  ;;  %v3384_v20 = vmul.f32 -1.442695, %v1640_v24  ;;  %v3794_v26 = vld [vmem:[#allocation4 + $0x130] sm:$0xff]  }
 0x504   :  { %v3659_v19 = vunpack.c.l.bf16 %v3794_v26  ;;  %v3660_v37 = vunpack.c.h.bf16 %v3794_v26 }
 0x505   :  { %v1749_v8 = vsel %vm1748_vm1, %v4091_v16, %v1745_v47  ;;  %v3382_v16 = vmul.f32 -1.442695, %v1638_v14 }
 0x506   :  { %v1754_v56 = vsel %vm1751_vm4, %v1753_v62, %v1749_v8 }
 0x507   :  { %v1881_v33 = vmul.f32 %v1754_v56, %v5411_v12  ;;  %v1639_v12 = vadd.f32 %v3647_v17, %v1608_v40 }
 0x508   :  { %v1613_v54 = vpop.f32.mrf.mxu0 }
 0x509   :  { %v1641_v30 = vadd.f32 %v3651_v28, %v1613_v54  ;;  %v3383_v18 = vmul.f32 -1.442695, %v1639_v12  ;;  %v3652_v12 = vunpack.c.h.bf16 %v5719_v1 }
 0x50b   :  { %4092 = vtanh.f32 %v1641_v30 }
 0x50c   :  { %4094 = vpow2.f32 %v3378_v36 }
 0x50d   :  { %4096 = vpow2.f32 %v3379_v55 }
 0x50e   :  { %4098 = vpow2.f32 %v3380_v60 }
 0x510   :  { %v5722_v52 = vpop.f32.mrf.mxu0 }
 0x511   :  { %v4093_v25 = vpop.eup %4092 }
 0x512   :  { %v1885_v39 = vmul.f32 %v4093_v25, %v1694_v49  ;;  %v4095_v41 = vpop.eup %4094 }
 0x513   :  { %v5732_v50 = vadd.f32 1.0, %v4095_v41  ;;  %v4097_v59 = vpop.eup %4096 }
 0x514   :  { %v5725_v48 = vadd.f32 %v1885_v39, %v1881_v33  ;;  %v5737_v7 = vadd.f32 1.0, %v4097_v59  ;;  %v4099_v34 = vpop.eup %4098 }
 0x515   :  { %4100 = vrcp.f32 %v5732_v50  ;;  %v5742_v10 = vadd.f32 1.0, %v4099_v34  ;;  %v1705_v32 = vand.u32 2147483647, %v5732_v50  ;;  %v1707_v39 = vand.u32 2147483648, %v5732_v50 }
 0x516   :  { %4102 = vpow2.f32 %v3382_v16  ;;  %v1722_v17 = vand.u32 2147483648, %v5737_v7  ;;  %vm1701_vm7 = vweird.f32 %v5732_v50  ;;  %vm1716_vm10 = vweird.f32 %v5737_v7 }
 0x517   :  { %4104 = vpow2.f32 %v3383_v18  ;;  %vm5786_vm9 = vcmp.eq.f32.partialorder %v1705_v32, 8.507059e+37  ;;  %v1720_v1 = vand.u32 2147483647, %v5737_v7  ;;  %vm1731_vm13 = vweird.f32 %v5742_v10 }
 0x518   :  { %v5729_v44 = vpop.f32.mrf.mxu0  ;;  %4106 = vpow2.f32 %v3384_v20  ;;  %v3655_v20 = vunpack.c.l.bf16 %v3793_v0  ;;  %v5801_v26 = vor.u32 1.1754944e-38, %v1722_v17 }
 0x519   :  { %4108 = vrcp.f32 %v5737_v7  ;;  %vm5834_vm14 = vcmp.eq.f32.partialorder %v1720_v1, 8.507059e+37 }
 0x51a   :  { %4110 = vrcp.f32 %v5742_v10 }
 0x51b   :  { %v5739_v31 = vpop.eup %4100 }
 0x51c   :  { %v4103_v40 = vpop.eup %4102  ;;  %v1697_v54 = vmul.f32 %v5739_v31, %v5732_v50  ;;  %vm1702_vm5 = vweird.f32 %v5739_v31  ;;  %v1708_v50 = vor.u32 1.1754944e-38, %v1707_v39 }
 0x51d   :  { %v4105_v28 = vpop.eup %4104  ;;  %v5746_v47 = vadd.f32 1.0, %v4103_v40  ;;  %vm5792_vm8 = vmor %vm1701_vm7, %vm1702_vm5 }
 0x51e   :  { %v4107_v57 = vpop.eup %4106  ;;  %v5749_v30 = vadd.f32 1.0, %v4105_v28  ;;  %v1698_v3 = vsub.f32 1.0, %v1697_v54 }
 0x51f   :  { %v5751_v27 = vpop.eup %4108  ;;  %v5753_v11 = vadd.f32 1.0, %v4107_v57  ;;  %4112 = vrcp.f32 %v5746_v47  ;;  %vm1761_vm1 = vweird.f32 %v5746_v47  ;;  %v1767_v17 = vand.u32 2147483648, %v5746_v47 }
 0x520   :  { %v5735_v13 = vpop.f32.mrf.mxu0  ;;  %v1712_v2 = vmul.f32 %v5751_v27, %v5737_v7  ;;  %4114 = vrcp.f32 %v5749_v30  ;;  %v5760_v63 = vpop.eup %4110  ;;  %v1699_v61 = vmul.f32 %v5739_v31, %v1698_v3  ;;  %vm1717_vm12 = vweird.f32 %v5751_v27 }
 0x521   :  { %4116 = vrcp.f32 %v5753_v11  ;;  %v1727_v49 = vmul.f32 %v5760_v63, %v5742_v10  ;;  %v1642_v3 = vadd.f32 %v3652_v12, %v5722_v52  ;;  %vm5817_vm11 = vmor %vm1716_vm10, %vm1717_vm12  ;;  %v1735_v52 = vand.u32 2147483647, %v5742_v10 }
 0x522   :  { %v1713_v56 = vsub.f32 1.0, %v1712_v2  ;;  %v1700_v21 = vadd.f32 %v5739_v31, %v1699_v61  ;;  %vm1732_vm15 = vweird.f32 %v5760_v63  ;;  %v1782_v24 = vand.u32 2147483648, %v5749_v30 }
 0x523   :  { %v1728_v14 = vsub.f32 1.0, %v1727_v49  ;;  %vm5858_vm4 = vmor %vm1731_vm13, %vm1732_vm15  ;;  %vm1776_vm5 = vweird.f32 %v5749_v30  ;;  %vm1736_vm10 = vcmp.eq.f32.partialorder %v1735_v52, 8.507059e+37 }
 0x524   :  { %v1714_v41 = vmul.f32 %v5751_v27, %v1713_v56  ;;  %v1704_v40 = vsel %vm5792_vm8, %v5739_v31, %v1700_v21  ;;  %vm1791_vm8 = vweird.f32 %v5753_v11 }
 0x525   :  { %v5765_v5 = vpop.eup %4112  ;;  %v1729_v31 = vmul.f32 %v5760_v63, %v1728_v14  ;;  %v5813_v61 = vsel %vm5786_vm9, %v1708_v50, %v1704_v40  ;;  %v1797_v50 = vand.u32 2147483648, %v5753_v11 }
 0x526   :  { %v5770_v33 = vpop.eup %4114  ;;  %v1757_v45 = vmul.f32 %v5765_v5, %v5746_v47  ;;  %v5804_v57 = vadd.f32 %v5751_v27, %v1714_v41  ;;  %vm1762_vm2 = vweird.f32 %v5765_v5 }
 0x527   :  { %v5774_v55 = vpop.eup %4116  ;;  %v1772_v60 = vmul.f32 %v5770_v33, %v5749_v30  ;;  %vm1777_vm3 = vweird.f32 %v5770_v33  ;;  %vm5870_vm7 = vmor %vm1761_vm1, %vm1762_vm2 }
 0x528   :  { %v1623_v22 = vpop.f32.mrf.mxu0  ;;  %v1787_v18 = vmul.f32 %v5774_v55, %v5753_v11  ;;  %vm1792_vm6 = vweird.f32 %v5774_v55  ;;  %vm5878_vm9 = vmor %vm1776_vm5, %vm1777_vm3 }
 0x529   :  { %v1645_v53 = vadd.f32 %v3659_v19, %v1623_v22  ;;  %v1758_v22 = vsub.f32 1.0, %v1757_v45  ;;  %v1765_v45 = vand.u32 2147483647, %v5746_v47  ;;  %vm5897_vm12 = vmor %vm1791_vm8, %vm1792_vm6 }
 0x52a   :  { %v1788_v2 = vsub.f32 1.0, %v1787_v18 }
 0x52b   :  { %v3385_v36 = vmul.f32 -1.442695, %v1645_v53  ;;  %v3656_v53 = vunpack.c.h.bf16 %v3793_v0 }
 0x52c   :  { %v1789_v21 = vmul.f32 %v5774_v55, %v1788_v2 }
 0x52d   :  { %v1644_v39 = vadd.f32 %v3656_v53, %v5735_v13 }
 0x52e   :  { %v1790_v18 = vadd.f32 %v5774_v55, %v1789_v21 }
 0x530   :  { %v1625_v8 = vpop.f32.mrf.mxu0 }
 0x531   :  { %v1646_v62 = vadd.f32 %v3660_v37, %v1625_v8  ;;  %v1773_v37 = vsub.f32 1.0, %v1772_v60  ;;  %v1643_v8 = vadd.f32 %v3655_v20, %v5729_v44  ;;  %v1759_v44 = vmul.f32 %v5765_v5, %v1758_v22 }
 0x532   :  { %v1780_v20 = vand.u32 2147483647, %v5749_v30  ;;  %v1795_v30 = vand.u32 2147483647, %v5753_v11  ;;  %v1768_v22 = vor.u32 1.1754944e-38, %v1767_v17 }
 0x533   :  { %v3386_v25 = vmul.f32 -1.442695, %v1646_v62  ;;  %v3664_v62 = vunpack.c.h.bf16 %v5763_v29  ;;  %v1719_v29 = vsel %vm5817_vm11, %v5751_v27, %v5804_v57  ;;  %v1774_v49 = vmul.f32 %v5770_v33, %v1773_v37 }
 0x534   :  { %v1730_v27 = vadd.f32 %v5760_v63, %v1729_v31  ;;  %v1760_v13 = vadd.f32 %v5765_v5, %v1759_v44  ;;  %vm1766_vm11 = vcmp.eq.f32.partialorder %v1765_v45, 8.507059e+37  ;;  %v1724_v11 = vsel %vm5834_vm14, %v5801_v26, %v1719_v29 }
 0x535   :  { %4118 = vpow2.f32 %v3386_v25  ;;  %v1737_v25 = vand.u32 2147483648, %v5742_v10  ;;  %v1775_v60 = vadd.f32 %v5770_v33, %v1774_v49  ;;  %vm1781_vm13 = vcmp.eq.f32.partialorder %v1780_v20, 8.507059e+37 }
 0x536   :  { %4120 = vpow2.f32 %v3385_v36  ;;  %v1764_v47 = vsel %vm5870_vm7, %v5765_v5, %v1760_v13  ;;  %v1734_v1 = vsel %vm5858_vm4, %v5760_v63, %v1730_v27  ;;  %v1783_v63 = vor.u32 1.1754944e-38, %v1782_v24 }
 0x537   :  { %v1779_v57 = vsel %vm5878_vm9, %v5770_v33, %v1775_v60  ;;  %v1794_v33 = vsel %vm5897_vm12, %v5774_v55, %v1790_v18  ;;  %v1798_v31 = vor.u32 1.1754944e-38, %v1797_v50  ;;  %vm1796_vm15 = vcmp.eq.f32.partialorder %v1795_v30, 8.507059e+37 }
 0x538   :  { %v1628_v16 = vpop.f32.mrf.mxu0 }
 0x539   :  { %v1647_v34 = vadd.f32 %v3663_v9, %v1628_v16  ;;  %v1799_v26 = vsel %vm1796_vm15, %v1798_v31, %v1794_v33 }
 0x53b   :  { %v4119_v28 = vpop.eup %4118  ;;  %v3387_v54 = vmul.f32 -1.442695, %v1647_v34 }
 0x53c   :  { %v4121_v19 = vpop.eup %4120  ;;  %v5823_v56 = vadd.f32 1.0, %v4119_v28 }
 0x53d   :  { %4122 = vpow2.f32 %v3387_v54  ;;  %v5831_v7 = vadd.f32 1.0, %v4121_v19  ;;  %v1738_v54 = vor.u32 1.1754944e-38, %v1737_v25 }
 0x53e   :  { %4124 = vtanh.f32 %v1642_v3  ;;  %v1769_v3 = vsel %vm1766_vm11, %v1768_v22, %v1764_v47  ;;  %vm1841_vm2 = vweird.f32 %v5823_v56  ;;  %v1845_v20 = vand.u32 2147483647, %v5823_v56 }
 0x53f   :  { %4126 = vtanh.f32 %v1643_v8  ;;  %v1739_v53 = vsel %vm1736_vm10, %v1738_v54, %v1734_v1  ;;  %v1882_v25 = vmul.f32 %v1769_v3, %v5603_v43  ;;  %vm1826_vm7 = vweird.f32 %v5831_v7 }
 0x540   :  { %v1630_v9 = vpop.f32.mrf.mxu0  ;;  %4128 = vrcp.f32 %v5823_v56  ;;  %v1832_v54 = vand.u32 2147483648, %v5831_v7  ;;  %vm1846_vm15 = vcmp.eq.f32.partialorder %v1845_v20, 8.507059e+37 }
 0x541   :  { %v1648_v0 = vadd.f32 %v3664_v62, %v1630_v9  ;;  %4130 = vrcp.f32 %v5831_v7  ;;  %v1784_v62 = vsel %vm1781_vm13, %v1783_v63, %v1779_v57  ;;  %v1884_v9 = vmul.f32 %v1799_v26, %v5608_v51 }
 0x542   :  { %4132 = vtanh.f32 %v1644_v39  ;;  %v1883_v39 = vmul.f32 %v1784_v62, %v5606_v46  ;;  %v1830_v57 = vand.u32 2147483647, %v5831_v7 }
 0x543   :  { %v4123_v41 = vpop.eup %4122  ;;  %v3388_v14 = vmul.f32 -1.442695, %v1648_v0 }
 0x544   :  { %v5851_v12 = vadd.f32 1.0, %v4123_v41  ;;  %v4125_v59 = vpop.eup %4124 }
 0x545   :  { %4134 = vpow2.f32 %v3388_v14  ;;  %v4127_v34 = vpop.eup %4126  ;;  %v1886_v8 = vmul.f32 %v4125_v59, %v5813_v61 }
 0x546   :  { %4136 = vrcp.f32 %v5851_v12  ;;  %v5890_v28 = vpop.eup %4128  ;;  %v1887_v44 = vmul.f32 %v4127_v34, %v1724_v11  ;;  %v1862_v60 = vand.u32 2147483648, %v5851_v12  ;;  %vm1856_vm4 = vweird.f32 %v5851_v12 }
 0x547   :  { %v5901_v5 = vpop.eup %4130  ;;  %v1837_v36 = vmul.f32 %v5890_v28, %v5823_v56  ;;  %v5917_v61 = vadd.f32 %v1886_v8, %v1882_v25  ;;  %vm1842_vm3 = vweird.f32 %v5890_v28  ;;  %v1860_v24 = vand.u32 2147483647, %v5851_v12 }
 0x548   :  { %v4133_v37 = vpop.eup %4132  ;;  %v1822_v55 = vmul.f32 %v5901_v5, %v5831_v7  ;;  %v5920_v0 = vadd.f32 %v1887_v44, %v1883_v39  ;;  %vm1827_vm1 = vweird.f32 %v5901_v5  ;;  %v1847_v34 = vand.u32 2147483648, %v5823_v56  ;;  %vm5952_vm9 = vmor %vm1841_vm2, %vm1842_vm3  ;;  %v3797_v39 = vld [vmem:[#allocation4 + $0x150] sm:$0xff]  }
 0x549   :  { %v1888_v49 = vmul.f32 %v4133_v37, %v1739_v53  ;;  %v1838_v27 = vsub.f32 1.0, %v1837_v36  ;;  %v1863_v22 = vor.u32 1.1754944e-38, %v1862_v60  ;;  %vm1861_vm8 = vcmp.eq.f32.partialorder %v1860_v24, 8.507059e+37  ;;  %vm5958_vm12 = vmor %vm1826_vm7, %vm1827_vm1 }
 0x54a   :  { %v1823_v17 = vsub.f32 1.0, %v1822_v55  ;;  %v1848_v3 = vor.u32 1.1754944e-38, %v1847_v34  ;;  %v1833_v8 = vor.u32 1.1754944e-38, %v1832_v54 }
 0x54b   :  { %v4135_v2 = vpop.eup %4134  ;;  %v5922_v45 = vadd.f32 %v1888_v49, %v1884_v9  ;;  %v1839_v43 = vmul.f32 %v5890_v28, %v1838_v27 }
 0x54c   :  { %v4137_v52 = vpop.eup %4136  ;;  %v1820_v29 = vadd.f32 1.0, %v4135_v2  ;;  %v1824_v46 = vmul.f32 %v5901_v5, %v1823_v17 }
 0x54d   :  { %v1852_v32 = vmul.f32 %v4137_v52, %v5851_v12  ;;  %vm1857_vm14 = vweird.f32 %v4137_v52  ;;  %v1840_v18 = vadd.f32 %v5890_v28, %v1839_v43  ;;  %v3676_v43 = vunpack.c.h.bf16 %v3797_v39 }
 0x54e   :  { %4138 = vrcp.f32 %v1820_v29  ;;  %vm5936_vm6 = vmor %vm1856_vm4, %vm1857_vm14  ;;  %v1877_v50 = vand.u32 2147483648, %v1820_v29  ;;  %v1825_v10 = vadd.f32 %v5901_v5, %v1824_v46  ;;  %v1875_v12 = vand.u32 2147483647, %v1820_v29 }
 0x54f   :  { %v1853_v21 = vsub.f32 1.0, %v1852_v32  ;;  %4140 = vtanh.f32 %v5917_v61  ;;  %vm1871_vm10 = vweird.f32 %v1820_v29  ;;  %v1844_v7 = vsel %vm5952_vm9, %v5890_v28, %v1840_v18 }
 0x550   :  { %4142 = vtanh.f32 %v5920_v0  ;;  %v1878_v56 = vor.u32 1.1754944e-38, %v1877_v50  ;;  %vm1876_vm13 = vcmp.eq.f32.partialorder %v1875_v12, 8.507059e+37  ;;  %v1829_v31 = vsel %vm5958_vm12, %v5901_v5, %v1825_v10  ;;  %v3666_v5 = vld [vmem:[#allocation4 + $0x140] sm:$0xff]  }
 0x551   :  { %v1854_v41 = vmul.f32 %v4137_v52, %v1853_v21  ;;  %4144 = vtanh.f32 %v5922_v45  ;;  %v1849_v62 = vsel %vm1846_vm15, %v1848_v3, %v1844_v7  ;;  %vm1831_vm14 = vcmp.eq.f32.partialorder %v1830_v57, 8.507059e+37  ;;  %v3799_v57 = vld [vmem:[#allocation4 + $0x160] sm:$0xff]  }
 0x552   :  { %4146 = vtanh.f32 %v5725_v48  ;;  %v1834_v28 = vsel %vm1831_vm14, %v1833_v8, %v1829_v31  ;;  %v3668_v9 = vunpack.c.h.bf16 %v3666_v5  ;;  %v3675_v21 = vunpack.c.l.bf16 %v3797_v39 }
 0x553   :  { %v1855_v14 = vadd.f32 %v4137_v52, %v1854_v41  ;;  %v3683_v33 = vunpack.c.l.bf16 %v3799_v57 }
 0x554   :  { %v4139_v13 = vpop.eup %4138 }
 0x555   :  { %v1867_v51 = vmul.f32 %v4139_v13, %v1820_v29  ;;  %v4141_v40 = vpop.eup %4140  ;;  %v1859_v47 = vsel %vm5936_vm6, %v4137_v52, %v1855_v14  ;;  %vm1872_vm5 = vweird.f32 %v4139_v13 }
 0x556   :  { %v4143_v30 = vpop.eup %4142  ;;  %v1864_v37 = vsel %vm1861_vm8, %v1863_v22, %v1859_v47  ;;  %vm1873_vm11 = vmor %vm1871_vm10, %vm1872_vm5  ;;  %v1898_v26 = vmul.f32 %v4141_v40, %v1849_v62 }
 0x557   :  { %v1868_v16 = vsub.f32 1.0, %v1867_v51  ;;  %v4145_v63 = vpop.eup %4144  ;;  %v1899_v36 = vmul.f32 %v4143_v30, %v1864_v37 }
 0x558   :  { %v4147_v29 = vpop.eup %4146 }
 0x559   :  { %v1869_v1 = vmul.f32 %v4139_v13, %v1868_v16  ;;  %v1897_v55 = vmul.f32 %v4147_v29, %v1834_v28  ;;  %v3802_v29 = vld [vmem:[#allocation4 + $0x178] sm:$0xff]  }
 0x55b   :  { %v1870_v11 = vadd.f32 %v4139_v13, %v1869_v1  ;;  %v1934_v25 = vpack.c.bf16 %v1898_v26, %v1897_v55  ;;  %v3684_v55 = vunpack.c.h.bf16 %v3799_v57 }
 0x55d   :  { %v1874_v53 = vsel %vm1873_vm11, %v4139_v13, %v1870_v11 }
 0x55e   :  { %v1879_v2 = vsel %vm1876_vm13, %v1878_v56, %v1874_v53 }
 0x55f   :  { %v1900_v52 = vmul.f32 %v4145_v63, %v1879_v2 }
 0x561   :  { %v1935_v44 = vpack.c.bf16 %v1900_v52, %v1899_v36 }
 0x563   :  { %1942 = vmatpush.bf16.msrb.mxu1 %v1935_v44 }
 0x567   :  { %1943 = vmatpush.bf16.msrb.mxu1 %v1934_v25 }
 0x56a   :  { %3389 = vmatmul.msk.bf16.vlgmr.msrb.gmra.mxu1 %vm151_vm0, %v5659_v58 }
 0x57a   :  { %3390 = vmatmul.msk.bf16.gmra.mxu1 %vm151_vm0, %v5666_v23 }
 0x58a   :  { %3391 = vmatmul.msk.bf16.gmra.mxu1 %vm151_vm0, %v5673_v6  ;;  %v3667_v6 = vunpack.c.l.bf16 %v3666_v5 }
 0x59a   :  { %3392 = vmatmul.msk.bf16.gmra.mxu1 %vm151_vm0, %v5680_v38 }
 0x5aa   :  { %3393 = vmatmul.msk.bf16.gmra.mxu1 %vm151_vm0, %v5687_v35 }
 0x5ba   :  { %3394 = vmatmul.msk.bf16.gmra.mxu1 %vm151_vm0, %v5694_v42 }
 0x5ca   :  { %3395 = vmatmul.msk.bf16.gmra.mxu1 %vm151_vm0, %v5701_v15 }
 0x5da   :  { %3396 = vmatmul.msk.bf16.gmra.mxu1 %vm151_vm0, %v5708_v4 }
 0x5e7   :  { %v1945_v58 = vpop.f32.mrf.mxu1 }
 0x5e8   :  { %v1985_v32 = vadd.f32 %v3667_v6, %v1945_v58  ;;  %v3796_v6 = vld [vmem:[#allocation4 + $0x148] sm:$0xff]  }
 0x5ea   :  { %v3397_v35 = vmul.f32 -1.442695, %v1985_v32 }
 0x5ec   :  { %4148 = vpow2.f32 %v3397_v35 }
 0x5ef   :  { %v1947_v23 = vpop.f32.mrf.mxu1 }
 0x5f0   :  { %v1986_v42 = vadd.f32 %v3668_v9, %v1947_v23 }
 0x5f2   :  { %v3398_v17 = vmul.f32 -1.442695, %v1986_v42  ;;  %v4149_v4 = vpop.eup %4148 }
 0x5f3   :  { %v2025_v13 = vadd.f32 1.0, %v4149_v4  ;;  %v3671_v4 = vunpack.c.l.bf16 %v3796_v6 }
 0x5f5   :  { %v2044_v36 = vand.u32 2147483648, %v2025_v13  ;;  %vm2038_vm6 = vweird.f32 %v2025_v13  ;;  %v2042_v28 = vand.u32 2147483647, %v2025_v13 }
 0x5f7   :  { %v5986_v49 = vpop.f32.mrf.mxu1  ;;  %v2045_v23 = vor.u32 1.1754944e-38, %v2044_v36  ;;  %vm2043_vm8 = vcmp.eq.f32.partialorder %v2042_v28, 8.507059e+37 }
 0x5ff   :  { %v5988_v38 = vpop.f32.mrf.mxu1 }
 0x607   :  { %v1955_v27 = vpop.f32.mrf.mxu1 }
 0x608   :  { %v1989_v15 = vadd.f32 %v3675_v21, %v1955_v27 }
 0x60a   :  { %v3401_v41 = vmul.f32 -1.442695, %v1989_v15 }
 0x60c   :  { %4150 = vpow2.f32 %v3401_v41 }
 0x60d   :  { %4152 = vpow2.f32 %v3398_v17 }
 0x60e   :  { %4154 = vrcp.f32 %v2025_v13 }
 0x60f   :  { %v1957_v46 = vpop.f32.mrf.mxu1 }
 0x610   :  { %v1990_v14 = vadd.f32 %v3676_v43, %v1957_v46 }
 0x612   :  { %v4151_v51 = vpop.eup %4150  ;;  %v3402_v60 = vmul.f32 -1.442695, %v1990_v14 }
 0x613   :  { %v2029_v24 = vadd.f32 1.0, %v4151_v51  ;;  %v4153_v16 = vpop.eup %4152 }
 0x614   :  { %4156 = vpow2.f32 %v3402_v60  ;;  %v5990_v18 = vadd.f32 1.0, %v4153_v16  ;;  %v4155_v50 = vpop.eup %4154  ;;  %v3672_v60 = vunpack.c.h.bf16 %v3796_v6 }
 0x615   :  { %4158 = vrcp.f32 %v2029_v24  ;;  %v2034_v47 = vmul.f32 %v4155_v50, %v2025_v13  ;;  %v2104_v31 = vand.u32 2147483648, %v2029_v24  ;;  %vm2098_vm2 = vweird.f32 %v2029_v24  ;;  %v3798_v13 = vld [vmem:[#allocation4 + $0x158] sm:$0xff]  }
 0x616   :  { %4160 = vrcp.f32 %v5990_v18  ;;  %vm2039_vm3 = vweird.f32 %v4155_v50  ;;  %v2102_v62 = vand.u32 2147483647, %v2029_v24  ;;  %v2059_v46 = vand.u32 2147483648, %v5990_v18 }
 0x617   :  { %v5992_v59 = vpop.f32.mrf.mxu1  ;;  %v2035_v22 = vsub.f32 1.0, %v2034_v47  ;;  %v2105_v26 = vor.u32 1.1754944e-38, %v2104_v31  ;;  %vm6009_vm5 = vmor %vm2038_vm6, %vm2039_vm3  ;;  %vm2053_vm13 = vweird.f32 %v5990_v18  ;;  %v3679_v16 = vunpack.c.l.bf16 %v3798_v13 }
 0x618   :  { %vm2103_vm7 = vcmp.eq.f32.partialorder %v2102_v62, 8.507059e+37 }
 0x619   :  { %v2036_v7 = vmul.f32 %v4155_v50, %v2035_v22  ;;  %v1991_v57 = vadd.f32 %v3679_v16, %v5992_v59 }
 0x61a   :  { %v4157_v10 = vpop.eup %4156 }
 0x61b   :  { %v4159_v20 = vpop.eup %4158  ;;  %v5995_v34 = vadd.f32 1.0, %v4157_v10  ;;  %v2037_v8 = vadd.f32 %v4155_v50, %v2036_v7  ;;  %v3680_v10 = vunpack.c.h.bf16 %v3798_v13  ;;  %v3403_v7 = vmul.f32 -1.442695, %v1991_v57 }
 0x61c   :  { %v2094_v40 = vmul.f32 %v4159_v20, %v2029_v24  ;;  %v6000_v30 = vpop.eup %4160  ;;  %vm2099_vm1 = vweird.f32 %v4159_v20 }
 0x61d   :  { %4162 = vrcp.f32 %v5995_v34  ;;  %v2049_v63 = vmul.f32 %v6000_v30, %v5990_v18  ;;  %vm2100_vm4 = vmor %vm2098_vm2, %vm2099_vm1  ;;  %v2041_v58 = vsel %vm6009_vm5, %v4155_v50, %v2037_v8  ;;  %vm2054_vm10 = vweird.f32 %v6000_v30 }
 0x61e   :  { %v2095_v1 = vsub.f32 1.0, %v2094_v40  ;;  %v2119_v9 = vand.u32 2147483648, %v5995_v34  ;;  %v2046_v21 = vsel %vm2043_vm8, %v2045_v23, %v2041_v58  ;;  %vm2113_vm12 = vweird.f32 %v5995_v34  ;;  %vm2055_vm15 = vmor %vm2053_vm13, %vm2054_vm10 }
 0x61f   :  { %v5998_v12 = vpop.f32.mrf.mxu1  ;;  %v2050_v53 = vsub.f32 1.0, %v2049_v63  ;;  %v2117_v41 = vand.u32 2147483647, %v5995_v34  ;;  %v1987_v40 = vadd.f32 %v3671_v4, %v5986_v49 }
 0x620   :  { %v2096_v19 = vmul.f32 %v4159_v20, %v2095_v1  ;;  %v2120_v24 = vor.u32 1.1754944e-38, %v2119_v9  ;;  %v1988_v1 = vadd.f32 %v3672_v60, %v5988_v38 }
 0x621   :  { %v2051_v25 = vmul.f32 %v6000_v30, %v2050_v53  ;;  %vm2118_vm14 = vcmp.eq.f32.partialorder %v2117_v41, 8.507059e+37  ;;  %v3399_v63 = vmul.f32 -1.442695, %v1987_v40 }
 0x622   :  { %v2097_v3 = vadd.f32 %v4159_v20, %v2096_v19 }
 0x623   :  { %v6002_v54 = vpop.eup %4162  ;;  %v2052_v27 = vadd.f32 %v6000_v30, %v2051_v25 }
 0x624   :  { %v2109_v11 = vmul.f32 %v6002_v54, %v5995_v34  ;;  %v2101_v44 = vsel %vm2100_vm4, %v4159_v20, %v2097_v3  ;;  %vm2114_vm9 = vweird.f32 %v6002_v54  ;;  %v2060_v20 = vor.u32 1.1754944e-38, %v2059_v46  ;;  %v3801_v3 = vld [vmem:[#allocation4 + $0x170] sm:$0xff]  }
 0x625   :  { %v2106_v5 = vsel %vm2103_vm7, %v2105_v26, %v2101_v44  ;;  %vm6026_vm11 = vmor %vm2113_vm12, %vm2114_vm9  ;;  %v2056_v50 = vsel %vm2055_vm15, %v6000_v30, %v2052_v27  ;;  %v1992_v30 = vadd.f32 %v3680_v10, %v5998_v12  ;;  %v3692_v36 = vunpack.c.h.bf16 %v3801_v3 }
 0x626   :  { %v2110_v37 = vsub.f32 1.0, %v2109_v11  ;;  %v2233_v15 = vmul.f32 %v2106_v5, %v5725_v48  ;;  %v2057_v48 = vand.u32 2147483647, %v5990_v18  ;;  %v3695_v5 = vunpack.c.l.bf16 %v3802_v29 }
 0x627   :  { %v1965_v56 = vpop.f32.mrf.mxu1  ;;  %v3404_v49 = vmul.f32 -1.442695, %v1992_v30 }
 0x628   :  { %v1993_v2 = vadd.f32 %v3683_v33, %v1965_v56  ;;  %v2111_v52 = vmul.f32 %v6002_v54, %v2110_v37  ;;  %vm2058_vm1 = vcmp.eq.f32.partialorder %v2057_v48, 8.507059e+37  ;;  %v3400_v33 = vmul.f32 -1.442695, %v1988_v1 }
 0x629   :  { %v2061_v22 = vsel %vm2058_vm1, %v2060_v20, %v2056_v50 }
 0x62a   :  { %4164 = vtanh.f32 %v1993_v2  ;;  %v2112_v39 = vadd.f32 %v6002_v54, %v2111_v52  ;;  %v3691_v2 = vunpack.c.l.bf16 %v3801_v3 }
 0x62c   :  { %v2116_v51 = vsel %vm6026_vm11, %v6002_v54, %v2112_v39  ;;  %v3800_v39 = vld [vmem:[#allocation4 + $0x168] sm:$0xff]  }
 0x62d   :  { %v2121_v34 = vsel %vm2118_vm14, %v2120_v24, %v2116_v51  ;;  %v3687_v27 = vunpack.c.l.bf16 %v3800_v39  ;;  %v3688_v48 = vunpack.c.h.bf16 %v3800_v39  ;;  %v3696_v24 = vunpack.c.h.bf16 %v3802_v29 }
 0x62e   :  { %v2234_v54 = vmul.f32 %v2121_v34, %v5917_v61 }
 0x62f   :  { %v1967_v32 = vpop.f32.mrf.mxu1 }
 0x630   :  { %v4165_v35 = vpop.eup %4164  ;;  %v1994_v42 = vadd.f32 %v3684_v55, %v1967_v32 }
 0x631   :  { %v2237_v17 = vmul.f32 %v4165_v35, %v2046_v21 }
 0x632   :  { %4166 = vtanh.f32 %v1994_v42 }
 0x633   :  { %v6031_v14 = vadd.f32 %v2237_v17, %v2233_v15  ;;  %4168 = vpow2.f32 %v3399_v63 }
 0x634   :  { %4170 = vpow2.f32 %v3400_v33 }
 0x635   :  { %4172 = vpow2.f32 %v3403_v7 }
 0x636   :  { %4174 = vpow2.f32 %v3404_v49 }
 0x637   :  { %v6042_v18 = vpop.f32.mrf.mxu1 }
 0x638   :  { %v4167_v47 = vpop.eup %4166  ;;  %v1995_v60 = vadd.f32 %v3687_v27, %v6042_v18 }
 0x639   :  { %v2238_v19 = vmul.f32 %v4167_v47, %v2061_v22  ;;  %v4169_v38 = vpop.eup %4168 }
 0x63a   :  { %v4171_v56 = vpop.eup %4170  ;;  %v6050_v31 = vadd.f32 1.0, %v4169_v38 }
 0x63b   :  { %v6048_v11 = vadd.f32 %v2238_v19, %v2234_v54  ;;  %v4173_v59 = vpop.eup %4172  ;;  %v6052_v12 = vadd.f32 1.0, %v4171_v56 }
 0x63c   :  { %v4175_v61 = vpop.eup %4174  ;;  %v6054_v8 = vadd.f32 1.0, %v4173_v59  ;;  %4176 = vrcp.f32 %v6050_v31  ;;  %vm2068_vm2 = vweird.f32 %v6050_v31  ;;  %v2072_v10 = vand.u32 2147483647, %v6050_v31 }
 0x63d   :  { %v6056_v62 = vadd.f32 1.0, %v4175_v61  ;;  %4178 = vrcp.f32 %v6052_v12  ;;  %v2074_v18 = vand.u32 2147483648, %v6050_v31  ;;  %vm2083_vm4 = vweird.f32 %v6052_v12 }
 0x63e   :  { %4180 = vrcp.f32 %v6054_v8  ;;  %v2087_v19 = vand.u32 2147483647, %v6052_v12  ;;  %v2089_v30 = vand.u32 2147483648, %v6052_v12  ;;  %v2134_v38 = vand.u32 2147483648, %v6054_v8 }
 0x63f   :  { %v1972_v37 = vpop.f32.mrf.mxu1  ;;  %4182 = vrcp.f32 %v6056_v62  ;;  %vm2128_vm8 = vweird.f32 %v6054_v8  ;;  %v2149_v59 = vand.u32 2147483648, %v6056_v62  ;;  %vm2143_vm11 = vweird.f32 %v6056_v62 }
 0x640   :  { %v1996_v47 = vadd.f32 %v3688_v48, %v1972_v37  ;;  %vm2073_vm15 = vcmp.eq.f32.partialorder %v2072_v10, 8.507059e+37  ;;  %vm2088_vm1 = vcmp.eq.f32.partialorder %v2087_v19, 8.507059e+37 }
 0x642   :  { %v6062_v55 = vpop.eup %4176 }
 0x643   :  { %v6064_v58 = vpop.eup %4178  ;;  %v2064_v32 = vmul.f32 %v6062_v55, %v6050_v31  ;;  %vm2069_vm3 = vweird.f32 %v6062_v55 }
 0x644   :  { %v6066_v23 = vpop.eup %4180  ;;  %v2079_v35 = vmul.f32 %v6064_v58, %v6052_v12  ;;  %vm2084_vm6 = vweird.f32 %v6064_v58  ;;  %vm6109_vm9 = vmor %vm2068_vm2, %vm2069_vm3  ;;  %v2147_v12 = vand.u32 2147483647, %v6056_v62 }
 0x645   :  { %v6068_v6 = vpop.eup %4182  ;;  %v2124_v9 = vmul.f32 %v6066_v23, %v6054_v8  ;;  %v2065_v17 = vsub.f32 1.0, %v2064_v32  ;;  %vm2129_vm5 = vweird.f32 %v6066_v23  ;;  %vm6121_vm10 = vmor %vm2083_vm4, %vm2084_vm6  ;;  %v2150_v32 = vor.u32 1.1754944e-38, %v2149_v59 }
 0x646   :  { %v2139_v42 = vmul.f32 %v6068_v6, %v6056_v62  ;;  %v2080_v4 = vsub.f32 1.0, %v2079_v35  ;;  %vm2144_vm7 = vweird.f32 %v6068_v6  ;;  %vm6128_vm12 = vmor %vm2128_vm8, %vm2129_vm5  ;;  %v2135_v62 = vor.u32 1.1754944e-38, %v2134_v38 }
 0x647   :  { %v1975_v53 = vpop.f32.mrf.mxu1  ;;  %v2125_v46 = vsub.f32 1.0, %v2124_v9  ;;  %v2066_v16 = vmul.f32 %v6062_v55, %v2065_v17  ;;  %vm6141_vm13 = vmor %vm2143_vm11, %vm2144_vm7  ;;  %vm2148_vm2 = vcmp.eq.f32.partialorder %v2147_v12, 8.507059e+37 }
 0x648   :  { %v1997_v52 = vadd.f32 %v3691_v2, %v1975_v53  ;;  %v2140_v51 = vsub.f32 1.0, %v2139_v42  ;;  %v2081_v20 = vmul.f32 %v6064_v58, %v2080_v4  ;;  %v2132_v53 = vand.u32 2147483647, %v6054_v8 }
 0x649   :  { %v2126_v40 = vmul.f32 %v6066_v23, %v2125_v46  ;;  %v2067_v54 = vadd.f32 %v6062_v55, %v2066_v16 }
 0x64a   :  { %v3405_v26 = vmul.f32 -1.442695, %v1997_v52  ;;  %v2141_v22 = vmul.f32 %v6068_v6, %v2140_v51  ;;  %v2082_v33 = vadd.f32 %v6064_v58, %v2081_v20  ;;  %vm2133_vm14 = vcmp.eq.f32.partialorder %v2132_v53, 8.507059e+37 }
 0x64b   :  { %v2127_v49 = vadd.f32 %v6066_v23, %v2126_v40  ;;  %v2071_v8 = vsel %vm6109_vm9, %v6062_v55, %v2067_v54  ;;  %v2090_v55 = vor.u32 1.1754944e-38, %v2089_v30 }
 0x64c   :  { %v2142_v3 = vadd.f32 %v6068_v6, %v2141_v22 }
 0x64f   :  { %v1977_v28 = vpop.f32.mrf.mxu1 }
 0x650   :  { %v1998_v44 = vadd.f32 %v3692_v36, %v1977_v28  ;;  %v2075_v28 = vor.u32 1.1754944e-38, %v2074_v18 }
 0x652   :  { %v3406_v25 = vmul.f32 -1.442695, %v1998_v44  ;;  %v2131_v44 = vsel %vm6128_vm12, %v6066_v23, %v2127_v49  ;;  %v2076_v39 = vsel %vm2073_vm15, %v2075_v28, %v2071_v8 }
 0x653   :  { %v2136_v23 = vsel %vm2133_vm14, %v2135_v62, %v2131_v44 }
 0x654   :  { %4184 = vpow2.f32 %v3406_v25  ;;  %v2146_v25 = vsel %vm6141_vm13, %v6068_v6, %v2142_v3  ;;  %v2235_v4 = vmul.f32 %v2136_v23, %v5920_v0  ;;  %v6216_v23 = vld [vmem:[%s6832_s1] sm:$0xff] }
 0x655   :  { %4186 = vpow2.f32 %v3405_v26  ;;  %v2086_v26 = vsel %vm6121_vm10, %v6064_v58, %v2082_v33  ;;  %v2151_v27 = vsel %vm2148_vm2, %v2150_v32, %v2146_v25 }
 0x656   :  { %v2091_v9 = vsel %vm2088_vm1, %v2090_v55, %v2086_v26 }
 0x657   :  { %v1980_v21 = vpop.f32.mrf.mxu1 }
 0x658   :  { %v1999_v15 = vadd.f32 %v3695_v5, %v1980_v21 }
 0x65a   :  { %v4185_v41 = vpop.eup %4184  ;;  %v3407_v43 = vmul.f32 -1.442695, %v1999_v15 }
 0x65b   :  { %v4187_v13 = vpop.eup %4186  ;;  %v6080_v50 = vadd.f32 1.0, %v4185_v41 }
 0x65c   :  { %4188 = vpow2.f32 %v3407_v43  ;;  %v6085_v34 = vadd.f32 1.0, %v4187_v13  ;;  %v2236_v43 = vmul.f32 %v2151_v27, %v5922_v45  ;;  %v6258_v27 = vld [vmem:[%s6832_s1 + $0x30] sm:$0xff] }
 0x65d   :  { %4190 = vtanh.f32 %v1995_v60  ;;  %vm2193_vm6 = vweird.f32 %v6080_v50  ;;  %v2197_v19 = vand.u32 2147483647, %v6080_v50  ;;  %v2199_v30 = vand.u32 2147483648, %v6080_v50 }
 0x65e   :  { %4192 = vrcp.f32 %v6080_v50  ;;  %vm2178_vm10 = vweird.f32 %v6085_v34  ;;  %v2182_v56 = vand.u32 2147483647, %v6085_v34  ;;  %v2184_v3 = vand.u32 2147483648, %v6085_v34 }
 0x65f   :  { %v1982_v1 = vpop.f32.mrf.mxu1  ;;  %4194 = vrcp.f32 %v6085_v34  ;;  %v2200_v8 = vor.u32 1.1754944e-38, %v2199_v30  ;;  %vm2198_vm2 = vcmp.eq.f32.partialorder %v2197_v19, 8.507059e+37 }
 0x660   :  { %v2000_v57 = vadd.f32 %v3696_v24, %v1982_v1  ;;  %4196 = vtanh.f32 %v1996_v47  ;;  %v2185_v44 = vor.u32 1.1754944e-38, %v2184_v3 }
 0x662   :  { %v4189_v63 = vpop.eup %4188  ;;  %v3408_v7 = vmul.f32 -1.442695, %v2000_v57 }
 0x663   :  { %v6101_v37 = vadd.f32 1.0, %v4189_v63  ;;  %v4191_v31 = vpop.eup %4190 }
 0x664   :  { %4198 = vpow2.f32 %v3408_v7  ;;  %v6137_v36 = vpop.eup %4192  ;;  %v2239_v42 = vmul.f32 %v4191_v31, %v2076_v39 }
 0x665   :  { %4200 = vrcp.f32 %v6101_v37  ;;  %v6151_v29 = vpop.eup %4194  ;;  %v2189_v58 = vmul.f32 %v6137_v36, %v6080_v50  ;;  %v2214_v40 = vand.u32 2147483648, %v6101_v37  ;;  %vm2194_vm5 = vweird.f32 %v6137_v36 }
 0x666   :  { %v4197_v5 = vpop.eup %4196  ;;  %v2174_v15 = vmul.f32 %v6151_v29, %v6085_v34  ;;  %v6163_v48 = vadd.f32 %v2239_v42, %v2235_v4  ;;  %vm2179_vm4 = vweird.f32 %v6151_v29  ;;  %vm2208_vm7 = vweird.f32 %v6101_v37  ;;  %vm6195_vm12 = vmor %vm2193_vm6, %vm2194_vm5  ;;  %v6251_v42 = vld [vmem:[%s6832_s1 + $0x28] sm:$0xff] }
 0x667   :  { %v2240_v6 = vmul.f32 %v4197_v5, %v2091_v9  ;;  %v2190_v13 = vsub.f32 1.0, %v2189_v58  ;;  %v2212_v47 = vand.u32 2147483647, %v6101_v37  ;;  %v2215_v38 = vor.u32 1.1754944e-38, %v2214_v40  ;;  %vm6201_vm15 = vmor %vm2178_vm10, %vm2179_vm4  ;;  %v6230_v9 = vld [vmem:[%s6832_s1 + $0x10] sm:$0xff]  ;;  %v6237_v58 = vld [vmem:[%s6832_s1 + $0x18] sm:$0xff] }
 0x668   :  { %v2175_v51 = vsub.f32 1.0, %v2174_v15  ;;  %v6265_v15 = vld [vmem:[%s6832_s1 + $0x38] sm:$0xff] }
 0x669   :  { %v6165_v60 = vadd.f32 %v2240_v6, %v2236_v43  ;;  %v2191_v16 = vmul.f32 %v6137_v36, %v2190_v13  ;;  %vm2213_vm13 = vcmp.eq.f32.partialorder %v2212_v47, 8.507059e+37 }
 0x66a   :  { %v4199_v35 = vpop.eup %4198  ;;  %v2176_v0 = vmul.f32 %v6151_v29, %v2175_v51  ;;  %v3804_v51 = vld [vmem:[#allocation4 + $0x190] sm:$0xff]  }
 0x66b   :  { %v4201_v21 = vpop.eup %4200  ;;  %v2172_v17 = vadd.f32 1.0, %v4199_v35  ;;  %v2192_v1 = vadd.f32 %v6137_v36, %v2191_v16 }
 0x66c   :  { %v2204_v41 = vmul.f32 %v4201_v21, %v6101_v37  ;;  %vm2209_vm3 = vweird.f32 %v4201_v21  ;;  %v2177_v54 = vadd.f32 %v6151_v29, %v2176_v0 }
 0x66d   :  { %4202 = vrcp.f32 %v2172_v17  ;;  %vm6179_vm9 = vmor %vm2208_vm7, %vm2209_vm3  ;;  %v2229_v57 = vand.u32 2147483648, %v2172_v17  ;;  %v2227_v49 = vand.u32 2147483647, %v2172_v17  ;;  %vm2223_vm11 = vweird.f32 %v2172_v17 }
 0x66e   :  { %v2205_v46 = vsub.f32 1.0, %v2204_v41  ;;  %4204 = vtanh.f32 %v6048_v11  ;;  %v2196_v34 = vsel %vm6195_vm12, %v6137_v36, %v2192_v1  ;;  %v2181_v52 = vsel %vm6201_vm15, %v6151_v29, %v2177_v54  ;;  %v6223_v29 = vld [vmem:[%s6832_s1 + $0x8] sm:$0xff]  ;;  %v3698_v41 = vld [vmem:[#allocation4 + $0x180] sm:$0xff]  }
 0x66f   :  { %4206 = vtanh.f32 %v6163_v48  ;;  %v2230_v2 = vor.u32 1.1754944e-38, %v2229_v57  ;;  %vm2228_vm1 = vcmp.eq.f32.partialorder %v2227_v49, 8.507059e+37  ;;  %v2201_v26 = vsel %vm2198_vm2, %v2200_v8, %v2196_v34 }
 0x670   :  { %v2206_v24 = vmul.f32 %v4201_v21, %v2205_v46  ;;  %4208 = vtanh.f32 %v6165_v60  ;;  %vm2183_vm3 = vcmp.eq.f32.partialorder %v2182_v56, 8.507059e+37  ;;  %v3699_v43 = vunpack.c.l.bf16 %v3698_v41 }
 0x671   :  { %4210 = vtanh.f32 %v6031_v14  ;;  %v2186_v36 = vsel %vm2183_vm3, %v2185_v44, %v2181_v52  ;;  %v3700_v16 = vunpack.c.h.bf16 %v3698_v41  ;;  %v3708_v1 = vunpack.c.h.bf16 %v3804_v51 }
 0x672   :  { %v2207_v20 = vadd.f32 %v4201_v21, %v2206_v24 }
 0x673   :  { %v4203_v10 = vpop.eup %4202 }
 0x674   :  { %v2219_v45 = vmul.f32 %v4203_v10, %v2172_v17  ;;  %v4205_v63 = vpop.eup %4204  ;;  %v2211_v7 = vsel %vm6179_vm9, %v4201_v21, %v2207_v20  ;;  %vm2224_vm8 = vweird.f32 %v4203_v10  ;;  %v6244_v21 = vld [vmem:[%s6832_s1 + $0x20] sm:$0xff] }
 0x675   :  { %v4207_v37 = vpop.eup %4206  ;;  %v2216_v50 = vsel %vm2213_vm13, %v2215_v38, %v2211_v7  ;;  %vm2225_vm14 = vmor %vm2223_vm11, %vm2224_vm8  ;;  %v2250_v5 = vmul.f32 %v4205_v63, %v2201_v26 }
 0x676   :  { %v2220_v18 = vsub.f32 1.0, %v2219_v45  ;;  %v4209_v53 = vpop.eup %4208  ;;  %v2251_v62 = vmul.f32 %v4207_v37, %v2216_v50 }
 0x677   :  { %v4211_v32 = vpop.eup %4210 }
 0x678   :  { %v2221_v33 = vmul.f32 %v4203_v10, %v2220_v18  ;;  %v2249_v39 = vmul.f32 %v4211_v32, %v2186_v36 }
 0x67a   :  { %v2222_v61 = vadd.f32 %v4203_v10, %v2221_v33  ;;  %v2286_v35 = vpack.c.bf16 %v2250_v5, %v2249_v39 }
 0x67c   :  { %v2226_v12 = vsel %vm2225_vm14, %v4203_v10, %v2222_v61  ;;  %v3707_v10 = vunpack.c.l.bf16 %v3804_v51 }
 0x67d   :  { %v2231_v28 = vsel %vm2228_vm1, %v2230_v2, %v2226_v12  ;;  %v3806_v2 = vld [vmem:[#allocation4 + $0x1a0] sm:$0xff]  }
 0x67e   :  { %v2252_v55 = vmul.f32 %v4209_v53, %v2231_v28  ;;  %v3715_v44 = vunpack.c.l.bf16 %v3806_v2 }
 0x680   :  { %v2287_v25 = vpack.c.bf16 %v2252_v55, %v2251_v62 }
 0x682   :  { %2294 = vmatpush.bf16.msra.mxu2 %v2287_v25 }
 0x686   :  { %2295 = vmatpush.bf16.msra.mxu2 %v2286_v35 }
 0x689   :  { %3409 = vmatmul.msk.bf16.vlgmr.msra.gmra.mxu2 %vm151_vm0, %v6216_v23 }
 0x699   :  { %3410 = vmatmul.msk.bf16.gmra.mxu2 %vm151_vm0, %v6223_v29 }
 0x6a9   :  { %3411 = vmatmul.msk.bf16.gmra.mxu2 %vm151_vm0, %v6230_v9 }
 0x6b9   :  { %3412 = vmatmul.msk.bf16.gmra.mxu2 %vm151_vm0, %v6237_v58 }
 0x6c9   :  { %3413 = vmatmul.msk.bf16.gmra.mxu2 %vm151_vm0, %v6244_v21 }
 0x6d9   :  { %3414 = vmatmul.msk.bf16.gmra.mxu2 %vm151_vm0, %v6251_v42 }
 0x6e9   :  { %3415 = vmatmul.msk.bf16.gmra.mxu2 %vm151_vm0, %v6258_v27 }
 0x6f9   :  { %3416 = vmatmul.msk.bf16.gmra.mxu2 %vm151_vm0, %v6265_v15 }
 0x70c   :  { %v2297_v17 = vpop.f32.mrf.mxu2 }
 0x70d   :  { %v2337_v13 = vadd.f32 %v3699_v43, %v2297_v17 }
 0x70f   :  { %v3417_v24 = vmul.f32 -1.442695, %v2337_v13 }
 0x711   :  { %4212 = vpow2.f32 %v3417_v24  ;;  %v3716_v24 = vunpack.c.h.bf16 %v3806_v2 }
 0x714   :  { %v2299_v6 = vpop.f32.mrf.mxu2 }
 0x715   :  { %v2338_v0 = vadd.f32 %v3700_v16, %v2299_v6 }
 0x717   :  { %v3418_v40 = vmul.f32 -1.442695, %v2338_v0  ;;  %v4213_v47 = vpop.eup %4212 }
 0x718   :  { %v2377_v22 = vadd.f32 1.0, %v4213_v47 }
 0x71a   :  { %v2396_v17 = vand.u32 2147483648, %v2377_v22  ;;  %vm2390_vm9 = vweird.f32 %v2377_v22  ;;  %v2394_v41 = vand.u32 2147483647, %v2377_v22 }
 0x71c   :  { %v6269_v4 = vpop.f32.mrf.mxu2  ;;  %v2397_v0 = vor.u32 1.1754944e-38, %v2396_v17  ;;  %vm2395_vm11 = vcmp.eq.f32.partialorder %v2394_v41, 8.507059e+37  ;;  %v3808_v41 = vld [vmem:[#allocation4 + $0x1b0] sm:$0xff]  }
 0x71d   :  { %v3723_v51 = vunpack.c.l.bf16 %v3808_v41 }
 0x724   :  { %v6271_v46 = vpop.f32.mrf.mxu2 }
 0x72c   :  { %v2307_v45 = vpop.f32.mrf.mxu2 }
 0x72d   :  { %v2341_v20 = vadd.f32 %v3707_v10, %v2307_v45 }
 0x72f   :  { %v3421_v18 = vmul.f32 -1.442695, %v2341_v20  ;;  %v3803_v20 = vld [vmem:[#allocation4 + $0x188] sm:$0xff]  }
 0x731   :  { %4214 = vpow2.f32 %v3421_v18 }
 0x732   :  { %4216 = vpow2.f32 %v3418_v40 }
 0x733   :  { %4218 = vrcp.f32 %v2377_v22 }
 0x734   :  { %v2309_v57 = vpop.f32.mrf.mxu2 }
 0x735   :  { %v2342_v54 = vadd.f32 %v3708_v1, %v2309_v57 }
 0x737   :  { %v4215_v19 = vpop.eup %4214  ;;  %v3422_v30 = vmul.f32 -1.442695, %v2342_v54 }
 0x738   :  { %v2381_v63 = vadd.f32 1.0, %v4215_v19  ;;  %v4217_v33 = vpop.eup %4216 }
 0x739   :  { %4220 = vpow2.f32 %v3422_v30  ;;  %v6273_v7 = vadd.f32 1.0, %v4217_v33  ;;  %v4219_v37 = vpop.eup %4218  ;;  %v3703_v33 = vunpack.c.l.bf16 %v3803_v20 }
 0x73a   :  { %4222 = vrcp.f32 %v2381_v63  ;;  %v2386_v53 = vmul.f32 %v4219_v37, %v2377_v22  ;;  %v2456_v5 = vand.u32 2147483648, %v2381_v63  ;;  %vm2450_vm6 = vweird.f32 %v2381_v63 }
 0x73b   :  { %4224 = vrcp.f32 %v6273_v7  ;;  %vm2391_vm5 = vweird.f32 %v4219_v37  ;;  %v2454_v35 = vand.u32 2147483647, %v2381_v63  ;;  %vm2405_vm1 = vweird.f32 %v6273_v7 }
 0x73c   :  { %v6275_v49 = vpop.f32.mrf.mxu2  ;;  %v2387_v50 = vsub.f32 1.0, %v2386_v53  ;;  %v2457_v13 = vor.u32 1.1754944e-38, %v2456_v5  ;;  %vm6292_vm8 = vmor %vm2390_vm9, %vm2391_vm5  ;;  %v3704_v53 = vunpack.c.h.bf16 %v3803_v20 }
 0x73d   :  { %vm2455_vm10 = vcmp.eq.f32.partialorder %v2454_v35, 8.507059e+37 }
 0x73e   :  { %v2388_v26 = vmul.f32 %v4219_v37, %v2387_v50 }
 0x73f   :  { %v4221_v38 = vpop.eup %4220 }
 0x740   :  { %v4223_v56 = vpop.eup %4222  ;;  %v6278_v3 = vadd.f32 1.0, %v4221_v38  ;;  %v2389_v39 = vadd.f32 %v4219_v37, %v2388_v26  ;;  %v3805_v38 = vld [vmem:[#allocation4 + $0x198] sm:$0xff]  }
 0x741   :  { %v2446_v59 = vmul.f32 %v4223_v56, %v2381_v63  ;;  %v6283_v34 = vpop.eup %4224  ;;  %vm2451_vm4 = vweird.f32 %v4223_v56  ;;  %v3711_v50 = vunpack.c.l.bf16 %v3805_v38 }
 0x742   :  { %4226 = vrcp.f32 %v6278_v3  ;;  %v2401_v52 = vmul.f32 %v6283_v34, %v6273_v7  ;;  %vm2452_vm7 = vmor %vm2450_vm6, %vm2451_vm4  ;;  %v2393_v10 = vsel %vm6292_vm8, %v4219_v37, %v2389_v39  ;;  %vm2406_vm13 = vweird.f32 %v6283_v34 }
 0x743   :  { %v2447_v61 = vsub.f32 1.0, %v2446_v59  ;;  %v2471_v1 = vand.u32 2147483648, %v6278_v3  ;;  %v2398_v22 = vsel %vm2395_vm11, %v2397_v0, %v2393_v10  ;;  %vm2465_vm15 = vweird.f32 %v6278_v3  ;;  %vm2407_vm2 = vmor %vm2405_vm1, %vm2406_vm13 }
 0x744   :  { %v6281_v31 = vpop.f32.mrf.mxu2  ;;  %v2402_v25 = vsub.f32 1.0, %v2401_v52  ;;  %v2469_v63 = vand.u32 2147483647, %v6278_v3  ;;  %v3724_v10 = vunpack.c.h.bf16 %v3808_v41 }
 0x745   :  { %v2448_v12 = vmul.f32 %v4223_v56, %v2447_v61  ;;  %v2472_v61 = vor.u32 1.1754944e-38, %v2471_v1 }
 0x746   :  { %v2403_v16 = vmul.f32 %v6283_v34, %v2402_v25  ;;  %vm2470_vm3 = vcmp.eq.f32.partialorder %v2469_v63, 8.507059e+37  ;;  %v3807_v63 = vld [vmem:[#allocation4 + $0x1a8] sm:$0xff]  }
 0x747   :  { %v2449_v36 = vadd.f32 %v4223_v56, %v2448_v12  ;;  %v3712_v12 = vunpack.c.h.bf16 %v3805_v38 }
 0x748   :  { %v6285_v8 = vpop.eup %4226  ;;  %v2404_v54 = vadd.f32 %v6283_v34, %v2403_v16 }
 0x749   :  { %v2461_v28 = vmul.f32 %v6285_v8, %v6278_v3  ;;  %v2453_v43 = vsel %vm2452_vm7, %v4223_v56, %v2449_v36  ;;  %vm2466_vm12 = vweird.f32 %v6285_v8  ;;  %v2411_v56 = vand.u32 2147483648, %v6273_v7 }
 0x74a   :  { %v2458_v45 = vsel %vm2455_vm10, %v2457_v13, %v2453_v43  ;;  %vm6309_vm14 = vmor %vm2465_vm15, %vm2466_vm12  ;;  %v2408_v2 = vsel %vm2407_vm2, %v6283_v34, %v2404_v54  ;;  %v2344_v34 = vadd.f32 %v3712_v12, %v6281_v31 }
 0x74b   :  { %v2462_v62 = vsub.f32 1.0, %v2461_v28  ;;  %v2585_v19 = vmul.f32 %v2458_v45, %v6031_v14  ;;  %v2409_v14 = vand.u32 2147483647, %v6273_v7  ;;  %v2412_v52 = vor.u32 1.1754944e-38, %v2411_v56 }
 0x74c   :  { %v2317_v55 = vpop.f32.mrf.mxu2 }
 0x74d   :  { %v2345_v32 = vadd.f32 %v3715_v44, %v2317_v55  ;;  %v2463_v6 = vmul.f32 %v6285_v8, %v2462_v62  ;;  %v2339_v44 = vadd.f32 %v3703_v33, %v6269_v4  ;;  %vm2410_vm4 = vcmp.eq.f32.partialorder %v2409_v14, 8.507059e+37 }
 0x74e   :  { %v2413_v62 = vsel %vm2410_vm4, %v2412_v52, %v2408_v2  ;;  %v2343_v55 = vadd.f32 %v3711_v50, %v6275_v49  ;;  %v3424_v4 = vmul.f32 -1.442695, %v2344_v34  ;;  %v3719_v14 = vunpack.c.l.bf16 %v3807_v63 }
 0x74f   :  { %4228 = vtanh.f32 %v2345_v32  ;;  %v2464_v18 = vadd.f32 %v6285_v8, %v2463_v6  ;;  %v3419_v5 = vmul.f32 -1.442695, %v2339_v44 }
 0x750   :  { %v3423_v35 = vmul.f32 -1.442695, %v2343_v55 }
 0x751   :  { %v2468_v3 = vsel %vm6309_vm14, %v6285_v8, %v2464_v18  ;;  %v2340_v8 = vadd.f32 %v3704_v53, %v6271_v46  ;;  %v3809_v18 = vld [vmem:[#allocation4 + $0x1b8] sm:$0xff]  }
 0x752   :  { %v2473_v28 = vsel %vm2470_vm3, %v2472_v61, %v2468_v3  ;;  %v3727_v54 = vunpack.c.l.bf16 %v3809_v18 }
 0x753   :  { %v2586_v36 = vmul.f32 %v2473_v28, %v6048_v11  ;;  %v3420_v39 = vmul.f32 -1.442695, %v2340_v8  ;;  %v3720_v28 = vunpack.c.h.bf16 %v3807_v63  ;;  %v3728_v8 = vunpack.c.h.bf16 %v3809_v18 }
 0x754   :  { %v2319_v40 = vpop.f32.mrf.mxu2 }
 0x755   :  { %v4229_v47 = vpop.eup %4228  ;;  %v2346_v57 = vadd.f32 %v3716_v24, %v2319_v40 }
 0x756   :  { %v2589_v30 = vmul.f32 %v4229_v47, %v2398_v22 }
 0x757   :  { %4230 = vtanh.f32 %v2346_v57 }
 0x758   :  { %v6314_v59 = vadd.f32 %v2589_v30, %v2585_v19  ;;  %4232 = vpow2.f32 %v3419_v5 }
 0x759   :  { %4234 = vpow2.f32 %v3420_v39 }
 0x75a   :  { %4236 = vpow2.f32 %v3423_v35 }
 0x75b   :  { %4238 = vpow2.f32 %v3424_v4 }
 0x75c   :  { %v6325_v7 = vpop.f32.mrf.mxu2 }
 0x75d   :  { %v4231_v26 = vpop.eup %4230 }
 0x75e   :  { %v2590_v25 = vmul.f32 %v4231_v26, %v2413_v62  ;;  %v4233_v46 = vpop.eup %4232  ;;  %v2347_v26 = vadd.f32 %v3719_v14, %v6325_v7 }
 0x75f   :  { %v4235_v6 = vpop.eup %4234  ;;  %v6333_v13 = vadd.f32 1.0, %v4233_v46 }
 0x760   :  { %v6331_v32 = vadd.f32 %v2590_v25, %v2586_v36  ;;  %v4237_v49 = vpop.eup %4236  ;;  %v6335_v31 = vadd.f32 1.0, %v4235_v6 }
 0x761   :  { %v4239_v11 = vpop.eup %4238  ;;  %v6337_v24 = vadd.f32 1.0, %v4237_v49  ;;  %4240 = vrcp.f32 %v6333_v13  ;;  %vm2420_vm6 = vweird.f32 %v6333_v13  ;;  %v2424_v36 = vand.u32 2147483647, %v6333_v13 }
 0x762   :  { %v6339_v16 = vadd.f32 1.0, %v4239_v11  ;;  %4242 = vrcp.f32 %v6335_v31  ;;  %v2426_v7 = vand.u32 2147483648, %v6333_v13  ;;  %vm2435_vm7 = vweird.f32 %v6335_v31 }
 0x763   :  { %4244 = vrcp.f32 %v6337_v24  ;;  %v2439_v41 = vand.u32 2147483647, %v6335_v31  ;;  %v2441_v49 = vand.u32 2147483648, %v6335_v31  ;;  %vm2480_vm11 = vweird.f32 %v6337_v24 }
 0x764   :  { %v2324_v17 = vpop.f32.mrf.mxu2  ;;  %4246 = vrcp.f32 %v6339_v16  ;;  %v2484_v18 = vand.u32 2147483647, %v6337_v24  ;;  %vm2495_vm14 = vweird.f32 %v6339_v16  ;;  %vm2425_vm2 = vcmp.eq.f32.partialorder %v2424_v36, 8.507059e+37 }
 0x765   :  { %v2348_v39 = vadd.f32 %v3720_v28, %v2324_v17  ;;  %vm2440_vm4 = vcmp.eq.f32.partialorder %v2439_v41, 8.507059e+37 }
 0x766   :  { %vm2485_vm3 = vcmp.eq.f32.partialorder %v2484_v18, 8.507059e+37 }
 0x767   :  { %v6345_v47 = vpop.eup %4240 }
 0x768   :  { %v6347_v22 = vpop.eup %4242  ;;  %v2416_v30 = vmul.f32 %v6345_v47, %v6333_v13  ;;  %vm2421_vm5 = vweird.f32 %v6345_v47 }
 0x769   :  { %v6349_v57 = vpop.eup %4244  ;;  %v2431_v33 = vmul.f32 %v6347_v22, %v6335_v31  ;;  %vm2436_vm9 = vweird.f32 %v6347_v22  ;;  %vm6392_vm12 = vmor %vm2420_vm6, %vm2421_vm5  ;;  %v2499_v31 = vand.u32 2147483647, %v6339_v16 }
 0x76a   :  { %v6351_v19 = vpop.eup %4246  ;;  %v2476_v37 = vmul.f32 %v6349_v57, %v6337_v24  ;;  %v2417_v53 = vsub.f32 1.0, %v2416_v30  ;;  %vm2481_vm8 = vweird.f32 %v6349_v57  ;;  %vm6404_vm13 = vmor %vm2435_vm7, %vm2436_vm9 }
 0x76b   :  { %v2491_v56 = vmul.f32 %v6351_v19, %v6339_v16  ;;  %v2432_v50 = vsub.f32 1.0, %v2431_v33  ;;  %vm2496_vm10 = vweird.f32 %v6351_v19  ;;  %vm6411_vm15 = vmor %vm2480_vm11, %vm2481_vm8  ;;  %v2427_v33 = vor.u32 1.1754944e-38, %v2426_v7 }
 0x76c   :  { %v2327_v43 = vpop.f32.mrf.mxu2  ;;  %v2477_v52 = vsub.f32 1.0, %v2476_v37  ;;  %v2418_v62 = vmul.f32 %v6345_v47, %v2417_v53  ;;  %vm6424_vm1 = vmor %vm2495_vm14, %vm2496_vm10  ;;  %vm2500_vm6 = vcmp.eq.f32.partialorder %v2499_v31, 8.507059e+37 }
 0x76d   :  { %v2349_v0 = vadd.f32 %v3723_v51, %v2327_v43  ;;  %v2492_v44 = vsub.f32 1.0, %v2491_v56  ;;  %v2433_v25 = vmul.f32 %v6347_v22, %v2432_v50  ;;  %v2442_v56 = vor.u32 1.1754944e-38, %v2441_v49 }
 0x76e   :  { %v2478_v5 = vmul.f32 %v6349_v57, %v2477_v52  ;;  %v2419_v6 = vadd.f32 %v6345_v47, %v2418_v62 }
 0x76f   :  { %v3425_v40 = vmul.f32 -1.442695, %v2349_v0  ;;  %v2493_v4 = vmul.f32 %v6351_v19, %v2492_v44  ;;  %v2434_v11 = vadd.f32 %v6347_v22, %v2433_v25  ;;  %v2486_v0 = vand.u32 2147483648, %v6337_v24 }
 0x770   :  { %v2479_v51 = vadd.f32 %v6349_v57, %v2478_v5  ;;  %v2423_v24 = vsel %vm6392_vm12, %v6345_v47, %v2419_v6 }
 0x772   :  { %v2483_v37 = vsel %vm6411_vm15, %v6349_v57, %v2479_v51 }
 0x774   :  { %v2329_v45 = vpop.f32.mrf.mxu2 }
 0x775   :  { %v2350_v20 = vadd.f32 %v3724_v10, %v2329_v45 }
 0x777   :  { %v3426_v1 = vmul.f32 -1.442695, %v2350_v20  ;;  %v2494_v20 = vadd.f32 %v6351_v19, %v2493_v4 }
 0x779   :  { %4248 = vpow2.f32 %v3426_v1  ;;  %v2498_v14 = vsel %vm6424_vm1, %v6351_v19, %v2494_v20 }
 0x77a   :  { %4250 = vpow2.f32 %v3425_v40  ;;  %v2501_v40 = vand.u32 2147483648, %v6339_v16  ;;  %v2487_v16 = vor.u32 1.1754944e-38, %v2486_v0 }
 0x77c   :  { %v2332_v38 = vpop.f32.mrf.mxu2  ;;  %v2502_v53 = vor.u32 1.1754944e-38, %v2501_v40  ;;  %v2488_v57 = vsel %vm2485_vm3, %v2487_v16, %v2483_v37 }
 0x77d   :  { %v2351_v3 = vadd.f32 %v3727_v54, %v2332_v38  ;;  %v2438_v38 = vsel %vm6404_vm13, %v6347_v22, %v2434_v11  ;;  %v2587_v62 = vmul.f32 %v2488_v57, %v6163_v48 }
 0x77e   :  { %v2503_v28 = vsel %vm2500_vm6, %v2502_v53, %v2498_v14 }
 0x77f   :  { %v4249_v61 = vpop.eup %4248  ;;  %v3427_v2 = vmul.f32 -1.442695, %v2351_v3  ;;  %v2588_v36 = vmul.f32 %v2503_v28, %v6165_v60 }
 0x780   :  { %v4251_v12 = vpop.eup %4250  ;;  %v6363_v55 = vadd.f32 1.0, %v4249_v61  ;;  %v2428_v61 = vsel %vm2425_vm2, %v2427_v33, %v2423_v24  ;;  %v3810_v33 = vld [vmem:[#allocation4 + $0x1c8] sm:$0xff]  }
 0x781   :  { %4252 = vpow2.f32 %v3427_v2  ;;  %v6368_v34 = vadd.f32 1.0, %v4251_v12  ;;  %v2443_v2 = vsel %vm2440_vm4, %v2442_v56, %v2438_v38 }
 0x782   :  { %4254 = vtanh.f32 %v2347_v26  ;;  %vm2545_vm9 = vweird.f32 %v6363_v55  ;;  %v2549_v20 = vand.u32 2147483647, %v6363_v55  ;;  %v2551_v40 = vand.u32 2147483648, %v6363_v55 }
 0x783   :  { %4256 = vrcp.f32 %v6363_v55  ;;  %vm2530_vm13 = vweird.f32 %v6368_v34  ;;  %v2534_v31 = vand.u32 2147483647, %v6368_v34  ;;  %v2536_v63 = vand.u32 2147483648, %v6368_v34 }
 0x784   :  { %v2334_v35 = vpop.f32.mrf.mxu2  ;;  %4258 = vrcp.f32 %v6368_v34  ;;  %v2552_v14 = vor.u32 1.1754944e-38, %v2551_v40  ;;  %vm2550_vm6 = vcmp.eq.f32.partialorder %v2549_v20, 8.507059e+37 }
 0x785   :  { %v2352_v46 = vadd.f32 %v3728_v8, %v2334_v35  ;;  %4260 = vtanh.f32 %v2348_v39 }
 0x787   :  { %v4253_v43 = vpop.eup %4252  ;;  %v3428_v17 = vmul.f32 -1.442695, %v2352_v46 }
 0x788   :  { %v6384_v10 = vadd.f32 1.0, %v4253_v43  ;;  %v4255_v13 = vpop.eup %4254 }
 0x789   :  { %4262 = vpow2.f32 %v3428_v17  ;;  %v6420_v30 = vpop.eup %4256  ;;  %v2591_v52 = vmul.f32 %v4255_v13, %v2428_v61 }
 0x78a   :  { %4264 = vrcp.f32 %v6384_v10  ;;  %v6434_v47 = vpop.eup %4258  ;;  %v2541_v22 = vmul.f32 %v6420_v30, %v6363_v55  ;;  %v2566_v49 = vand.u32 2147483648, %v6384_v10  ;;  %vm2546_vm8 = vweird.f32 %v6420_v30 }
 0x78b   :  { %v4261_v3 = vpop.eup %4260  ;;  %v2526_v44 = vmul.f32 %v6434_v47, %v6368_v34  ;;  %v6446_v7 = vadd.f32 %v2591_v52, %v2587_v62  ;;  %vm2531_vm7 = vweird.f32 %v6434_v47  ;;  %vm2560_vm10 = vweird.f32 %v6384_v10  ;;  %vm6478_vm15 = vmor %vm2545_vm9, %vm2546_vm8 }
 0x78c   :  { %v2592_v19 = vmul.f32 %v4261_v3, %v2443_v2  ;;  %v2542_v25 = vsub.f32 1.0, %v2541_v22  ;;  %v2564_v11 = vand.u32 2147483647, %v6384_v10  ;;  %v2567_v24 = vor.u32 1.1754944e-38, %v2566_v49  ;;  %vm6484_vm2 = vmor %vm2530_vm13, %vm2531_vm7 }
 0x78d   :  { %v2527_v39 = vsub.f32 1.0, %v2526_v44 }
 0x78e   :  { %v6448_v35 = vadd.f32 %v2592_v19, %v2588_v36  ;;  %v2543_v46 = vmul.f32 %v6420_v30, %v2542_v25  ;;  %vm2565_vm1 = vcmp.eq.f32.partialorder %v2564_v11, 8.507059e+37 }
 0x78f   :  { %v4263_v50 = vpop.eup %4262  ;;  %v2528_v48 = vmul.f32 %v6434_v47, %v2527_v39 }
 0x790   :  { %v4265_v12 = vpop.eup %4264  ;;  %v2524_v26 = vadd.f32 1.0, %v4263_v50  ;;  %v2544_v17 = vadd.f32 %v6420_v30, %v2543_v46  ;;  %v2537_v50 = vor.u32 1.1754944e-38, %v2536_v63 }
 0x791   :  { %v2556_v8 = vmul.f32 %v4265_v12, %v6384_v10  ;;  %vm2561_vm5 = vweird.f32 %v4265_v12  ;;  %v2529_v45 = vadd.f32 %v6434_v47, %v2528_v48 }
 0x792   :  { %4266 = vrcp.f32 %v2524_v26  ;;  %vm6462_vm12 = vmor %vm2560_vm10, %vm2561_vm5  ;;  %v2581_v0 = vand.u32 2147483648, %v2524_v26  ;;  %v2579_v10 = vand.u32 2147483647, %v2524_v26  ;;  %vm2575_vm14 = vweird.f32 %v2524_v26 }
 0x793   :  { %v2557_v5 = vsub.f32 1.0, %v2556_v8  ;;  %4268 = vtanh.f32 %v6331_v32  ;;  %v2548_v34 = vsel %vm6478_vm15, %v6420_v30, %v2544_v17  ;;  %v2533_v53 = vsel %vm6484_vm2, %v6434_v47, %v2529_v45  ;;  %v3730_v47 = vld [vmem:[#allocation4 + $0x1c0] sm:$0xff]  }
 0x794   :  { %4270 = vtanh.f32 %v6446_v7  ;;  %v2582_v56 = vor.u32 1.1754944e-38, %v2581_v0  ;;  %vm2580_vm4 = vcmp.eq.f32.partialorder %v2579_v10, 8.507059e+37  ;;  %v2553_v57 = vsel %vm2550_vm6, %v2552_v14, %v2548_v34 }
 0x795   :  { %v2558_v4 = vmul.f32 %v4265_v12, %v2557_v5  ;;  %4272 = vtanh.f32 %v6448_v35  ;;  %vm2535_vm5 = vcmp.eq.f32.partialorder %v2534_v31, 8.507059e+37  ;;  %v3813_v31 = vld [vmem:[#allocation4 + $0x1e0] sm:$0xff]  }
 0x796   :  { %4274 = vtanh.f32 %v6314_v59  ;;  %v2538_v30 = vsel %vm2535_vm5, %v2537_v50, %v2533_v53  ;;  %v3747_v34 = vunpack.c.l.bf16 %v3813_v31 }
 0x797   :  { %v2559_v41 = vadd.f32 %v4265_v12, %v2558_v4 }
 0x798   :  { %v4267_v6 = vpop.eup %4266 }
 0x799   :  { %v2571_v60 = vmul.f32 %v4267_v6, %v2524_v26  ;;  %v4269_v18 = vpop.eup %4268  ;;  %v2563_v13 = vsel %vm6462_vm12, %v4265_v12, %v2559_v41  ;;  %vm2576_vm11 = vweird.f32 %v4267_v6 }
 0x79a   :  { %v4271_v54 = vpop.eup %4270  ;;  %v2568_v55 = vsel %vm2565_vm1, %v2567_v24, %v2563_v13  ;;  %vm2577_vm3 = vmor %vm2575_vm14, %vm2576_vm11  ;;  %v2602_v52 = vmul.f32 %v4269_v18, %v2553_v57 }
 0x79b   :  { %v2572_v43 = vsub.f32 1.0, %v2571_v60  ;;  %v4273_v37 = vpop.eup %4272  ;;  %v2603_v2 = vmul.f32 %v4271_v54, %v2568_v55 }
 0x79c   :  { %v4275_v28 = vpop.eup %4274 }
 0x79d   :  { %v2573_v1 = vmul.f32 %v4267_v6, %v2572_v43  ;;  %v2601_v44 = vmul.f32 %v4275_v28, %v2538_v30 }
 0x79f   :  { %v2574_v38 = vadd.f32 %v4267_v6, %v2573_v1  ;;  %v2638_v26 = vpack.c.bf16 %v2602_v52, %v2601_v44  ;;  %v3736_v44 = vunpack.c.h.bf16 %v3810_v33 }
 0x7a1   :  { %v2578_v3 = vsel %vm2577_vm3, %v4267_v6, %v2574_v38 }
 0x7a2   :  { %v2583_v61 = vsel %vm2580_vm4, %v2582_v56, %v2578_v3  ;;  %v3735_v56 = vunpack.c.l.bf16 %v3810_v33 }
 0x7a3   :  { %v2604_v22 = vmul.f32 %v4273_v37, %v2583_v61 }
 0x7a5   :  { %v2639_v12 = vpack.c.bf16 %v2604_v22, %v2603_v2 }
 0x7a7   :  { %2646 = vmatpush.bf16.msra.mxu3 %v2639_v12 }
 0x7ab   :  { %2647 = vmatpush.bf16.msra.mxu3 %v2638_v26 }
 0x7ae   :  { %3429 = vmatmul.msk.bf16.vlgmr.msra.gmra.mxu3 %vm151_vm0, %v6216_v23 }
 0x7be   :  { %3430 = vmatmul.msk.bf16.gmra.mxu3 %vm151_vm0, %v6223_v29 }
 0x7ce   :  { %3431 = vmatmul.msk.bf16.gmra.mxu3 %vm151_vm0, %v6230_v9  ;;  %v3731_v9 = vunpack.c.l.bf16 %v3730_v47 }
 0x7de   :  { %3432 = vmatmul.msk.bf16.gmra.mxu3 %vm151_vm0, %v6237_v58  ;;  %v3811_v58 = vld [vmem:[#allocation4 + $0x1d0] sm:$0xff]  }
 0x7df   :  { %v3739_v25 = vunpack.c.l.bf16 %v3811_v58 }
 0x7ee   :  { %3433 = vmatmul.msk.bf16.gmra.mxu3 %vm151_vm0, %v6244_v21  ;;  %v3732_v21 = vunpack.c.h.bf16 %v3730_v47  ;;  %v3816_v47 = vld [vmem:[#allocation4 + $0x1f8] sm:$0xff]  }
 0x7fe   :  { %3434 = vmatmul.msk.bf16.gmra.mxu3 %vm151_vm0, %v6251_v42 }
 0x80e   :  { %3435 = vmatmul.msk.bf16.gmra.mxu3 %vm151_vm0, %v6258_v27 }
 0x81e   :  { %3436 = vmatmul.msk.bf16.gmra.mxu3 %vm151_vm0, %v6265_v15  ;;  %v3740_v15 = vunpack.c.h.bf16 %v3811_v58 }
 0x831   :  { %v2649_v23 = vpop.f32.mrf.mxu3 }
 0x832   :  { %v2689_v8 = vadd.f32 %v3731_v9, %v2649_v23 }
 0x834   :  { %v3437_v36 = vmul.f32 -1.442695, %v2689_v8 }
 0x836   :  { %4276 = vpow2.f32 %v3437_v36 }
 0x839   :  { %v2651_v29 = vpop.f32.mrf.mxu3 }
 0x83a   :  { %v2690_v42 = vadd.f32 %v3732_v21, %v2651_v29 }
 0x83c   :  { %v3438_v27 = vmul.f32 -1.442695, %v2690_v42  ;;  %v4277_v46 = vpop.eup %4276 }
 0x83d   :  { %v2729_v6 = vadd.f32 1.0, %v4277_v46 }
 0x83f   :  { %v2746_v52 = vand.u32 2147483647, %v2729_v6  ;;  %v2748_v28 = vand.u32 2147483648, %v2729_v6  ;;  %vm2742_vm12 = vweird.f32 %v2729_v6 }
 0x841   :  { %v2654_v19 = vpop.f32.mrf.mxu3  ;;  %vm2747_vm15 = vcmp.eq.f32.partialorder %v2746_v52, 8.507059e+37  ;;  %v2749_v36 = vor.u32 1.1754944e-38, %v2748_v28 }
 0x842   :  { %v2691_v30 = vadd.f32 %v3735_v56, %v2654_v19  ;;  %v3748_v19 = vunpack.c.h.bf16 %v3813_v31 }
 0x844   :  { %v3439_v58 = vmul.f32 -1.442695, %v2691_v30 }
 0x849   :  { %v6512_v62 = vpop.f32.mrf.mxu3 }
 0x851   :  { %v2659_v5 = vpop.f32.mrf.mxu3 }
 0x852   :  { %v2693_v39 = vadd.f32 %v3739_v25, %v2659_v5  ;;  %v2692_v25 = vadd.f32 %v3736_v44, %v6512_v62 }
 0x854   :  { %v3441_v4 = vmul.f32 -1.442695, %v2693_v39 }
 0x856   :  { %4278 = vpow2.f32 %v3441_v4 }
 0x857   :  { %4280 = vpow2.f32 %v3438_v27 }
 0x858   :  { %4282 = vrcp.f32 %v2729_v6 }
 0x859   :  { %v2661_v48 = vpop.f32.mrf.mxu3 }
 0x85a   :  { %v2694_v60 = vadd.f32 %v3740_v15, %v2661_v48 }
 0x85c   :  { %v4279_v41 = vpop.eup %4278  ;;  %v3442_v49 = vmul.f32 -1.442695, %v2694_v60 }
 0x85d   :  { %v2733_v43 = vadd.f32 1.0, %v4279_v41  ;;  %v4281_v11 = vpop.eup %4280 }
 0x85e   :  { %4284 = vpow2.f32 %v3442_v49  ;;  %v6514_v17 = vadd.f32 1.0, %v4281_v11  ;;  %v4283_v0 = vpop.eup %4282  ;;  %v3440_v49 = vmul.f32 -1.442695, %v2692_v25 }
 0x85f   :  { %4286 = vrcp.f32 %v2733_v43  ;;  %v2738_v1 = vmul.f32 %v4283_v0, %v2729_v6  ;;  %v2808_v50 = vand.u32 2147483648, %v2733_v43  ;;  %vm2802_vm9 = vweird.f32 %v2733_v43 }
 0x860   :  { %4288 = vrcp.f32 %v6514_v17  ;;  %vm2743_vm8 = vweird.f32 %v4283_v0  ;;  %v2806_v22 = vand.u32 2147483647, %v2733_v43  ;;  %vm2757_vm4 = vweird.f32 %v6514_v17 }
 0x861   :  { %v6516_v51 = vpop.f32.mrf.mxu3  ;;  %v2739_v24 = vsub.f32 1.0, %v2738_v1  ;;  %v2809_v29 = vor.u32 1.1754944e-38, %v2808_v50  ;;  %vm6539_vm11 = vmor %vm2742_vm12, %vm2743_vm8  ;;  %v2763_v41 = vand.u32 2147483648, %v6514_v17  ;;  %v2761_v11 = vand.u32 2147483647, %v6514_v17 }
 0x862   :  { %vm2807_vm13 = vcmp.eq.f32.partialorder %v2806_v22, 8.507059e+37 }
 0x863   :  { %v2740_v55 = vmul.f32 %v4283_v0, %v2739_v24 }
 0x864   :  { %v4285_v45 = vpop.eup %4284 }
 0x865   :  { %v4287_v20 = vpop.eup %4286  ;;  %v6519_v40 = vadd.f32 1.0, %v4285_v45  ;;  %v2741_v2 = vadd.f32 %v4283_v0, %v2740_v55  ;;  %v3812_v45 = vld [vmem:[#allocation4 + $0x1d8] sm:$0xff]  }
 0x866   :  { %v2798_v18 = vmul.f32 %v4287_v20, %v2733_v43  ;;  %v6524_v54 = vpop.eup %4288  ;;  %vm2803_vm7 = vweird.f32 %v4287_v20  ;;  %v3743_v1 = vunpack.c.l.bf16 %v3812_v45  ;;  %v3744_v31 = vunpack.c.h.bf16 %v3812_v45 }
 0x867   :  { %4290 = vrcp.f32 %v6519_v40  ;;  %v2753_v38 = vmul.f32 %v6524_v54, %v6514_v17  ;;  %vm6532_vm10 = vmor %vm2802_vm9, %vm2803_vm7  ;;  %v2745_v8 = vsel %vm6539_vm11, %v4283_v0, %v2741_v2  ;;  %vm2758_vm1 = vweird.f32 %v6524_v54 }
 0x868   :  { %v2799_v13 = vsub.f32 1.0, %v2798_v18  ;;  %v2823_v27 = vand.u32 2147483648, %v6519_v40  ;;  %v2750_v4 = vsel %vm2747_vm15, %v2749_v36, %v2745_v8  ;;  %vm2817_vm2 = vweird.f32 %v6519_v40  ;;  %vm2759_vm6 = vmor %vm2757_vm4, %vm2758_vm1 }
 0x869   :  { %v6522_v10 = vpop.f32.mrf.mxu3  ;;  %v2754_v61 = vsub.f32 1.0, %v2753_v38  ;;  %v2821_v62 = vand.u32 2147483647, %v6519_v40  ;;  %vm2762_vm7 = vcmp.eq.f32.partialorder %v2761_v11, 8.507059e+37  ;;  %v2695_v38 = vadd.f32 %v3743_v1, %v6516_v51 }
 0x86a   :  { %v2800_v37 = vmul.f32 %v4287_v20, %v2799_v13  ;;  %v2824_v0 = vor.u32 1.1754944e-38, %v2823_v27 }
 0x86b   :  { %v2755_v9 = vmul.f32 %v6524_v54, %v2754_v61  ;;  %vm2822_vm5 = vcmp.eq.f32.partialorder %v2821_v62, 8.507059e+37  ;;  %v3443_v56 = vmul.f32 -1.442695, %v2695_v38  ;;  %v3815_v61 = vld [vmem:[#allocation4 + $0x1f0] sm:$0xff]  }
 0x86c   :  { %v2801_v53 = vadd.f32 %v4287_v20, %v2800_v37  ;;  %v3756_v52 = vunpack.c.h.bf16 %v3815_v61 }
 0x86d   :  { %v6526_v63 = vpop.eup %4290  ;;  %v2756_v15 = vadd.f32 %v6524_v54, %v2755_v9 }
 0x86e   :  { %v2813_v16 = vmul.f32 %v6526_v63, %v6519_v40  ;;  %v2805_v23 = vsel %vm6532_vm10, %v4287_v20, %v2801_v53  ;;  %vm2818_vm14 = vweird.f32 %v6526_v63  ;;  %v2764_v40 = vor.u32 1.1754944e-38, %v2763_v41 }
 0x86f   :  { %v2810_v21 = vsel %vm2807_vm13, %v2809_v29, %v2805_v23  ;;  %vm6555_vm3 = vmor %vm2817_vm2, %vm2818_vm14  ;;  %v2760_v20 = vsel %vm2759_vm6, %v6524_v54, %v2756_v15 }
 0x870   :  { %v2814_v14 = vsub.f32 1.0, %v2813_v16  ;;  %v2937_v6 = vmul.f32 %v2810_v21, %v6314_v59  ;;  %v2765_v24 = vsel %vm2762_vm7, %v2764_v40, %v2760_v20  ;;  %v3759_v21 = vunpack.c.l.bf16 %v3816_v47 }
 0x871   :  { %v2669_v3 = vpop.f32.mrf.mxu3 }
 0x872   :  { %v2697_v57 = vadd.f32 %v3747_v34, %v2669_v3  ;;  %v2815_v26 = vmul.f32 %v6526_v63, %v2814_v14  ;;  %v2696_v34 = vadd.f32 %v3744_v31, %v6522_v10 }
 0x874   :  { %4292 = vtanh.f32 %v2697_v57  ;;  %v2816_v5 = vadd.f32 %v6526_v63, %v2815_v26  ;;  %v3444_v53 = vmul.f32 -1.442695, %v2696_v34 }
 0x876   :  { %v2820_v59 = vsel %vm6555_vm3, %v6526_v63, %v2816_v5 }
 0x877   :  { %v2825_v18 = vsel %vm2822_vm5, %v2824_v0, %v2820_v59 }
 0x878   :  { %v2938_v63 = vmul.f32 %v2825_v18, %v6331_v32  ;;  %v3755_v32 = vunpack.c.l.bf16 %v3815_v61 }
 0x879   :  { %v2671_v42 = vpop.f32.mrf.mxu3 }
 0x87a   :  { %v4293_v39 = vpop.eup %4292  ;;  %v2698_v46 = vadd.f32 %v3748_v19, %v2671_v42 }
 0x87b   :  { %v2941_v48 = vmul.f32 %v4293_v39, %v2750_v4  ;;  %v3814_v4 = vld [vmem:[#allocation4 + $0x1e8] sm:$0xff]  }
 0x87c   :  { %4294 = vtanh.f32 %v2698_v46  ;;  %v3751_v0 = vunpack.c.l.bf16 %v3814_v4 }
 0x87d   :  { %v6561_v43 = vadd.f32 %v2941_v48, %v2937_v6  ;;  %4296 = vpow2.f32 %v3439_v58 }
 0x87e   :  { %4298 = vpow2.f32 %v3440_v49 }
 0x881   :  { %v6570_v13 = vpop.f32.mrf.mxu3 }
 0x882   :  { %v4295_v17 = vpop.eup %4294 }
 0x883   :  { %v2942_v33 = vmul.f32 %v4295_v17, %v2765_v24  ;;  %v4297_v37 = vpop.eup %4296  ;;  %v3760_v17 = vunpack.c.h.bf16 %v3816_v47 }
 0x884   :  { %v4299_v54 = vpop.eup %4298  ;;  %v6577_v55 = vadd.f32 1.0, %v4297_v37  ;;  %v3752_v37 = vunpack.c.h.bf16 %v3814_v4 }
 0x885   :  { %v6574_v16 = vadd.f32 %v2942_v33, %v2938_v63  ;;  %v6581_v3 = vadd.f32 1.0, %v4299_v54 }
 0x886   :  { %4300 = vrcp.f32 %v6577_v55  ;;  %vm2772_vm9 = vweird.f32 %v6577_v55  ;;  %v2776_v46 = vand.u32 2147483647, %v6577_v55  ;;  %v2778_v48 = vand.u32 2147483648, %v6577_v55 }
 0x887   :  { %4302 = vpow2.f32 %v3443_v56  ;;  %vm2787_vm10 = vweird.f32 %v6581_v3  ;;  %v2793_v45 = vand.u32 2147483648, %v6581_v3  ;;  %v2791_v18 = vand.u32 2147483647, %v6581_v3 }
 0x888   :  { %4304 = vrcp.f32 %v6581_v3  ;;  %v2779_v31 = vor.u32 1.1754944e-38, %v2778_v48  ;;  %v2699_v56 = vadd.f32 %v3751_v0, %v6570_v13  ;;  %vm2777_vm15 = vcmp.eq.f32.partialorder %v2776_v46, 8.507059e+37  ;;  %v3001_v48 = vld [vmem:[%s6834_s3 + $0x78] sm:$0xff] }
 0x889   :  { %v6579_v14 = vpop.f32.mrf.mxu3  ;;  %4306 = vpow2.f32 %v3444_v53  ;;  %vm2792_vm14 = vcmp.eq.f32.partialorder %v2791_v18, 8.507059e+37 }
 0x88a   :  { %v2700_v13 = vadd.f32 %v3752_v37, %v6579_v14 }
 0x88c   :  { %v6585_v50 = vpop.eup %4300 }
 0x88d   :  { %v4303_v57 = vpop.eup %4302  ;;  %v2768_v28 = vmul.f32 %v6585_v50, %v6577_v55  ;;  %vm2773_vm8 = vweird.f32 %v6585_v50 }
 0x88e   :  { %v6587_v2 = vpop.eup %4304  ;;  %v6589_v12 = vadd.f32 1.0, %v4303_v57  ;;  %vm6627_vm11 = vmor %vm2772_vm9, %vm2773_vm8 }
 0x88f   :  { %v4307_v30 = vpop.eup %4306  ;;  %v2783_v44 = vmul.f32 %v6587_v2, %v6581_v3  ;;  %v2769_v9 = vsub.f32 1.0, %v2768_v28  ;;  %vm2788_vm12 = vweird.f32 %v6587_v2  ;;  %v2794_v3 = vor.u32 1.1754944e-38, %v2793_v45 }
 0x890   :  { %v6595_v26 = vadd.f32 1.0, %v4307_v30  ;;  %vm6636_vm13 = vmor %vm2787_vm10, %vm2788_vm12  ;;  %v2838_v34 = vand.u32 2147483648, %v6589_v12  ;;  %v2836_v61 = vand.u32 2147483647, %v6589_v12  ;;  %vm2832_vm1 = vweird.f32 %v6589_v12  ;;  %v3000_v30 = vld [vmem:[%s6834_s3 + $0x70] sm:$0xff] }
 0x891   :  { %v2679_v51 = vpop.f32.mrf.mxu3  ;;  %v2784_v8 = vsub.f32 1.0, %v2783_v44  ;;  %v2770_v42 = vmul.f32 %v6585_v50, %v2769_v9 }
 0x892   :  { %v2701_v10 = vadd.f32 %v3755_v32, %v2679_v51  ;;  %v2839_v28 = vor.u32 1.1754944e-38, %v2838_v34  ;;  %v2853_v14 = vand.u32 2147483648, %v6595_v26  ;;  %vm6668_vm3 = vcmp.eq.f32.partialorder %v2836_v61, 8.507059e+37  ;;  %v2994_v61 = vld [vmem:[%s6834_s3 + $0x40] sm:$0xff] }
 0x893   :  { %v2785_v5 = vmul.f32 %v6587_v2, %v2784_v8  ;;  %v2771_v60 = vadd.f32 %v6585_v50, %v2770_v42  ;;  %vm2847_vm10 = vweird.f32 %v6595_v26 }
 0x894   :  { %v3445_v22 = vmul.f32 -1.442695, %v2701_v10 }
 0x895   :  { %v2786_v41 = vadd.f32 %v6587_v2, %v2785_v5  ;;  %v2775_v33 = vsel %vm6627_vm11, %v6585_v50, %v2771_v60 }
 0x896   :  { %4308 = vpow2.f32 %v3445_v22  ;;  %v6651_v50 = vsel %vm2777_vm15, %v2779_v31, %v2775_v33 }
 0x897   :  { %4310 = vrcp.f32 %v6589_v12  ;;  %v2790_v38 = vsel %vm6636_vm13, %v6587_v2, %v2786_v41 }
 0x898   :  { %4312 = vrcp.f32 %v6595_v26  ;;  %v6653_v10 = vsel %vm2792_vm14, %v2794_v3, %v2790_v38 }
 0x899   :  { %v2681_v23 = vpop.f32.mrf.mxu3 }
 0x89a   :  { %v2702_v29 = vadd.f32 %v3756_v52, %v2681_v23 }
 0x89c   :  { %v4309_v19 = vpop.eup %4308  ;;  %v3446_v58 = vmul.f32 -1.442695, %v2702_v29  ;;  %v4420_v29 = vmov 0  }
 0x89d   :  { %v6599_v36 = vadd.f32 1.0, %v4309_v19  ;;  %v6602_v25 = vpop.eup %4310  ;;  %3825 = vset.pattern.permute.xlu0 %v4420_v29  ;;  %3826 = vset.pattern.permute.xlu1 %v4420_v29 }
 0x89e   :  { %4314 = vpow2.f32 %v3446_v58  ;;  %v6606_v27 = vpop.eup %4312  ;;  %v2828_v6 = vmul.f32 %v6602_v25, %v6589_v12  ;;  %vm2833_vm2 = vweird.f32 %v6602_v25  ;;  %3074 = vperm.xlu0 %3825, %v3000_v30   ;;  %3827 = vset.pattern.permute.xlu2 %v4420_v29  ;;  %v2993_v29 = vld [vmem:[%s6834_s3 + $0x38] sm:$0xff]  ;;  %v2991_v12 = vld [vmem:[%s6834_s3 + $0x28] sm:$0xff] }
 0x89f   :  { %4316 = vrcp.f32 %v6599_v36  ;;  %v2843_v59 = vmul.f32 %v6606_v27, %v6595_v26  ;;  %vm2848_vm6 = vweird.f32 %v6606_v27  ;;  %vm2882_vm5 = vweird.f32 %v6599_v36  ;;  %vm6696_vm8 = vmor %vm2832_vm1, %vm2833_vm2 }
 0x8a0   :  { %v2829_v24 = vsub.f32 1.0, %v2828_v6  ;;  %v2886_v5 = vand.u32 2147483647, %v6599_v36  ;;  %vm6711_vm12 = vmor %vm2847_vm10, %vm2848_vm6 }
 0x8a1   :  { %v2684_v39 = vpop.f32.mrf.mxu3  ;;  %v2844_v55 = vsub.f32 1.0, %v2843_v59 }
 0x8a2   :  { %v2703_v15 = vadd.f32 %v3759_v21, %v2684_v39  ;;  %v2830_v51 = vmul.f32 %v6602_v25, %v2829_v24  ;;  %v2888_v21 = vand.u32 2147483648, %v6599_v36  ;;  %vm2887_vm13 = vcmp.eq.f32.partialorder %v2886_v5, 8.507059e+37  ;;  %v2999_v39 = vld [vmem:[%s6834_s3 + $0x68] sm:$0xff] }
 0x8a3   :  { %v2845_v44 = vmul.f32 %v6606_v27, %v2844_v55 }
 0x8a4   :  { %v4315_v62 = vpop.eup %4314  ;;  %v3447_v49 = vmul.f32 -1.442695, %v2703_v15  ;;  %v2831_v9 = vadd.f32 %v6602_v25, %v2830_v51  ;;  %v2889_v60 = vor.u32 1.1754944e-38, %v2888_v21 }
 0x8a5   :  { %v6618_v11 = vpop.eup %4316  ;;  %v6623_v20 = vadd.f32 1.0, %v4315_v62  ;;  %v2846_v42 = vadd.f32 %v6606_v27, %v2845_v44  ;;  %v2998_v44 = vld [vmem:[%s6834_s3 + $0x60] sm:$0xff] }
 0x8a6   :  { %v2878_v1 = vmul.f32 %v6618_v11, %v6599_v36  ;;  %4318 = vpow2.f32 %v3447_v49  ;;  %vm2883_vm4 = vweird.f32 %v6618_v11  ;;  %3079 = vperm.xlu0 %3825, %v3001_v48   ;;  %3064 = vperm.xlu1 %3826, %v2998_v44   ;;  %v2990_v48 = vld [vmem:[%s6834_s3 + $0x20] sm:$0xff] }
 0x8a7   :  { %4320 = vrcp.f32 %v6623_v20  ;;  %vm6685_vm7 = vmor %vm2882_vm5, %vm2883_vm4  ;;  %v2903_v46 = vand.u32 2147483648, %v6623_v20  ;;  %v2901_v6 = vand.u32 2147483647, %v6623_v20  ;;  %vm2897_vm11 = vweird.f32 %v6623_v20 }
 0x8a8   :  { %v2879_v54 = vsub.f32 1.0, %v2878_v1  ;;  %4322 = vtanh.f32 %v2699_v56  ;;  %v2850_v59 = vsel %vm6711_vm12, %v6606_v27, %v2846_v42 }
 0x8a9   :  { %v2686_v53 = vpop.f32.mrf.mxu3  ;;  %v2904_v1 = vor.u32 1.1754944e-38, %v2903_v46  ;;  %vm2902_vm1 = vcmp.eq.f32.partialorder %v2901_v6, 8.507059e+37  ;;  %v2988_v46 = vld [vmem:[%s6834_s3 + $0x10] sm:$0xff] }
 0x8aa   :  { %v2704_v32 = vadd.f32 %v3760_v17, %v2686_v53  ;;  %v2880_v57 = vmul.f32 %v6618_v11, %v2879_v54  ;;  %v2992_v6 = vld [vmem:[%s6834_s3 + $0x30] sm:$0xff] }
 0x8ac   :  { %v4319_v2 = vpop.eup %4318  ;;  %v3448_v22 = vmul.f32 -1.442695, %v2704_v32  ;;  %v2881_v8 = vadd.f32 %v6618_v11, %v2880_v57 }
 0x8ad   :  { %v6661_v52 = vpop.eup %4320  ;;  %v6664_v23 = vadd.f32 1.0, %v4319_v2 }
 0x8ae   :  { %v2893_v19 = vmul.f32 %v6661_v52, %v6623_v20  ;;  %4324 = vpow2.f32 %v3448_v22  ;;  %vm2898_vm9 = vweird.f32 %v6661_v52  ;;  %v4323_v15 = vpop.eup %4322  ;;  %v2885_v36 = vsel %vm6685_vm7, %v6618_v11, %v2881_v8  ;;  %3044 = vperm.xlu0 %3825, %v2994_v61   ;;  %3069 = vperm.xlu1 %3826, %v2999_v39  }
 0x8af   :  { %4326 = vrcp.f32 %v6664_v23  ;;  %v2854_v11 = vor.u32 1.1754944e-38, %v2853_v14  ;;  %vm6725_vm15 = vmor %vm2897_vm11, %vm2898_vm9  ;;  %v2890_v18 = vsel %vm2887_vm13, %v2889_v60, %v2885_v36  ;;  %v2943_v31 = vmul.f32 %v4323_v15, %v6651_v50  ;;  %v3497_v15 = vld [vmem:[%s6833_s2] sm:$0xff]  ;;  %v2987_v36 = vld [vmem:[%s6834_s3 + $0x8] sm:$0xff] }
 0x8b0   :  { %4328 = vtanh.f32 %v2700_v13  ;;  %v2894_v58 = vsub.f32 1.0, %v2893_v19  ;;  %v2986_v60 = vld [vmem:[%s6834_s3] sm:$0xff] }
 0x8b1   :  { %4330 = vtanh.f32 %v6561_v43  ;;  %v2997_v43 = vld [vmem:[%s6834_s3 + $0x58] sm:$0xff] }
 0x8b2   :  { %4332 = vtanh.f32 %v6574_v16  ;;  %v2895_v4 = vmul.f32 %v6661_v52, %v2894_v58  ;;  %v2851_v16 = vand.u32 2147483647, %v6595_v26  ;;  %v2835_v26 = vsel %vm6696_vm8, %v6602_v25, %v2831_v9 }
 0x8b3   :  { %v2840_v27 = vsel %vm6668_vm3, %v2839_v28, %v2835_v26  ;;  %vm2912_vm3 = vweird.f32 %v6664_v23  ;;  %v2989_v26 = vld [vmem:[%s6834_s3 + $0x18] sm:$0xff] }
 0x8b4   :  { %v4325_v62 = vpop.eup %4324  ;;  %v2896_v41 = vadd.f32 %v6661_v52, %v2895_v4  ;;  %vm2852_vm14 = vcmp.eq.f32.partialorder %v2851_v16, 8.507059e+37  ;;  %v2939_v55 = vmul.f32 %v2840_v27, %v6446_v7  ;;  %v2995_v16 = vld [vmem:[%s6834_s3 + $0x48] sm:$0xff] }
 0x8b5   :  { %v4327_v49 = vpop.eup %4326  ;;  %v2876_v0 = vadd.f32 1.0, %v4325_v62  ;;  %v2855_v63 = vsel %vm2852_vm14, %v2854_v11, %v2850_v59  ;;  %v3498_v62 = vld [vmem:[%s6833_s2 + $0x8] sm:$0xff]  ;;  %v3501_v11 = vld [vmem:[%s6833_s2 + $0x20] sm:$0xff] }
 0x8b6   :  { %v4329_v25 = vpop.eup %4328  ;;  %v2908_v40 = vmul.f32 %v4327_v49, %v6664_v23  ;;  %v2900_v20 = vsel %vm6725_vm15, %v6661_v52, %v2896_v41  ;;  %v2940_v3 = vmul.f32 %v2855_v63, %v6448_v35  ;;  %v2947_v32 = vadd.f32 %v2943_v31, %v2939_v55  ;;  %3039 = vperm.xlu0 %3825, %v2993_v29   ;;  %v3499_v41 = vld [vmem:[%s6833_s2 + $0x10] sm:$0xff]  ;;  %v3502_v59 = vld [vmem:[%s6833_s2 + $0x28] sm:$0xff]  ;;  %v3220_v63 = vld [vmem:[%s6836_s5] sm:$0xff] }
 0x8b7   :  { %v4331_v17 = vpop.eup %4330  ;;  %4334 = vrcp.f32 %v2876_v0  ;;  %v2905_v37 = vsel %vm2902_vm1, %v2904_v1, %v2900_v20  ;;  %v2944_v38 = vmul.f32 %v4329_v25, %v6653_v10  ;;  %vm2913_vm2 = vweird.f32 %v4327_v49  ;;  %3049 = vperm.xlu1 %3826, %v2995_v16  }
 0x8b8   :  { %v4333_v24 = vpop.eup %4332  ;;  %v2909_v33 = vsub.f32 1.0, %v2908_v40  ;;  %v2953_v54 = vmul.f32 %v4331_v17, %v2890_v18  ;;  %v2918_v10 = vand.u32 2147483648, %v6664_v23  ;;  %4336 = vtanh.f32 %v2947_v32  ;;  %vm2914_vm4 = vmor %vm2912_vm3, %vm2913_vm2  ;;  %v3503_v40 = vld [vmem:[%s6833_s2 + $0x30] sm:$0xff]  ;;  %v3504_v17 = vld [vmem:[%s6833_s2 + $0x38] sm:$0xff] }
 0x8b9   :  { %v2954_v34 = vmul.f32 %v4333_v24, %v2905_v37  ;;  %v2948_v50 = vadd.f32 %v2944_v38, %v2940_v3  ;;  %v2916_v35 = vand.u32 2147483647, %v6664_v23  ;;  %v2933_v13 = vand.u32 2147483648, %v2876_v0  ;;  %v2996_v23 = vld [vmem:[%s6834_s3 + $0x50] sm:$0xff] }
 0x8ba   :  { %v2910_v56 = vmul.f32 %v4327_v49, %v2909_v33  ;;  %v2931_v52 = vand.u32 2147483647, %v2876_v0  ;;  %v2919_v28 = vor.u32 1.1754944e-38, %v2918_v10  ;;  %vm2927_vm5 = vweird.f32 %v2876_v0  ;;  %3054 = vperm.xlu2 %3827, %v2996_v23  }
 0x8bb   :  { %v2968_v53 = vpack.c.bf16 %v2954_v34, %v2953_v54  ;;  %4338 = vtanh.f32 %v2948_v50  ;;  %vm2917_vm7 = vcmp.eq.f32.partialorder %v2916_v35, 8.507059e+37  ;;  %v2934_v19 = vor.u32 1.1754944e-38, %v2933_v13 }
 0x8bc   :  { %v2911_v2 = vadd.f32 %v4327_v49, %v2910_v56  ;;  %vm2932_vm8 = vcmp.eq.f32.partialorder %v2931_v52, 8.507059e+37 }
 0x8bd   :  { %v4335_v51 = vpop.eup %4334 }
 0x8be   :  { %v2923_v57 = vmul.f32 %v4335_v51, %v2876_v0  ;;  %v2915_v30 = vsel %vm2914_vm4, %v4327_v49, %v2911_v2  ;;  %vm2928_vm6 = vweird.f32 %v4335_v51  ;;  %v4337_v9 = vpop.eup %4336  ;;  %3014 = vperm.xlu0 %3825, %v2988_v46   ;;  %v3500_v49 = vld [vmem:[%s6833_s2 + $0x18] sm:$0xff] }
 0x8bf   :  { %v2920_v47 = vsel %vm2917_vm7, %v2919_v28, %v2915_v30  ;;  %vm2929_vm9 = vmor %vm2927_vm5, %vm2928_vm6  ;;  %3024 = vperm.xlu1 %3826, %v2990_v48  }
 0x8c0   :  { %v2924_v7 = vsub.f32 1.0, %v2923_v57  ;;  %v2955_v42 = vmul.f32 %v4337_v9, %v2920_v47 }
 0x8c1   :  { %v4339_v58 = vpop.eup %4338 }
 0x8c2   :  { %v2925_v22 = vmul.f32 %v4335_v51, %v2924_v7  ;;  %3059 = vperm.xlu2 %3827, %v2997_v43  }
 0x8c4   :  { %v2926_v14 = vadd.f32 %v4335_v51, %v2925_v22 }
 0x8c6   :  { %v2930_v8 = vsel %vm2929_vm9, %v4335_v51, %v2926_v14  ;;  %3009 = vperm.xlu0 %3825, %v2987_v36  }
 0x8c7   :  { %v2935_v21 = vsel %vm2932_vm8, %v2934_v19, %v2930_v8  ;;  %3019 = vperm.xlu1 %3826, %v2989_v26  }
 0x8c8   :  { %v2956_v5 = vmul.f32 %v4339_v58, %v2935_v21 }
 0x8ca   :  { %v2969_v4 = vpack.c.bf16 %v2956_v5, %v2955_v42  ;;  %3034 = vperm.xlu2 %3827, %v2992_v6  }
 0x8cc   :  { %3152 = vmatpush.bf16.msra.mxu0 %v2969_v4 }
 0x8cf   :  { %3223 = vperm.xlu1 %3826, %v3220_v63  }
 0x8d0   :  { %3153 = vmatpush.bf16.msra.mxu0 %v2968_v53 }
 0x8d2   :  { %3029 = vperm.xlu2 %3827, %v2991_v12  }
 0x8d3   :  { %3481 = vmatmul.msk.bf16.vlgmr.msra.gmra.mxu0 %vm151_vm0, %v3497_v15 }
 0x8da   :  { %3004 = vperm.xlu2 %3827, %v2986_v60  }
 0x8e3   :  { %3482 = vmatmul.msk.bf16.gmra.mxu0 %vm151_vm0, %v3498_v62 }
 0x8f3   :  { %3483 = vmatmul.msk.bf16.gmra.mxu0 %vm151_vm0, %v3499_v41 }
 0x903   :  { %3484 = vmatmul.msk.bf16.gmra.mxu0 %vm151_vm0, %v3500_v49 }
 0x910   :  { %v3075_v0 = vpop.permute.xlu0 %3074 }
 0x913   :  { %3485 = vmatmul.msk.bf16.gmra.mxu0 %vm151_vm0, %v3501_v11 }
 0x914   :  { %v6808_v45 = vpop.permute.xlu2 %3054 }
 0x918   :  { %v3080_v25 = vpop.permute.xlu0 %3079  ;;  %v3065_v1 = vpop.permute.xlu1 %3064 }
 0x91c   :  { %v3060_v18 = vpop.permute.xlu2 %3059 }
 0x920   :  { %v6814_v20 = vpop.permute.xlu0 %3044  ;;  %v3070_v31 = vpop.permute.xlu1 %3069 }
 0x923   :  { %3486 = vmatmul.msk.bf16.gmra.mxu0 %vm151_vm0, %v3502_v59 }
 0x924   :  { %v3035_v27 = vpop.permute.xlu2 %3034 }
 0x928   :  { %v3040_v24 = vpop.permute.xlu0 %3039 }
 0x929   :  { %v3050_v54 = vpop.permute.xlu1 %3049 }
 0x92c   :  { %v3030_v33 = vpop.permute.xlu2 %3029 }
 0x930   :  { %v3015_v37 = vpop.permute.xlu0 %3014 }
 0x931   :  { %v3025_v51 = vpop.permute.xlu1 %3024 }
 0x933   :  { %3487 = vmatmul.msk.bf16.gmra.mxu0 %vm151_vm0, %v3503_v40 }
 0x934   :  { %v3005_v34 = vpop.permute.xlu2 %3004 }
 0x938   :  { %v3010_v55 = vpop.permute.xlu0 %3009 }
 0x939   :  { %v3020_v2 = vpop.permute.xlu1 %3019 }
 0x943   :  { %3488 = vmatmul.msk.bf16.gmra.mxu0 %vm151_vm0, %v3504_v17 }
 0x950   :  { %v3155_v38 = vpop.f32.mrf.mxu0 }
 0x951   :  { %v3156_v56 = vadd.f32 %v3155_v38, %v3005_v34 }
 0x953   :  { %v3195_v32 = vmax.f32 %v3156_v56, 0.0 }
 0x958   :  { %v3157_v3 = vpop.f32.mrf.mxu0 }
 0x959   :  { %v3158_v53 = vadd.f32 %v3157_v3, %v3010_v55 }
 0x95b   :  { %v3196_v61 = vmax.f32 %v3158_v53, 0.0 }
 0x95d   :  { %v3212_v50 = vpack.c.bf16 %v3196_v61, %v3195_v32 }
 0x960   :  { %v3160_v57 = vpop.f32.mrf.mxu0 }
 0x961   :  { %v3161_v10 = vadd.f32 %v3160_v57, %v3015_v37 }
 0x963   :  { %v3197_v13 = vmax.f32 %v3161_v10, 0.0 }
 0x968   :  { %v3162_v7 = vpop.f32.mrf.mxu0 }
 0x969   :  { %v3163_v35 = vadd.f32 %v3162_v7, %v3020_v2 }
 0x96b   :  { %v3198_v22 = vmax.f32 %v3163_v35, 0.0 }
 0x96d   :  { %v3213_v30 = vpack.c.bf16 %v3198_v22, %v3197_v13 }
 0x970   :  { %v3165_v52 = vpop.f32.mrf.mxu0 }
 0x971   :  { %v3166_v28 = vadd.f32 %v3165_v52, %v3025_v51 }
 0x973   :  { %v3199_v14 = vmax.f32 %v3166_v28, 0.0 }
 0x978   :  { %v3167_v44 = vpop.f32.mrf.mxu0 }
 0x979   :  { %v3168_v29 = vadd.f32 %v3167_v44, %v3030_v33 }
 0x97b   :  { %v3200_v23 = vmax.f32 %v3168_v29, 0.0 }
 0x97d   :  { %v3214_v47 = vpack.c.bf16 %v3200_v23, %v3199_v14 }
 0x980   :  { %v3170_v19 = vpop.f32.mrf.mxu0 }
 0x981   :  { %v3171_v9 = vadd.f32 %v3170_v19, %v3035_v27 }
 0x983   :  { %v3201_v21 = vmax.f32 %v3171_v9, 0.0 }
 0x988   :  { %v3172_v8 = vpop.f32.mrf.mxu0 }
 0x989   :  { %v3173_v58 = vadd.f32 %v3172_v8, %v3040_v24 }
 0x98b   :  { %v3202_v42 = vmax.f32 %v3173_v58, 0.0 }
 0x98d   :  { %v3215_v5 = vpack.c.bf16 %v3202_v42, %v3201_v21 }
 0x990   :  { %v3175_v39 = vpop.f32.mrf.mxu0 }
 0x991   :  { %v3176_v33 = vadd.f32 %v3175_v39, %v6814_v20 }
 0x998   :  { %v3177_v4 = vpop.f32.mrf.mxu0 }
 0x999   :  { %v3178_v27 = vadd.f32 %v3177_v4, %v3050_v54 }
 0x9a0   :  { %v3180_v46 = vpop.f32.mrf.mxu0 }
 0x9a1   :  { %v3181_v40 = vadd.f32 %v3180_v46, %v6808_v45  ;;  %v3211_v45 = vld [vmem:[%s6835_s4] sm:$0xf] }
 0x9a3   :  { %v3205_v37 = vmax.f32 %v3181_v40, 0.0 }
 0x9a8   :  { %v3182_v15 = vpop.f32.mrf.mxu0 }
 0x9a9   :  { %v3183_v49 = vadd.f32 %v3182_v15, %v3060_v18  ;;  %v3224_v18 = vpop.permute.xlu1 %3223 }
 0x9ab   :  { %v3206_v24 = vmax.f32 %v3183_v49, 0.0 }
 0x9b0   :  { %v3185_v43 = vpop.f32.mrf.mxu0 }
 0x9b1   :  { %v3186_v26 = vadd.f32 %v3185_v43, %v3065_v1 }
 0x9b3   :  { %v3207_v17 = vmax.f32 %v3186_v26, 0.0 }
 0x9b8   :  { %v3187_v16 = vpop.f32.mrf.mxu0 }
 0x9b9   :  { %v3188_v62 = vadd.f32 %v3187_v16, %v3070_v31  ;;  %v3217_v31 = vpack.c.bf16 %v3206_v24, %v3205_v37 }
 0x9bb   :  { %v3208_v11 = vmax.f32 %v3188_v62, 0.0 }
 0x9bd   :  { %v3218_v63 = vpack.c.bf16 %v3208_v11, %v3207_v17 }
 0x9c0   :  { %v3190_v36 = vpop.f32.mrf.mxu0 }
 0x9c1   :  { %v3191_v6 = vadd.f32 %v3190_v36, %v3075_v0  ;;  %v3204_v0 = vmax.f32 %v3178_v27, 0.0 }
 0x9c3   :  { %v3209_v60 = vmax.f32 %v3191_v6, 0.0 }
 0x9c8   :  { %v3192_v48 = vpop.f32.mrf.mxu0 }
 0x9c9   :  { %v3193_v12 = vadd.f32 %v3192_v48, %v3080_v25  ;;  %v3203_v25 = vmax.f32 %v3176_v33, 0.0 }
 0x9cb   :  { %v3210_v41 = vmax.f32 %v3193_v12, 0.0  ;;  %v3216_v1 = vpack.c.bf16 %v3204_v0, %v3203_v25 }
 0x9cd   :  { %v3219_v59 = vpack.c.bf16 %v3210_v41, %v3209_v60 }
 0x9cf   :  { %3226 = vmatpush.bf16.msra.mxu1 %v3219_v59 }
 0x9d3   :  { %3227 = vmatpush.bf16.msra.mxu1 %v3218_v63 }
 0x9d7   :  { %3228 = vmatpush.bf16.msra.mxu1 %v3217_v31 }
 0x9db   :  { %3229 = vmatpush.bf16.msra.mxu1 %v3216_v1 }
 0x9df   :  { %3230 = vmatpush.bf16.msra.mxu1 %v3215_v5 }
 0x9e3   :  { %3231 = vmatpush.bf16.msra.mxu1 %v3214_v47 }
 0x9e7   :  { %3232 = vmatpush.bf16.msra.mxu1 %v3213_v30 }
 0x9eb   :  { %3233 = vmatpush.bf16.msra.mxu1 %v3212_v50 }
 0x9ee   :  { %3234 = vmatmul.bf16.vlgmr.msra.gmra.mxu1 %v3211_v45 }
 0xa6b   :  { %v3235_v20 = vpop.f32.mrf.mxu1 }
 0xa6c   :  { %v3236_v38 = vadd.f32 %v3235_v20, %v3224_v18 }
 0xa6e   :  { %3239 = vst [vmem:[#allocation7] sm:$0xff] %v3236_v38 }
 0xa6f   :  { %3250 = dma.vmem_to_hbm [thread:$0]  %s3246_s15, 128, %s3248_s17, [#allocation6]  }
 0xa73   :  { %v3237_v54 = vpop.f32.mrf.mxu1 }
 0xa74   :  { %4414 = dma.done.wait [#allocation6], 128  }
 0xa75   :  { %4415 = vsyncadd [#allocation6], 4294967168 }
 0xa76   :  { %3255 = vsyncpa [#allocation5], 1 }
 0xa77   :  { %3256 = vsyncpa [#allocation6], 1 }

</bundles_post_ra>
